<compile_context>
chip_gen: v6e
topology: v6e:2x2x1
jax: 0.10.0
libtpu: 0.0.40
codegen_flags: <defaults>
</compile_context>

<pallas_src>
import jax
import jax.numpy as jnp
from jax.experimental import pallas as pl
from jax.experimental.pallas import tpu as pltpu


def _round_up(v, m):
    return ((v + m - 1) // m) * m


def _vq_kernel(x_ref, et_ref, e_ref, enorm_ref, o_ref):
    """One tile of points.

    x_ref     : (TN, Cp)  f32  tile of flattened (zero-padded) input vectors
    et_ref    : (Cp, Kp)  f32  codebook transposed (resident)
    e_ref     : (Kp, Cp)  f32  codebook (resident, for the one-hot lookup)
    enorm_ref : (1,  Kp)  f32  ||E_k||^2, +inf on padded codebook rows
    o_ref     : (TN, Cp)  f32  quantized (nearest-codebook) vectors
    """
    x = x_ref[...]                                                    # (TN, Cp)

    # MXU: scores = x @ E^T, contracting over channels, K on the lane axis.
    scores = jnp.dot(x, et_ref[...], preferred_element_type=jnp.float32)  # (TN, Kp)

    # ||x||^2 is constant per row under argmin -> dropped.  Padded codebook
    # rows carry +inf norm, so they can never be selected.
    dist = enorm_ref[...] - 2.0 * scores                              # (TN, Kp)

    tn, kp = dist.shape
    min_d = jnp.min(dist, axis=1, keepdims=True)                      # (TN, 1)
    iota_k = jax.lax.broadcasted_iota(jnp.int32, (tn, kp), 1)
    # First-index-wins argmin (torch.argmin semantics).
    idx = jnp.min(jnp.where(dist == min_d, iota_k, kp),
                  axis=1, keepdims=True)                              # (TN, 1)

    # Exact embedding lookup via one-hot MXU matmul (one codebook row per
    # point; padded rows never selected so they contribute zeros).
    onehot = (iota_k == idx).astype(jnp.float32)                      # (TN, Kp)
    o_ref[...] = jnp.dot(onehot, e_ref[...],
                         preferred_element_type=jnp.float32)          # (TN, Cp)


def vector_quantize_flat(x_flat, embed, *, tile_n=512):
    """x_flat: (N, C) float32, embed: (K, C) float32 -> (N, C) float32."""
    n, c = x_flat.shape
    k, ce = embed.shape
    assert ce == c, "embedding dim must match channel dim"

    # Lane-dense padding: channels and codebook size up to multiples of 128.
    c_pad = _round_up(c, 128)
    k_pad = _round_up(k, 128)

    # Row tile: multiple of 8 sublanes, clamped to the (rounded) problem size.
    tile_n = _round_up(max(int(tile_n), 8), 8)
    tile_n = min(tile_n, _round_up(n, 8))
    n_pad = _round_up(n, tile_n)

    # Zero-pad inputs (zeros do not change L2 distances); precompute the
    # transposed codebook and row norms once in the wrapper so they stay
    # resident and are never re-derived per grid step.
    x_p = jnp.zeros((n_pad, c_pad), jnp.float32).at[:n, :c].set(
        x_flat.astype(jnp.float32))
    e_p = jnp.zeros((k_pad, c_pad), jnp.float32).at[:k, :c].set(
        embed.astype(jnp.float32))
    e_t = e_p.T                                                       # (Cp, Kp)
    e_norm = jnp.sum(e_p * e_p, axis=1)
    e_norm = jnp.where(jnp.arange(k_pad) < k, e_norm, jnp.inf)
    e_norm = e_norm.reshape(1, k_pad)

    grid = (n_pad // tile_n,)
    out = pl.pallas_call(
        _vq_kernel,
        out_shape=jax.ShapeDtypeStruct((n_pad, c_pad), jnp.float32),
        grid=grid,
        in_specs=[
            pl.BlockSpec((tile_n, c_pad), lambda i: (i, 0)),   # points tile
            pl.BlockSpec((c_pad, k_pad), lambda i: (0, 0)),    # E^T (resident)
            pl.BlockSpec((k_pad, c_pad), lambda i: (0, 0)),    # E   (resident)
            pl.BlockSpec((1, k_pad), lambda i: (0, 0)),        # ||E||^2 (resident)
        ],
        out_specs=pl.BlockSpec((tile_n, c_pad), lambda i: (i, 0)),
        compiler_params=pltpu.CompilerParams(
            # "parallel" N axis lets v7x shard grid steps across its 2 TCs.
            dimension_semantics=("parallel",),
            # Plenty of headroom for this tiling (~a few MiB per step).
            # Re-derive before pushing tile_n/K up: v7x has only 64 MiB VMEM.
            vmem_limit_bytes=32 * 1024 * 1024,
        ),
    )(x_p, e_t, e_p, e_norm)
    return out[:n, :c]


def vector_quantizer_forward(x_nchw, embed):
    """Full VectorQuantizer.forward: NCHW float32 in, NCHW float32 out."""
    b, c, h, w = x_nchw.shape
    # 'b c h w -> (b h w) c'
    x_flat = jnp.transpose(x_nchw, (0, 2, 3, 1)).reshape(b * h * w, c)
    q_flat = vector_quantize_flat(x_flat, embed)
    # (b h w) c -> b h w c -> permute(0, 3, 1, 2) -> b c h w
    return jnp.transpose(q_flat.reshape(b, h, w, c), (0, 3, 1, 2))


if __name__ == "__main__":
    # Small shapes: batch=2, channels(hidden_dim)=4, spatial=16, n_embeds=8
    B, C, H, W = 2, 4, 16, 16
    N_EMBEDS, HIDDEN_DIM = 8, C

    key = jax.random.PRNGKey(0)
    k_x, k_e = jax.random.split(key)

    x = jax.random.normal(k_x, (B, C, H, W), dtype=jnp.float32)
    # nn.Embedding weight init: uniform(-1/n_embeds, 1/n_embeds), shape (K, C)
    embed_weight = jax.random.uniform(
        k_e, (N_EMBEDS, HIDDEN_DIM), dtype=jnp.float32,
        minval=-1.0 / N_EMBEDS, maxval=1.0 / N_EMBEDS)

    out = vector_quantizer_forward(x, embed_weight)
    out = jax.block_until_ready(out)

    # Pure-JAX reference: exact broadcast L2 + argmin, like the PyTorch code.
    xf = jnp.transpose(x, (0, 2, 3, 1)).reshape(B * H * W, C)
    d = jnp.sum((xf[:, None, :] - embed_weight[None, :, :]) ** 2, axis=2)
    ref = embed_weight[jnp.argmin(d, axis=1)].reshape(B, H, W, C)
    ref = jnp.transpose(ref, (0, 3, 1, 2))
    assert out.shape == (B, C, H, W)
    assert jnp.allclose(out, ref, atol=1e-5), "mismatch vs reference"

    print("KERNEL_OK")
</pallas_src>

<mosaic_0001>
module attributes {stable_mosaic.version = 11 : i64} {
  func.func @_vq_kernel(%arg0: i32, %arg1: memref<512x128xf32, #tpu.memory_space<vmem>>, %arg2: memref<128x128xf32, #tpu.memory_space<vmem>>, %arg3: memref<128x128xf32, #tpu.memory_space<vmem>>, %arg4: memref<1x128xf32, #tpu.memory_space<vmem>>, %arg5: memref<512x128xf32, #tpu.memory_space<vmem>>) attributes {dimension_semantics = [#tpu.dimension_semantics<parallel>], iteration_bounds = array<i64: 1>, scalar_prefetch = 0 : i64, scratch_operands = 0 : i64, tpu.core_type = #tpu.core_type<tc>, window_params = [{transform_indices = @transform_0, window_bounds = array<i64: 512, 128>}, {pipeline_mode = #tpu.pipeline_mode<synchronous>, transform_indices = @transform_1, window_bounds = array<i64: 128, 128>}, {pipeline_mode = #tpu.pipeline_mode<synchronous>, transform_indices = @transform_2, window_bounds = array<i64: 128, 128>}, {pipeline_mode = #tpu.pipeline_mode<synchronous>, transform_indices = @transform_3, window_bounds = array<i64: 1, 128>}, {transform_indices = @transform_4, window_bounds = array<i64: 512, 128>}]} {
    %c0 = arith.constant 0 : index
    %c0_0 = arith.constant 0 : index
    %0 = vector.load %arg1[%c0, %c0_0] : memref<512x128xf32, #tpu.memory_space<vmem>>, vector<512x128xf32>
    %c0_1 = arith.constant 0 : index
    %c0_2 = arith.constant 0 : index
    %1 = vector.load %arg2[%c0_1, %c0_2] : memref<128x128xf32, #tpu.memory_space<vmem>>, vector<128x128xf32>
    %cst = arith.constant dense<0.000000e+00> : vector<512x128xf32>
    %2 = tpu.matmul %0, %1, %cst {dimension_numbers = #tpu.dot_dimension_numbers<[1], [0], [0], [1], [0, 0, 1, 1], [], []>} : vector<512x128xf32>, vector<128x128xf32>, vector<512x128xf32> -> vector<512x128xf32>
    %c0_3 = arith.constant 0 : index
    %c0_4 = arith.constant 0 : index
    %3 = vector.load %arg4[%c0_3, %c0_4] : memref<1x128xf32, #tpu.memory_space<vmem>>, vector<1x128xf32>
    %cst_5 = arith.constant 2.000000e+00 : f32
    %4 = vector.broadcast %cst_5 : f32 to vector<512x128xf32>
    %5 = arith.mulf %4, %2 : vector<512x128xf32>
    %6 = vector.broadcast %3 : vector<1x128xf32> to vector<512x128xf32>
    %7 = arith.subf %6, %5 : vector<512x128xf32>
    %cst_6 = arith.constant dense<0x7F800000> : vector<512xf32>
    %8 = vector.multi_reduction <minimumf>, %7, %cst_6 [1] : vector<512x128xf32> to vector<512xf32>
    %9 = vector.shape_cast %8 : vector<512xf32> to vector<512x1xf32>
    %10 = tpu.iota {dimensions = array<i32: 1>} : vector<512x128xi32>
    %11 = vector.broadcast %9 : vector<512x1xf32> to vector<512x128xf32>
    %12 = arith.cmpf oeq, %7, %11 : vector<512x128xf32>
    %c128_i32 = arith.constant 128 : i32
    %13 = vector.broadcast %c128_i32 : i32 to vector<512x128xi32>
    %14 = arith.select %12, %10, %13 : vector<512x128xi1>, vector<512x128xi32>
    %cst_7 = arith.constant dense<2147483647> : vector<512xi32>
    %15 = vector.multi_reduction <minsi>, %14, %cst_7 [1] : vector<512x128xi32> to vector<512xi32>
    %16 = vector.shape_cast %15 : vector<512xi32> to vector<512x1xi32>
    %17 = vector.broadcast %16 : vector<512x1xi32> to vector<512x128xi32>
    %18 = arith.cmpi eq, %10, %17 : vector<512x128xi32>
    %19 = arith.extui %18 : vector<512x128xi1> to vector<512x128xi32>
    %20 = arith.sitofp %19 : vector<512x128xi32> to vector<512x128xf32>
    %c0_8 = arith.constant 0 : index
    %c0_9 = arith.constant 0 : index
    %21 = vector.load %arg3[%c0_8, %c0_9] : memref<128x128xf32, #tpu.memory_space<vmem>>, vector<128x128xf32>
    %cst_10 = arith.constant dense<0.000000e+00> : vector<512x128xf32>
    %22 = tpu.matmul %20, %21, %cst_10 {dimension_numbers = #tpu.dot_dimension_numbers<[1], [0], [0], [1], [0, 0, 1, 1], [], []>} : vector<512x128xf32>, vector<128x128xf32>, vector<512x128xf32> -> vector<512x128xf32>
    %c0_11 = arith.constant 0 : index
    %c0_12 = arith.constant 0 : index
    %23 = vector.load %arg5[%c0_11, %c0_12] : memref<512x128xf32, #tpu.memory_space<vmem>>, vector<512x128xf32>
    tpu.vector_store %arg5[%c0_11, %c0_12], %22 {strides = array<i32>} : memref<512x128xf32, #tpu.memory_space<vmem>>, vector<512x128xf32>,
    return
  }
  func.func @transform_0(%arg0: i32) -> (i32, i32) {
    %c0_i32 = arith.constant 0 : i32
    %c0_i32_0 = arith.constant 0 : i32
    return %arg0, %c0_i32 : i32, i32
  }
  func.func @transform_1(%arg0: i32) -> (i32, i32) {
    %c0_i32 = arith.constant 0 : i32
    %c0_i32_0 = arith.constant 0 : i32
    %c0_i32_1 = arith.constant 0 : i32
    return %c0_i32, %c0_i32_0 : i32, i32
  }
  func.func @transform_2(%arg0: i32) -> (i32, i32) {
    %c0_i32 = arith.constant 0 : i32
    %c0_i32_0 = arith.constant 0 : i32
    %c0_i32_1 = arith.constant 0 : i32
    return %c0_i32, %c0_i32_0 : i32, i32
  }
  func.func @transform_3(%arg0: i32) -> (i32, i32) {
    %c0_i32 = arith.constant 0 : i32
    %c0_i32_0 = arith.constant 0 : i32
    %c0_i32_1 = arith.constant 0 : i32
    return %c0_i32, %c0_i32_0 : i32, i32
  }
  func.func @transform_4(%arg0: i32) -> (i32, i32) {
    %c0_i32 = arith.constant 0 : i32
    %c0_i32_0 = arith.constant 0 : i32
    return %arg0, %c0_i32 : i32, i32
  }
}

</mosaic_0001>

<bundles_post_ra>
// kernel: tpu_custom_call.1
= control target key start
LH: loop header
LB: loop body
LE: loop exit
PB: predicated region body
PF: predicated region fallthrough
CT: control target
= control target key end

     0   :  { %9 = vsyncpa [#allocation3], 0  ;;  %s4547_s0 = inlined_call_operand.hbm [shape: f32[512,128], index: 0, kind: input, shape index: {}]   ;;  %s4548_s1 = inlined_call_operand.hbm [shape: f32[128,128], index: 1, kind: input, shape index: {}]   ;;  %s4549_s2 = inlined_call_operand.hbm [shape: f32[128,128], index: 2, kind: input, shape index: {}]   ;;  %s4550_s3 = inlined_call_operand.vmem [shape: f32[1,128], index: 3, kind: input, shape index: {}]   ;;  %s4551_s4 = inlined_call_operand.hbm [shape: f32[512,128], index: 4, kind: output, shape index: {}]  }
   0x1   :  { %10 = vsyncpa [#allocation6], 0 }
   0x2   :  { %11 = vsyncpa [#allocation4], 0  ;;  %s3126_s15 = smov [#allocation5]   ;;  %s3127_s17 = smov [#allocation2]  }
   0x3   :  { %s29_s16 = sshll.u32 %s3126_s15, 4  ;;  %s17_s18 = sshll.u32 %s3127_s17, 4  ;;  %s30_s16 = int_to_ptr.vmem [resolvable:$true] %s29_s16  ;;  %s18_s18 = int_to_ptr.vmem [resolvable:$true] %s17_s18 }
   0x4   :  { %s3048_s19 = scalar_lea.vmem %s30_s16, 2048  ;;  %p3053_p1 = scmp.lt.s32.totalorder %s30_s16, %s30_s16 }
   0x5   :  { %p3049_p0 = scmp.ne.s32.totalorder %s30_s16, %s3048_s19  ;;  %p3054_p2 = scmp.lt.s32.totalorder %s3048_s19, %s3048_s19 }
   0x7   :  { %p3055_p3 = por %p3054_p2, %p3053_p1 }
   0x9   :  { %p3056_p4 = pnand %p3055_p3, %p3049_p0 }
   0xb   :  { %3059 = shalt.err (!%p3056_p4)
}
   0xc   :  { %s3128_s20 = smov 128   ;;  %s3129_s21 = smov 8  }
   0xd   :  { %35 = dma.hbm_to_vmem [thread:$0]  %s4548_s1, 2048, %s30_s16, [#allocation6], %s3128_s20, %s3128_s20, %s3129_s21  }
   0xe   :  { %s3068_s24 = scalar_lea.vmem %s18_s18, 8192  ;;  %p3073_p6 = scmp.lt.s32.totalorder %s18_s18, %s18_s18 }
   0xf   :  { %p3069_p5 = scmp.ne.s32.totalorder %s18_s18, %s3068_s24  ;;  %p3074_p7 = scmp.lt.s32.totalorder %s3068_s24, %s3068_s24 }
  0x11   :  { %p3075_p8 = por %p3074_p7, %p3073_p6 }
  0x13   :  { %p3076_p9 = pnand %p3075_p8, %p3069_p5 }
  0x15   :  { %3079 = shalt.err (!%p3076_p9)
}
  0x16   :  { %23 = dma.hbm_to_vmem [thread:$0]  %s4547_s0, 8192, %s18_s18, [#allocation3], %s3128_s20, %s3128_s20, %s3129_s21  }
  0x17   :  { %s3130_s27 = smov [#allocation7]  }
  0x18   :  { %s41_s28 = sshll.u32 %s3130_s27, 4  ;;  %s42_s28 = int_to_ptr.vmem [resolvable:$true] %s41_s28 }
  0x19   :  { %s3088_s29 = scalar_lea.vmem %s42_s28, 2048  ;;  %p3093_p11 = scmp.lt.s32.totalorder %s42_s28, %s42_s28 }
  0x1a   :  { %p3089_p10 = scmp.ne.s32.totalorder %s42_s28, %s3088_s29  ;;  %p3094_p12 = scmp.lt.s32.totalorder %s3088_s29, %s3088_s29 }
  0x1c   :  { %p3095_p13 = por %p3094_p12, %p3093_p11 }
  0x1e   :  { %p3096_p0 = pnand %p3095_p13, %p3089_p10 }
  0x20   :  { %3099 = shalt.err (!%p3096_p0)
}
  0x21   :  { %47 = dma.hbm_to_vmem [thread:$0]  %s4549_s2, 2048, %s42_s28, [#allocation6], %s3128_s20, %s3128_s20, %s3129_s21  }
  0x22   :  { %3120 = dma.done.wait [#allocation3], 8192  }
  0x23   :  { %3121 = vsyncadd [#allocation3], 4294959104 }
  0x24   :  { %3122 = dma.done.wait [#allocation6], 4096  }
  0x25   :  { %3123 = vsyncadd [#allocation6], 4294963200  ;;  %v138_v0 = vld [vmem:[#allocation5 + $0x78] sm:$0xff]  ;;  %v137_v1 = vld [vmem:[#allocation5 + $0x70] sm:$0xff] }
  0x26   :  { %2777 = vmatprep.subr.mxu0 %v138_v0  ;;  %v136_v2 = vld [vmem:[#allocation5 + $0x68] sm:$0xff]  ;;  %v135_v3 = vld [vmem:[#allocation5 + $0x60] sm:$0xff]  ;;  %v134_v5 = vld [vmem:[#allocation5 + $0x58] sm:$0xff] }
  0x27   :  { %2778 = vmatpush3.msra.mxu0 %v138_v0  ;;  %v59_v4 = vld [vmem:[#allocation2] sm:$0xff]  ;;  %v133_v6 = vld [vmem:[#allocation5 + $0x50] sm:$0xff]  ;;  %v132_v7 = vld [vmem:[#allocation5 + $0x48] sm:$0xff] }
  0x28   :  { %2779 = vmatprep.subr.mxu0 %v137_v1  ;;  %2809 = vmatprep.mubr.f32.mxu0 %v59_v4  ;;  %v131_v8 = vld [vmem:[#allocation5 + $0x40] sm:$0xff]  ;;  %v130_v9 = vld [vmem:[#allocation5 + $0x38] sm:$0xff]  ;;  %v129_v10 = vld [vmem:[#allocation5 + $0x30] sm:$0xff] }
  0x29   :  { %2780 = vmatpush3.msra.mxu0 %v137_v1  ;;  %v128_v11 = vld [vmem:[#allocation5 + $0x28] sm:$0xff]  ;;  %v127_v12 = vld [vmem:[#allocation5 + $0x20] sm:$0xff]  ;;  %v126_v13 = vld [vmem:[#allocation5 + $0x18] sm:$0xff] }
  0x2a   :  { %2781 = vmatprep.subr.mxu0 %v136_v2  ;;  %v125_v14 = vld [vmem:[#allocation5 + $0x10] sm:$0xff]  ;;  %v124_v15 = vld [vmem:[#allocation5 + $0x8] sm:$0xff]  ;;  %v123_v16 = vld [vmem:[#allocation5] sm:$0xff] }
  0x2b   :  { %2782 = vmatpush3.msra.mxu0 %v136_v2  ;;  %v60_v17 = vld [vmem:[#allocation2 + $0x8] sm:$0xff]  ;;  %v61_v18 = vld [vmem:[#allocation2 + $0x10] sm:$0xff]  ;;  %v62_v19 = vld [vmem:[#allocation2 + $0x18] sm:$0xff] }
  0x2c   :  { %2783 = vmatprep.subr.mxu0 %v135_v3  ;;  %v63_v20 = vld [vmem:[#allocation2 + $0x20] sm:$0xff]  ;;  %v64_v21 = vld [vmem:[#allocation2 + $0x28] sm:$0xff]  ;;  %v65_v22 = vld [vmem:[#allocation2 + $0x30] sm:$0xff] }
  0x2d   :  { %2784 = vmatpush3.msra.mxu0 %v135_v3  ;;  %v66_v23 = vld [vmem:[#allocation2 + $0x38] sm:$0xff]  ;;  %v67_v24 = vld [vmem:[#allocation2 + $0x40] sm:$0xff]  ;;  %v68_v25 = vld [vmem:[#allocation2 + $0x48] sm:$0xff] }
  0x2e   :  { %2785 = vmatprep.subr.mxu0 %v134_v5  ;;  %v69_v26 = vld [vmem:[#allocation2 + $0x50] sm:$0xff]  ;;  %v70_v27 = vld [vmem:[#allocation2 + $0x58] sm:$0xff]  ;;  %v71_v28 = vld [vmem:[#allocation2 + $0x60] sm:$0xff] }
  0x2f   :  { %2786 = vmatpush3.msra.mxu0 %v134_v5  ;;  %v72_v29 = vld [vmem:[#allocation2 + $0x68] sm:$0xff]  ;;  %v73_v30 = vld [vmem:[#allocation2 + $0x70] sm:$0xff]  ;;  %v74_v31 = vld [vmem:[#allocation2 + $0x78] sm:$0xff] }
  0x30   :  { %2787 = vmatprep.subr.mxu0 %v133_v6  ;;  %v75_v32 = vld [vmem:[#allocation2 + $0x80] sm:$0xff]  ;;  %v76_v33 = vld [vmem:[#allocation2 + $0x88] sm:$0xff]  ;;  %v77_v34 = vld [vmem:[#allocation2 + $0x90] sm:$0xff] }
  0x31   :  { %2788 = vmatpush3.msra.mxu0 %v133_v6  ;;  %v78_v35 = vld [vmem:[#allocation2 + $0x98] sm:$0xff]  ;;  %v79_v36 = vld [vmem:[#allocation2 + $0xa0] sm:$0xff]  ;;  %v80_v37 = vld [vmem:[#allocation2 + $0xa8] sm:$0xff] }
  0x32   :  { %2789 = vmatprep.subr.mxu0 %v132_v7  ;;  %v81_v38 = vld [vmem:[#allocation2 + $0xb0] sm:$0xff]  ;;  %v82_v39 = vld [vmem:[#allocation2 + $0xb8] sm:$0xff]  ;;  %v83_v40 = vld [vmem:[#allocation2 + $0xc0] sm:$0xff] }
  0x33   :  { %2790 = vmatpush3.msra.mxu0 %v132_v7  ;;  %v84_v41 = vld [vmem:[#allocation2 + $0xc8] sm:$0xff]  ;;  %v85_v42 = vld [vmem:[#allocation2 + $0xd0] sm:$0xff]  ;;  %v86_v43 = vld [vmem:[#allocation2 + $0xd8] sm:$0xff] }
  0x34   :  { %2791 = vmatprep.subr.mxu0 %v131_v8  ;;  %v87_v44 = vld [vmem:[#allocation2 + $0xe0] sm:$0xff]  ;;  %v88_v45 = vld [vmem:[#allocation2 + $0xe8] sm:$0xff]  ;;  %v89_v46 = vld [vmem:[#allocation2 + $0xf0] sm:$0xff] }
  0x35   :  { %2792 = vmatpush3.msra.mxu0 %v131_v8  ;;  %v90_v47 = vld [vmem:[#allocation2 + $0xf8] sm:$0xff]  ;;  %v91_v48 = vld [vmem:[#allocation2 + $0x100] sm:$0xff]  ;;  %v92_v49 = vld [vmem:[#allocation2 + $0x108] sm:$0xff] }
  0x36   :  { %2793 = vmatprep.subr.mxu0 %v130_v9  ;;  %v93_v50 = vld [vmem:[#allocation2 + $0x110] sm:$0xff]  ;;  %v94_v51 = vld [vmem:[#allocation2 + $0x118] sm:$0xff]  ;;  %v95_v52 = vld [vmem:[#allocation2 + $0x120] sm:$0xff] }
  0x37   :  { %2794 = vmatpush3.msra.mxu0 %v130_v9  ;;  %v96_v53 = vld [vmem:[#allocation2 + $0x128] sm:$0xff]  ;;  %v97_v54 = vld [vmem:[#allocation2 + $0x130] sm:$0xff]  ;;  %v98_v55 = vld [vmem:[#allocation2 + $0x138] sm:$0xff] }
  0x38   :  { %2795 = vmatprep.subr.mxu0 %v129_v10  ;;  %v99_v56 = vld [vmem:[#allocation2 + $0x140] sm:$0xff]  ;;  %v100_v57 = vld [vmem:[#allocation2 + $0x148] sm:$0xff]  ;;  %v101_v58 = vld [vmem:[#allocation2 + $0x150] sm:$0xff] }
  0x39   :  { %2796 = vmatpush3.msra.mxu0 %v129_v10  ;;  %v102_v59 = vld [vmem:[#allocation2 + $0x158] sm:$0xff]  ;;  %v103_v60 = vld [vmem:[#allocation2 + $0x160] sm:$0xff]  ;;  %v104_v61 = vld [vmem:[#allocation2 + $0x168] sm:$0xff] }
  0x3a   :  { %2797 = vmatprep.subr.mxu0 %v128_v11  ;;  %v105_v62 = vld [vmem:[#allocation2 + $0x170] sm:$0xff]  ;;  %v106_v63 = vld [vmem:[#allocation2 + $0x178] sm:$0xff]  ;;  %v107_v0 = vld [vmem:[#allocation2 + $0x180] sm:$0xff] }
  0x3b   :  { %2798 = vmatpush3.msra.mxu0 %v128_v11  ;;  %v108_v1 = vld [vmem:[#allocation2 + $0x188] sm:$0xff]  ;;  %v109_v2 = vld [vmem:[#allocation2 + $0x190] sm:$0xff]  ;;  %v110_v3 = vld [vmem:[#allocation2 + $0x198] sm:$0xff] }
  0x3c   :  { %2799 = vmatprep.subr.mxu0 %v127_v12  ;;  %v111_v4 = vld [vmem:[#allocation2 + $0x1a0] sm:$0xff]  ;;  %v112_v5 = vld [vmem:[#allocation2 + $0x1a8] sm:$0xff]  ;;  %v113_v6 = vld [vmem:[#allocation2 + $0x1b0] sm:$0xff] }
  0x3d   :  { %2800 = vmatpush3.msra.mxu0 %v127_v12  ;;  %v114_v7 = vld [vmem:[#allocation2 + $0x1b8] sm:$0xff]  ;;  %v115_v8 = vld [vmem:[#allocation2 + $0x1c0] sm:$0xff]  ;;  %v116_v9 = vld [vmem:[#allocation2 + $0x1c8] sm:$0xff] }
  0x3e   :  { %2801 = vmatprep.subr.mxu0 %v126_v13  ;;  %v117_v10 = vld [vmem:[#allocation2 + $0x1d0] sm:$0xff]  ;;  %v118_v11 = vld [vmem:[#allocation2 + $0x1d8] sm:$0xff]  ;;  %v119_v12 = vld [vmem:[#allocation2 + $0x1e0] sm:$0xff] }
  0x3f   :  { %2802 = vmatpush3.msra.mxu0 %v126_v13  ;;  %v120_v13 = vld [vmem:[#allocation2 + $0x1e8] sm:$0xff] }
  0x40   :  { %2803 = vmatprep.subr.mxu0 %v125_v14 }
  0x41   :  { %2804 = vmatpush3.msra.mxu0 %v125_v14  ;;  %v121_v14 = vld [vmem:[#allocation2 + $0x1f0] sm:$0xff] }
  0x42   :  { %2805 = vmatprep.subr.mxu0 %v124_v15 }
  0x43   :  { %2806 = vmatpush3.msra.mxu0 %v124_v15  ;;  %v122_v15 = vld [vmem:[#allocation2 + $0x1f8] sm:$0xff] }
  0x44   :  { %2807 = vmatprep.subr.mxu0 %v123_v16 }
  0x45   :  { %2808 = vmatpush3.msra.mxu0 %v123_v16 }
  0x46   :  { %2810 = vmatmul.mubr.f32.vlgmr.msra.gmra.mxu0 %v60_v17  ;;  %v3179_v17 = vld [vmem:[%s4550_s3] ss:$0 sm:$0xff]  ;;  %s3132_s3 = smov [#allocation8]  }
  0x47   :  { %2812 = vmatprep.mubr.f32.mxu0 %v61_v18  ;;  %s2475_s5 = sshll.u32 %s3132_s3, 4  ;;  %s2476_s5 = int_to_ptr.vmem [resolvable:$true] %s2475_s5 }
  0x48   :  { %s3100_s6 = scalar_lea.vmem %s2476_s5, 8192  ;;  %p3105_p2 = scmp.lt.s32.totalorder %s2476_s5, %s2476_s5 }
  0x49   :  { %p3101_p1 = scmp.ne.s32.totalorder %s2476_s5, %s3100_s6  ;;  %p3106_p3 = scmp.lt.s32.totalorder %s3100_s6, %s3100_s6 }
  0x4a   :  { %2813 = vmatmul.mubr.f32.gmra.mxu0 %v62_v19 }
  0x4b   :  { %2815 = vmatprep.mubr.f32.mxu0 %v63_v20  ;;  %p3107_p4 = por %p3106_p3, %p3105_p2 }
  0x4d   :  { %p3108_p5 = pnand %p3107_p4, %p3101_p1 }
  0x4e   :  { %2816 = vmatmul.mubr.f32.gmra.mxu0 %v64_v21 }
  0x4f   :  { %2818 = vmatprep.mubr.f32.mxu0 %v65_v22 }
  0x52   :  { %2819 = vmatmul.mubr.f32.gmra.mxu0 %v66_v23 }
  0x53   :  { %2821 = vmatprep.mubr.f32.mxu0 %v67_v24 }
  0x56   :  { %2822 = vmatmul.mubr.f32.gmra.mxu0 %v68_v25 }
  0x57   :  { %2824 = vmatprep.mubr.f32.mxu0 %v69_v26 }
  0x5a   :  { %2825 = vmatmul.mubr.f32.gmra.mxu0 %v70_v27 }
  0x5b   :  { %2827 = vmatprep.mubr.f32.mxu0 %v71_v28 }
  0x5e   :  { %2828 = vmatmul.mubr.f32.gmra.mxu0 %v72_v29 }
  0x5f   :  { %2830 = vmatprep.mubr.f32.mxu0 %v73_v30 }
  0x62   :  { %2831 = vmatmul.mubr.f32.gmra.mxu0 %v74_v31 }
  0x63   :  { %2833 = vmatprep.mubr.f32.mxu0 %v75_v32 }
  0x66   :  { %2834 = vmatmul.mubr.f32.gmra.mxu0 %v76_v33 }
  0x67   :  { %2836 = vmatprep.mubr.f32.mxu0 %v77_v34 }
  0x6a   :  { %2837 = vmatmul.mubr.f32.gmra.mxu0 %v78_v35 }
  0x6b   :  { %2839 = vmatprep.mubr.f32.mxu0 %v79_v36 }
  0x6e   :  { %2840 = vmatmul.mubr.f32.gmra.mxu0 %v80_v37 }
  0x6f   :  { %2842 = vmatprep.mubr.f32.mxu0 %v81_v38 }
  0x72   :  { %2843 = vmatmul.mubr.f32.gmra.mxu0 %v82_v39 }
  0x73   :  { %2845 = vmatprep.mubr.f32.mxu0 %v83_v40 }
  0x76   :  { %2846 = vmatmul.mubr.f32.gmra.mxu0 %v84_v41 }
  0x77   :  { %2848 = vmatprep.mubr.f32.mxu0 %v85_v42 }
  0x7a   :  { %2849 = vmatmul.mubr.f32.gmra.mxu0 %v86_v43 }
  0x7b   :  { %2851 = vmatprep.mubr.f32.mxu0 %v87_v44 }
  0x7e   :  { %2852 = vmatmul.mubr.f32.gmra.mxu0 %v88_v45 }
  0x7f   :  { %2854 = vmatprep.mubr.f32.mxu0 %v89_v46 }
  0x82   :  { %2855 = vmatmul.mubr.f32.gmra.mxu0 %v90_v47 }
  0x83   :  { %2857 = vmatprep.mubr.f32.mxu0 %v91_v48 }
  0x86   :  { %2858 = vmatmul.mubr.f32.gmra.mxu0 %v92_v49 }
  0x87   :  { %2860 = vmatprep.mubr.f32.mxu0 %v93_v50 }
  0x8a   :  { %2861 = vmatmul.mubr.f32.gmra.mxu0 %v94_v51 }
  0x8b   :  { %2863 = vmatprep.mubr.f32.mxu0 %v95_v52 }
  0x8e   :  { %2864 = vmatmul.mubr.f32.gmra.mxu0 %v96_v53 }
  0x8f   :  { %2866 = vmatprep.mubr.f32.mxu0 %v97_v54 }
  0x92   :  { %2867 = vmatmul.mubr.f32.gmra.mxu0 %v98_v55 }
  0x93   :  { %2869 = vmatprep.mubr.f32.mxu0 %v99_v56 }
  0x96   :  { %2870 = vmatmul.mubr.f32.gmra.mxu0 %v100_v57 }
  0x97   :  { %2872 = vmatprep.mubr.f32.mxu0 %v101_v58 }
  0x9a   :  { %2873 = vmatmul.mubr.f32.gmra.mxu0 %v102_v59 }
  0x9b   :  { %2875 = vmatprep.mubr.f32.mxu0 %v103_v60 }
  0x9e   :  { %2876 = vmatmul.mubr.f32.gmra.mxu0 %v104_v61 }
  0x9f   :  { %2878 = vmatprep.mubr.f32.mxu0 %v105_v62 }
  0xa2   :  { %2879 = vmatmul.mubr.f32.gmra.mxu0 %v106_v63 }
  0xa3   :  { %2881 = vmatprep.mubr.f32.mxu0 %v107_v0 }
  0xa6   :  { %2882 = vmatmul.mubr.f32.gmra.mxu0 %v108_v1 }
  0xa7   :  { %2884 = vmatprep.mubr.f32.mxu0 %v109_v2 }
  0xaa   :  { %2885 = vmatmul.mubr.f32.gmra.mxu0 %v110_v3 }
  0xab   :  { %2887 = vmatprep.mubr.f32.mxu0 %v111_v4 }
  0xae   :  { %2888 = vmatmul.mubr.f32.gmra.mxu0 %v112_v5 }
  0xaf   :  { %2890 = vmatprep.mubr.f32.mxu0 %v113_v6 }
  0xb2   :  { %2891 = vmatmul.mubr.f32.gmra.mxu0 %v114_v7 }
  0xb3   :  { %2893 = vmatprep.mubr.f32.mxu0 %v115_v8 }
  0xb6   :  { %2894 = vmatmul.mubr.f32.gmra.mxu0 %v116_v9 }
  0xb7   :  { %2896 = vmatprep.mubr.f32.mxu0 %v117_v10 }
  0xba   :  { %2897 = vmatmul.mubr.f32.gmra.mxu0 %v118_v11 }
  0xbb   :  { %2899 = vmatprep.mubr.f32.mxu0 %v119_v12 }
  0xbe   :  { %2900 = vmatmul.mubr.f32.gmra.mxu0 %v120_v13 }
  0xbf   :  { %2902 = vmatprep.mubr.f32.mxu0 %v121_v14 }
  0xc2   :  { %2903 = vmatmul.mubr.f32.gmra.mxu0 %v122_v15 }
 0x106   :  { %v2811_v16 = vpop.f32.mrf.mxu0 }
 0x107   :  { %v526_v18 = vmul.f32 2.0, %v2811_v16 }
 0x108   :  { %v205_v19 = vpop.f32.mrf.mxu0 }
 0x109   :  { %v525_v20 = vmul.f32 2.0, %v205_v19  ;;  %v3182_v21 = vsub.f32 %v3179_v17, %v526_v18 }
 0x10a   :  { %v2814_v22 = vpop.f32.mrf.mxu0 }
 0x10b   :  { %v528_v23 = vmul.f32 2.0, %v2814_v22  ;;  %661 = vmin.xlane.f32.xlu0 %v3182_v21  ;;  %v3186_v26 = vsub.f32 %v3179_v17, %v525_v20 }
 0x10c   :  { %v215_v24 = vpop.f32.mrf.mxu0 }
 0x10d   :  { %v527_v25 = vmul.f32 2.0, %v215_v24  ;;  %v3189_v27 = vsub.f32 %v3179_v17, %v528_v23 }
 0x10e   :  { %v2817_v28 = vpop.f32.mrf.mxu0 }
 0x10f   :  { %v530_v29 = vmul.f32 2.0, %v2817_v28  ;;  %659 = vmin.xlane.f32.xlu0 %v3186_v26  ;;  %665 = vmin.xlane.f32.xlu1 %v3189_v27  ;;  %v3194_v30 = vsub.f32 %v3179_v17, %v527_v25 }
 0x110   :  { %v225_v31 = vpop.f32.mrf.mxu0 }
 0x111   :  { %v529_v32 = vmul.f32 2.0, %v225_v31  ;;  %v3201_v36 = vsub.f32 %v3179_v17, %v530_v29 }
 0x112   :  { %v2820_v33 = vpop.f32.mrf.mxu0 }
 0x113   :  { %v532_v34 = vmul.f32 2.0, %v2820_v33  ;;  %663 = vmin.xlane.f32.xlu1 %v3194_v30  ;;  %v3198_v35 = vsub.f32 %v3179_v17, %v529_v32 }
 0x114   :  { %v235_v37 = vpop.f32.mrf.mxu0 }
 0x115   :  { %v531_v38 = vmul.f32 2.0, %v235_v37  ;;  %667 = vmin.xlane.f32.xlu0 %v3198_v35  ;;  %v3209_v42 = vsub.f32 %v3179_v17, %v532_v34 }
 0x116   :  { %v2823_v39 = vpop.f32.mrf.mxu0 }
 0x117   :  { %v534_v40 = vmul.f32 2.0, %v2823_v39  ;;  %669 = vmin.xlane.f32.xlu1 %v3201_v36  ;;  %v3206_v41 = vsub.f32 %v3179_v17, %v531_v38 }
 0x118   :  { %v245_v43 = vpop.f32.mrf.mxu0 }
 0x119   :  { %v533_v44 = vmul.f32 2.0, %v245_v43  ;;  %671 = vmin.xlane.f32.xlu0 %v3206_v41  ;;  %v3217_v48 = vsub.f32 %v3179_v17, %v534_v40 }
 0x11a   :  { %v2826_v45 = vpop.f32.mrf.mxu0 }
 0x11b   :  { %v536_v46 = vmul.f32 2.0, %v2826_v45  ;;  %673 = vmin.xlane.f32.xlu1 %v3209_v42  ;;  %v3214_v47 = vsub.f32 %v3179_v17, %v533_v44 }
 0x11c   :  { %v255_v49 = vpop.f32.mrf.mxu0 }
 0x11d   :  { %v535_v50 = vmul.f32 2.0, %v255_v49  ;;  %675 = vmin.xlane.f32.xlu0 %v3214_v47  ;;  %v3225_v54 = vsub.f32 %v3179_v17, %v536_v46 }
 0x11e   :  { %v2829_v51 = vpop.f32.mrf.mxu0 }
 0x11f   :  { %v538_v52 = vmul.f32 2.0, %v2829_v51  ;;  %677 = vmin.xlane.f32.xlu1 %v3217_v48  ;;  %v3222_v53 = vsub.f32 %v3179_v17, %v535_v50 }
 0x120   :  { %v265_v55 = vpop.f32.mrf.mxu0 }
 0x121   :  { %v537_v56 = vmul.f32 2.0, %v265_v55  ;;  %679 = vmin.xlane.f32.xlu0 %v3222_v53  ;;  %v3233_v60 = vsub.f32 %v3179_v17, %v538_v52 }
 0x122   :  { %v2832_v57 = vpop.f32.mrf.mxu0 }
 0x123   :  { %v540_v58 = vmul.f32 2.0, %v2832_v57  ;;  %681 = vmin.xlane.f32.xlu1 %v3225_v54  ;;  %v3230_v59 = vsub.f32 %v3179_v17, %v537_v56 }
 0x124   :  { %v275_v61 = vpop.f32.mrf.mxu0 }
 0x125   :  { %v539_v62 = vmul.f32 2.0, %v275_v61  ;;  %683 = vmin.xlane.f32.xlu0 %v3230_v59  ;;  %v3241_v2 = vsub.f32 %v3179_v17, %v540_v58 }
 0x126   :  { %v2835_v63 = vpop.f32.mrf.mxu0 }
 0x127   :  { %v542_v0 = vmul.f32 2.0, %v2835_v63  ;;  %685 = vmin.xlane.f32.xlu1 %v3233_v60  ;;  %v3238_v1 = vsub.f32 %v3179_v17, %v539_v62 }
 0x128   :  { %v285_v3 = vpop.f32.mrf.mxu0 }
 0x129   :  { %v541_v4 = vmul.f32 2.0, %v285_v3  ;;  %687 = vmin.xlane.f32.xlu0 %v3238_v1  ;;  %v3249_v8 = vsub.f32 %v3179_v17, %v542_v0 }
 0x12a   :  { %v2838_v5 = vpop.f32.mrf.mxu0 }
 0x12b   :  { %v544_v6 = vmul.f32 2.0, %v2838_v5  ;;  %689 = vmin.xlane.f32.xlu1 %v3241_v2  ;;  %v3246_v7 = vsub.f32 %v3179_v17, %v541_v4 }
 0x12c   :  { %v295_v9 = vpop.f32.mrf.mxu0 }
 0x12d   :  { %v543_v10 = vmul.f32 2.0, %v295_v9  ;;  %691 = vmin.xlane.f32.xlu0 %v3246_v7  ;;  %v3257_v14 = vsub.f32 %v3179_v17, %v544_v6 }
 0x12e   :  { %v2841_v11 = vpop.f32.mrf.mxu0 }
 0x12f   :  { %v546_v12 = vmul.f32 2.0, %v2841_v11  ;;  %693 = vmin.xlane.f32.xlu1 %v3249_v8  ;;  %v3254_v13 = vsub.f32 %v3179_v17, %v543_v10 }
 0x130   :  { %v305_v15 = vpop.f32.mrf.mxu0 }
 0x131   :  { %v545_v16 = vmul.f32 2.0, %v305_v15  ;;  %695 = vmin.xlane.f32.xlu0 %v3254_v13  ;;  %v3265_v22 = vsub.f32 %v3179_v17, %v546_v12 }
 0x132   :  { %v2844_v18 = vpop.f32.mrf.mxu0 }
 0x133   :  { %v548_v19 = vmul.f32 2.0, %v2844_v18  ;;  %697 = vmin.xlane.f32.xlu1 %v3257_v14  ;;  %v3262_v20 = vsub.f32 %v3179_v17, %v545_v16 }
 0x134   :  { %v315_v23 = vpop.f32.mrf.mxu0 }
 0x135   :  { %v547_v24 = vmul.f32 2.0, %v315_v23  ;;  %699 = vmin.xlane.f32.xlu0 %v3262_v20  ;;  %v3273_v31 = vsub.f32 %v3179_v17, %v548_v19 }
 0x136   :  { %v2847_v25 = vpop.f32.mrf.mxu0 }
 0x137   :  { %v550_v28 = vmul.f32 2.0, %v2847_v25  ;;  %701 = vmin.xlane.f32.xlu1 %v3265_v22  ;;  %v3270_v29 = vsub.f32 %v3179_v17, %v547_v24 }
 0x138   :  { %v325_v32 = vpop.f32.mrf.mxu0 }
 0x139   :  { %v549_v33 = vmul.f32 2.0, %v325_v32  ;;  %703 = vmin.xlane.f32.xlu0 %v3270_v29  ;;  %v3281_v39 = vsub.f32 %v3179_v17, %v550_v28 }
 0x13a   :  { %v2850_v34 = vpop.f32.mrf.mxu0 }
 0x13b   :  { %v552_v37 = vmul.f32 2.0, %v2850_v34  ;;  %705 = vmin.xlane.f32.xlu1 %v3273_v31  ;;  %v3278_v38 = vsub.f32 %v3179_v17, %v549_v33 }
 0x13c   :  { %v335_v40 = vpop.f32.mrf.mxu0 }
 0x13d   :  { %v551_v43 = vmul.f32 2.0, %v335_v40  ;;  %707 = vmin.xlane.f32.xlu0 %v3278_v38  ;;  %v3289_v49 = vsub.f32 %v3179_v17, %v552_v37 }
 0x13e   :  { %v2853_v44 = vpop.f32.mrf.mxu0 }
 0x13f   :  { %v554_v45 = vmul.f32 2.0, %v2853_v44  ;;  %709 = vmin.xlane.f32.xlu1 %v3281_v39  ;;  %v3286_v46 = vsub.f32 %v3179_v17, %v551_v43 }
 0x140   :  { %v345_v50 = vpop.f32.mrf.mxu0 }
 0x141   :  { %v553_v51 = vmul.f32 2.0, %v345_v50  ;;  %711 = vmin.xlane.f32.xlu0 %v3286_v46  ;;  %v3297_v57 = vsub.f32 %v3179_v17, %v554_v45 }
 0x142   :  { %v2856_v52 = vpop.f32.mrf.mxu0 }
 0x143   :  { %v556_v55 = vmul.f32 2.0, %v2856_v52  ;;  %713 = vmin.xlane.f32.xlu1 %v3289_v49  ;;  %v3294_v56 = vsub.f32 %v3179_v17, %v553_v51 }
 0x144   :  { %v355_v58 = vpop.f32.mrf.mxu0 }
 0x145   :  { %v555_v61 = vmul.f32 2.0, %v355_v58  ;;  %715 = vmin.xlane.f32.xlu0 %v3294_v56  ;;  %v3305_v3 = vsub.f32 %v3179_v17, %v556_v55 }
 0x146   :  { %v2859_v62 = vpop.f32.mrf.mxu0 }
 0x147   :  { %v558_v63 = vmul.f32 2.0, %v2859_v62  ;;  %717 = vmin.xlane.f32.xlu1 %v3297_v57  ;;  %v3302_v0 = vsub.f32 %v3179_v17, %v555_v61 }
 0x148   :  { %v365_v4 = vpop.f32.mrf.mxu0 }
 0x149   :  { %v557_v5 = vmul.f32 2.0, %v365_v4  ;;  %719 = vmin.xlane.f32.xlu0 %v3302_v0  ;;  %v3313_v11 = vsub.f32 %v3179_v17, %v558_v63 }
 0x14a   :  { %v2862_v6 = vpop.f32.mrf.mxu0 }
 0x14b   :  { %v560_v9 = vmul.f32 2.0, %v2862_v6  ;;  %721 = vmin.xlane.f32.xlu1 %v3305_v3  ;;  %v3310_v10 = vsub.f32 %v3179_v17, %v557_v5 }
 0x14c   :  { %v375_v12 = vpop.f32.mrf.mxu0 }
 0x14d   :  { %v559_v15 = vmul.f32 2.0, %v375_v12  ;;  %723 = vmin.xlane.f32.xlu0 %v3310_v10  ;;  %v3321_v23 = vsub.f32 %v3179_v17, %v560_v9 }
 0x14e   :  { %v2865_v16 = vpop.f32.mrf.mxu0 }
 0x14f   :  { %v562_v18 = vmul.f32 2.0, %v2865_v16  ;;  %725 = vmin.xlane.f32.xlu1 %v3313_v11  ;;  %v3318_v19 = vsub.f32 %v3179_v17, %v559_v15 }
 0x150   :  { %v385_v24 = vpop.f32.mrf.mxu0 }
 0x151   :  { %v561_v25 = vmul.f32 2.0, %v385_v24  ;;  %727 = vmin.xlane.f32.xlu0 %v3318_v19  ;;  %v3329_v34 = vsub.f32 %v3179_v17, %v562_v18 }
 0x152   :  { %v2868_v28 = vpop.f32.mrf.mxu0 }
 0x153   :  { %729 = vmin.xlane.f32.xlu1 %v3321_v23  ;;  %v564_v32 = vmul.f32 2.0, %v2868_v28  ;;  %v3326_v33 = vsub.f32 %v3179_v17, %v561_v25 }
 0x154   :  { %v395_v37 = vpop.f32.mrf.mxu0 }
 0x155   :  { %731 = vmin.xlane.f32.xlu0 %v3326_v33  ;;  %v563_v40 = vmul.f32 2.0, %v395_v37  ;;  %v3333_v43 = vsub.f32 %v3179_v17, %v564_v32 }
 0x156   :  { %v2871_v44 = vpop.f32.mrf.mxu0 }
 0x157   :  { %733 = vmin.xlane.f32.xlu1 %v3329_v34  ;;  %v566_v45 = vmul.f32 2.0, %v2871_v44  ;;  %v3338_v50 = vsub.f32 %v3179_v17, %v563_v40 }
 0x158   :  { %v405_v51 = vpop.f32.mrf.mxu0 }
 0x159   :  { %737 = vmin.xlane.f32.xlu0 %v3333_v43  ;;  %v565_v52 = vmul.f32 2.0, %v405_v51  ;;  %v3342_v55 = vsub.f32 %v3179_v17, %v566_v45 }
 0x15a   :  { %v2874_v58 = vpop.f32.mrf.mxu0 }
 0x15b   :  { %v568_v61 = vmul.f32 2.0, %v2874_v58  ;;  %v3346_v62 = vsub.f32 %v3179_v17, %v565_v52 }
 0x15c   :  { %v415_v63 = vpop.f32.mrf.mxu0 }
 0x15d   :  { %735 = vmin.xlane.f32.xlu0 %v3338_v50  ;;  %v567_v4 = vmul.f32 2.0, %v415_v63  ;;  %v3350_v5 = vsub.f32 %v3179_v17, %v568_v61 }
 0x15e   :  { %v2877_v6 = vpop.f32.mrf.mxu0 }
 0x15f   :  { %v570_v9 = vmul.f32 2.0, %v2877_v6  ;;  %v3354_v12 = vsub.f32 %v3179_v17, %v567_v4 }
 0x160   :  { %v425_v15 = vpop.f32.mrf.mxu0 }
 0x161   :  { %741 = vmin.xlane.f32.xlu0 %v3342_v55  ;;  %v569_v16 = vmul.f32 2.0, %v425_v15  ;;  %v3358_v18 = vsub.f32 %v3179_v17, %v570_v9 }
 0x162   :  { %v2880_v24 = vpop.f32.mrf.mxu0 }
 0x163   :  { %v572_v25 = vmul.f32 2.0, %v2880_v24  ;;  %v3362_v28 = vsub.f32 %v3179_v17, %v569_v16 }
 0x164   :  { %v435_v32 = vpop.f32.mrf.mxu0 }
 0x165   :  { %739 = vmin.xlane.f32.xlu0 %v3346_v62  ;;  %4654 = vst [vmem:[#allocation12_spill] sm:$0xff] %v3362_v28  ;;  %v571_v37 = vmul.f32 2.0, %v435_v32  ;;  %v3366_v40 = vsub.f32 %v3179_v17, %v572_v25 }
 0x166   :  { %v2883_v44 = vpop.f32.mrf.mxu0 }
 0x167   :  { %4655 = vst [vmem:[#allocation13_spill] sm:$0xff] %v3366_v40  ;;  %v574_v45 = vmul.f32 2.0, %v2883_v44  ;;  %v3370_v51 = vsub.f32 %v3179_v17, %v571_v37 }
 0x168   :  { %v445_v52 = vpop.f32.mrf.mxu0 }
 0x169   :  { %745 = vmin.xlane.f32.xlu0 %v3350_v5  ;;  %4656 = vst [vmem:[#allocation14_spill] sm:$0xff] %v3370_v51  ;;  %v573_v58 = vmul.f32 2.0, %v445_v52  ;;  %v3374_v61 = vsub.f32 %v3179_v17, %v574_v45  ;;  %v787_v52 = vlaneseq }
 0x16a   :  { %v2886_v63 = vpop.f32.mrf.mxu0 }
 0x16b   :  { %4657 = vst [vmem:[#allocation15_spill] sm:$0xff] %v3374_v61  ;;  %v576_v4 = vmul.f32 2.0, %v2886_v63  ;;  %v3378_v6 = vsub.f32 %v3179_v17, %v573_v58 }
 0x16c   :  { %v455_v9 = vpop.f32.mrf.mxu0 }
 0x16d   :  { %743 = vmin.xlane.f32.xlu0 %v3354_v12  ;;  %4658 = vst [vmem:[#allocation16_spill] sm:$0xff] %v3378_v6  ;;  %v575_v15 = vmul.f32 2.0, %v455_v9  ;;  %v3382_v16 = vsub.f32 %v3179_v17, %v576_v4  ;;  %v3396_v9 = vand.u32 127, %v787_v52 }
 0x16e   :  { %v2889_v24 = vpop.f32.mrf.mxu0 }
 0x16f   :  { %4659 = vst [vmem:[#allocation17_spill] sm:$0xff] %v3382_v16  ;;  %v578_v25 = vmul.f32 2.0, %v2889_v24  ;;  %v3386_v32 = vsub.f32 %v3179_v17, %v575_v15 }
 0x170   :  { %v465_v37 = vpop.f32.mrf.mxu0 }
 0x171   :  { %749 = vmin.xlane.f32.xlu0 %v3358_v18  ;;  %4660 = vst [vmem:[#allocation18_spill] sm:$0xff] %v3386_v32  ;;  %v577_v44 = vmul.f32 2.0, %v465_v37  ;;  %v3390_v45 = vsub.f32 %v3179_v17, %v578_v25 }
 0x172   :  { %v2892_v58 = vpop.f32.mrf.mxu0 }
 0x173   :  { %4661 = vst [vmem:[#allocation19_spill] sm:$0xff] %v3390_v45  ;;  %v580_v63 = vmul.f32 2.0, %v2892_v58  ;;  %v3394_v4 = vsub.f32 %v3179_v17, %v577_v44 }
 0x174   :  { %v475_v24 = vpop.f32.mrf.mxu0 }
 0x175   :  { %747 = vmin.xlane.f32.xlu0 %v3362_v28  ;;  %4662 = vst [vmem:[#allocation20_spill] sm:$0xff] %v3394_v4  ;;  %v579_v37 = vmul.f32 2.0, %v475_v24  ;;  %v3401_v25 = vsub.f32 %v3179_v17, %v580_v63 }
 0x177   :  { %4663 = vst [vmem:[#allocation21_spill] sm:$0xff] %v3401_v25  ;;  %v3413_v63 = vsub.f32 %v3179_v17, %v579_v37 }
 0x179   :  { %753 = vmin.xlane.f32.xlu0 %v3366_v40  ;;  %4664 = vst [vmem:[#allocation22_spill] sm:$0xff] %v3413_v63 }
 0x17d   :  { %751 = vmin.xlane.f32.xlu0 %v3370_v51 }
 0x181   :  { %757 = vmin.xlane.f32.xlu0 %v3374_v61 }
 0x185   :  { %755 = vmin.xlane.f32.xlu0 %v3378_v6 }
 0x189   :  { %761 = vmin.xlane.f32.xlu0 %v3382_v16 }
 0x18d   :  { %759 = vmin.xlane.f32.xlu0 %v3386_v32  ;;  %v2895_v32 = vpop.f32.mrf.mxu0 }
 0x18e   :  { %v582_v52 = vmul.f32 2.0, %v2895_v32 }
 0x18f   :  { %v485_v24 = vpop.f32.mrf.mxu0 }
 0x190   :  { %v3428_v37 = vsub.f32 %v3179_v17, %v582_v52 }
 0x191   :  { %765 = vmin.xlane.f32.xlu0 %v3390_v45 }
 0x192   :  { %4665 = vst [vmem:[#allocation23_spill] sm:$0xff] %v3428_v37 }
 0x194   :  { %v662_v15 = vpop.xlane.xlu0 %661 }
 0x195   :  { %vm790_vm0 = vcmp.eq.f32.partialorder %v3182_v21, %v662_v15  ;;  %763 = vmin.xlane.f32.xlu0 %v3394_v4 }
 0x196   :  { %v3404_v16 = vsel %vm790_vm0, %v3396_v9, 128 }
 0x197   :  { %v932_v58 = vshra.s32 %v3404_v16, 16 }
 0x198   :  { %v660_v44 = vpop.xlane.xlu0 %659  ;;  %v666_v45 = vpop.xlane.xlu1 %665 }
 0x199   :  { %vm789_vm1 = vcmp.eq.f32.partialorder %v3186_v26, %v660_v44  ;;  %vm792_vm2 = vcmp.eq.f32.partialorder %v3189_v27, %v666_v45  ;;  %769 = vmin.xlane.f32.xlu0 %v3401_v25  ;;  %v3410_v21 = vcvt.s32.f32 %v932_v58  ;;  %v581_v27 = vmul.f32 2.0, %v485_v24  ;;  %v2898_v44 = vpop.f32.mrf.mxu0 }
 0x19a   :  { %v3416_v15 = vsel %vm789_vm1, %v3396_v9, 128  ;;  %v3419_v4 = vsel %vm792_vm2, %v3396_v9, 128  ;;  %v584_v24 = vmul.f32 2.0, %v2898_v44 }
 0x19b   :  { %935 = vmin.xlane.f32.xlu1 %v3410_v21  ;;  %v918_v26 = vshra.s32 %v3416_v15, 16  ;;  %v960_v58 = vshra.s32 %v3419_v4, 16  ;;  %v3440_v52 = vsub.f32 %v3179_v17, %v581_v27  ;;  %v495_v51 = vpop.f32.mrf.mxu0 }
 0x19c   :  { %v664_v32 = vpop.xlane.xlu1 %663  ;;  %v3452_v27 = vsub.f32 %v3179_v17, %v584_v24 }
 0x19d   :  { %vm791_vm3 = vcmp.eq.f32.partialorder %v3194_v30, %v664_v32  ;;  %767 = vmin.xlane.f32.xlu0 %v3413_v63  ;;  %v3425_v45 = vcvt.s32.f32 %v918_v26  ;;  %v3437_v30 = vcvt.s32.f32 %v960_v58  ;;  %4666 = vst [vmem:[#allocation24_spill] sm:$0xff] %v3440_v52  ;;  %v2901_v28 = vpop.f32.mrf.mxu0 }
 0x19e   :  { %v3432_v25 = vsel %vm791_vm3, %v3396_v9, 128  ;;  %v668_v6 = vpop.xlane.xlu0 %667  ;;  %4669 = vst [vmem:[#allocation27_spill] sm:$0xff] %v3452_v27 }
 0x19f   :  { %921 = vmin.xlane.f32.xlu1 %v3425_v45  ;;  %v946_v26 = vshra.s32 %v3432_v25, 16  ;;  %vm793_vm5 = vcmp.eq.f32.partialorder %v3198_v35, %v668_v6  ;;  %v586_v6 = vmul.f32 2.0, %v2901_v28 }
 0x1a0   :  { %v670_v61 = vpop.xlane.xlu1 %669 }
 0x1a1   :  { %vm794_vm4 = vcmp.eq.f32.partialorder %v3201_v36, %v670_v61  ;;  %773 = vmin.xlane.f32.xlu0 %v3428_v37  ;;  %v3449_v36 = vcvt.s32.f32 %v946_v26  ;;  %v583_v61 = vmul.f32 2.0, %v495_v51  ;;  %v3456_v37 = vsel %vm793_vm5, %v3396_v9, 128 }
 0x1a2   :  { %v3444_v32 = vsel %vm794_vm4, %v3396_v9, 128  ;;  %v672_v63 = vpop.xlane.xlu0 %671  ;;  %4670 = vst [vmem:[#allocation28_spill] sm:$0xff] %v3456_v37  ;;  %v974_v24 = vshra.s32 %v3456_v37, 16 }
 0x1a3   :  { %4667 = vst [vmem:[#allocation25_spill] sm:$0xff] %v3444_v32  ;;  %963 = vmin.xlane.f32.xlu1 %v3437_v30  ;;  %4668 = vst [vmem:[#allocation26_spill] sm:$0xff] %v3449_v36  ;;  %v988_v58 = vshra.s32 %v3444_v32, 16  ;;  %v3464_v51 = vsub.f32 %v3179_v17, %v583_v61  ;;  %v505_v32 = vpop.f32.mrf.mxu0  ;;  %vm795_vm7 = vcmp.eq.f32.partialorder %v3206_v41, %v672_v63 }
 0x1a4   :  { %v674_v44 = vpop.xlane.xlu1 %673  ;;  %v585_v28 = vmul.f32 2.0, %v505_v32  ;;  %v3476_v61 = vsub.f32 %v3179_v17, %v586_v6 }
 0x1a5   :  { %771 = vmin.xlane.f32.xlu0 %v3440_v52  ;;  %vm796_vm6 = vcmp.eq.f32.partialorder %v3209_v42, %v674_v44  ;;  %v3461_v35 = vcvt.s32.f32 %v988_v58  ;;  %4671 = vst [vmem:[#allocation29_spill] sm:$0xff] %v3464_v51  ;;  %v3473_v44 = vcvt.s32.f32 %v974_v24 }
 0x1a6   :  { %v676_v40 = vpop.xlane.xlu0 %675  ;;  %v3468_v26 = vsel %vm796_vm6, %v3396_v9, 128  ;;  %4673 = vst [vmem:[#allocation31_spill] sm:$0xff] %v3476_v61  ;;  %v3488_v32 = vsub.f32 %v3179_v17, %v585_v28 }
 0x1a7   :  { %949 = vmin.xlane.f32.xlu1 %v3449_v36  ;;  %4672 = vst [vmem:[#allocation30_spill] sm:$0xff] %v3468_v26  ;;  %v1016_v58 = vshra.s32 %v3468_v26, 16  ;;  %v2904_v36 = vpop.f32.mrf.mxu0  ;;  %vm797_vm9 = vcmp.eq.f32.partialorder %v3214_v47, %v676_v40 }
 0x1a8   :  { %v678_v42 = vpop.xlane.xlu1 %677  ;;  %v588_v63 = vmul.f32 2.0, %v2904_v36  ;;  %4675 = vst [vmem:[#allocation33_spill] sm:$0xff] %v3488_v32 }
 0x1a9   :  { %777 = vmin.xlane.f32.xlu0 %v3452_v27  ;;  %v3480_v27 = vsel %vm795_vm7, %v3396_v9, 128  ;;  %vm798_vm8 = vcmp.eq.f32.partialorder %v3217_v48, %v678_v42  ;;  %v3485_v41 = vcvt.s32.f32 %v1016_v58  ;;  %v515_v26 = vpop.f32.mrf.mxu0 }
 0x1aa   :  { %v680_v52 = vpop.xlane.xlu0 %679  ;;  %4674 = vst [vmem:[#allocation32_spill] sm:$0xff] %v3480_v27  ;;  %v1002_v6 = vshra.s32 %v3480_v27, 16  ;;  %v3492_v24 = vsel %vm798_vm8, %v3396_v9, 128  ;;  %v587_v36 = vmul.f32 2.0, %v515_v26  ;;  %v3500_v28 = vsub.f32 %v3179_v17, %v588_v63 }
 0x1ab   :  { %991 = vmin.xlane.f32.xlu1 %v3461_v35  ;;  %v1044_v58 = vshra.s32 %v3492_v24, 16  ;;  %vm799_vm11 = vcmp.eq.f32.partialorder %v3222_v53, %v680_v52 }
 0x1ac   :  { %v682_v48 = vpop.xlane.xlu1 %681  ;;  %v3497_v42 = vcvt.s32.f32 %v1002_v6  ;;  %4676 = vst [vmem:[#allocation34_spill] sm:$0xff] %v3500_v28  ;;  %v3514_v40 = vsub.f32 %v3179_v17, %v587_v36  ;;  %v3529_v17 = vsel %vm799_vm11, %v3396_v9, 128 }
 0x1ad   :  { %775 = vmin.xlane.f32.xlu0 %v3464_v51  ;;  %vm800_vm10 = vcmp.eq.f32.partialorder %v3225_v54, %v682_v48  ;;  %v3511_v47 = vcvt.s32.f32 %v1044_v58  ;;  %4678 = vst [vmem:[#allocation36_spill] sm:$0xff] %v3529_v17  ;;  %v1058_v53 = vshra.s32 %v3529_v17, 16 }
 0x1ae   :  { %v684_v37 = vpop.xlane.xlu0 %683  ;;  %4677 = vst [vmem:[#allocation35_spill] sm:$0xff] %v3514_v40  ;;  %v3518_v63 = vsel %vm800_vm10, %v3396_v9, 128 }
 0x1af   :  { %977 = vmin.xlane.f32.xlu1 %v3473_v44  ;;  %v1072_v58 = vshra.s32 %v3518_v63, 16  ;;  %vm801_vm13 = vcmp.eq.f32.partialorder %v3230_v59, %v684_v37 }
 0x1b0   :  { %v686_v54 = vpop.xlane.xlu1 %685 }
 0x1b1   :  { %781 = vmin.xlane.f32.xlu0 %v3476_v61  ;;  %v3504_v61 = vsel %vm797_vm9, %v3396_v9, 128  ;;  %vm802_vm12 = vcmp.eq.f32.partialorder %v3233_v60, %v686_v54  ;;  %v3549_v54 = vsel %vm801_vm13, %v3396_v9, 128 }
 0x1b2   :  { %v688_v51 = vpop.xlane.xlu0 %687  ;;  %v1030_v26 = vshra.s32 %v3504_v61, 16  ;;  %v3539_v52 = vsel %vm802_vm12, %v3396_v9, 128  ;;  %4682 = vst [vmem:[#allocation40_spill] sm:$0xff] %v3549_v54  ;;  %v1086_v59 = vshra.s32 %v3549_v54, 16 }
 0x1b3   :  { %1019 = vmin.xlane.f32.xlu1 %v3485_v41  ;;  %4680 = vst [vmem:[#allocation38_spill] sm:$0xff] %v3539_v52  ;;  %v1100_v60 = vshra.s32 %v3539_v52, 16  ;;  %vm803_vm15 = vcmp.eq.f32.partialorder %v3238_v1, %v688_v51 }
 0x1b4   :  { %v3525_v48 = vcvt.s32.f32 %v1030_v26  ;;  %v3572_v54 = vsel %vm803_vm15, %v3396_v9, 128 }
 0x1b5   :  { %779 = vmin.xlane.f32.xlu0 %v3488_v32  ;;  %v3545_v32 = vcvt.s32.f32 %v1058_v53  ;;  %v3555_v17 = vcvt.s32.f32 %v1100_v60 }
 0x1b6   :  { %v3506_v27 = vpop.xlane.xlu0 %691 }
 0x1b7   :  { %1005 = vmin.xlane.f32.xlu1 %v3497_v42  ;;  %4681 = vst [vmem:[#allocation39_spill] sm:$0xff] %v3545_v32  ;;  %vm805_vm3 = vcmp.eq.f32.partialorder %v3246_v7, %v3506_v27 }
 0x1b9   :  { %785 = vmin.xlane.f32.xlu0 %v3500_v28  ;;  %v3535_v28 = vcvt.s32.f32 %v1072_v58 }
 0x1ba   :  { %v3520_v6 = vpop.xlane.xlu0 %695 }
 0x1bb   :  { %1047 = vmin.xlane.f32.xlu1 %v3511_v47  ;;  %4679 = vst [vmem:[#allocation37_spill] sm:$0xff] %v3535_v28  ;;  %vm807_vm7 = vcmp.eq.f32.partialorder %v3254_v13, %v3520_v6 }
 0x1bd   :  { %783 = vmin.xlane.f32.xlu0 %v3514_v40  ;;  %v690_v40 = vpop.xlane.xlu1 %689 }
 0x1be   :  { %v3531_v36 = vpop.xlane.xlu0 %699  ;;  %vm804_vm14 = vcmp.eq.f32.partialorder %v3241_v2, %v690_v40  ;;  %v3567_v2 = vcvt.s32.f32 %v1086_v59 }
 0x1bf   :  { %1033 = vmin.xlane.f32.xlu1 %v3525_v48  ;;  %v3559_v37 = vsel %vm804_vm14, %v3396_v9, 128  ;;  %vm809_vm10 = vcmp.eq.f32.partialorder %v3262_v20, %v3531_v36 }
 0x1c0   :  { %v1128_v60 = vshra.s32 %v3559_v37, 16 }
 0x1c1   :  { %v694_v52 = vpop.xlane.xlu1 %693 }
 0x1c2   :  { %v3541_v26 = vpop.xlane.xlu0 %703  ;;  %vm806_vm1 = vcmp.eq.f32.partialorder %v3249_v8, %v694_v52  ;;  %v3583_v51 = vcvt.s32.f32 %v1128_v60 }
 0x1c3   :  { %1075 = vmin.xlane.f32.xlu1 %v3535_v28  ;;  %vm811_vm12 = vcmp.eq.f32.partialorder %v3270_v29, %v3541_v26 }
 0x1c5   :  { %v698_v8 = vpop.xlane.xlu1 %697 }
 0x1c6   :  { %v3551_v58 = vpop.xlane.xlu0 %707  ;;  %vm808_vm5 = vcmp.eq.f32.partialorder %v3257_v14, %v698_v8 }
 0x1c7   :  { %1061 = vmin.xlane.f32.xlu1 %v3545_v32  ;;  %v3621_v14 = vsel %vm808_vm5, %v3396_v9, 128  ;;  %vm813_vm14 = vcmp.eq.f32.partialorder %v3278_v38, %v3551_v58 }
 0x1c9   :  { %v702_v27 = vpop.xlane.xlu1 %701 }
 0x1ca   :  { %v712_v53 = vpop.xlane.xlu0 %711  ;;  %vm810_vm9 = vcmp.eq.f32.partialorder %v3265_v22, %v702_v27 }
 0x1cb   :  { %vm815_vm0 = vcmp.eq.f32.partialorder %v3286_v46, %v712_v53  ;;  %1103 = vmin.xlane.f32.xlu1 %v3555_v17  ;;  %v1114_v53 = vshra.s32 %v3572_v54, 16 }
 0x1cc   :  { %v3565_v28 = vsel %vm815_vm0, %v3396_v9, 128 }
 0x1cd   :  { %4683 = vst [vmem:[#allocation41_spill] sm:$0xff] %v3565_v28  ;;  %v1282_v40 = vshra.s32 %v3565_v28, 16  ;;  %v3588_v28 = vsel %vm806_vm1, %v3396_v9, 128  ;;  %v706_v13 = vpop.xlane.xlu1 %705 }
 0x1ce   :  { %v716_v32 = vpop.xlane.xlu0 %715  ;;  %vm812_vm11 = vcmp.eq.f32.partialorder %v3273_v31, %v706_v13  ;;  %v3683_v13 = vsel %vm811_vm12, %v3396_v9, 128 }
 0x1cf   :  { %vm817_vm2 = vcmp.eq.f32.partialorder %v3294_v56, %v716_v32  ;;  %1089 = vmin.xlane.f32.xlu1 %v3567_v2  ;;  %v3577_v1 = vcvt.s32.f32 %v1282_v40  ;;  %v3600_v40 = vcvt.s32.f32 %v1114_v53  ;;  %v3672_v36 = vsel %vm812_vm11, %v3396_v9, 128  ;;  %4698 = vst [vmem:[#allocation56_spill] sm:$0xff] %v3683_v13 }
 0x1d0   :  { %v3580_v46 = vsel %vm817_vm2, %v3396_v9, 128  ;;  %4696 = vst [vmem:[#allocation54_spill] sm:$0xff] %v3672_v36  ;;  %v1240_v31 = vshra.s32 %v3672_v36, 16  ;;  %v1226_v29 = vshra.s32 %v3683_v13, 16 }
 0x1d1   :  { %4684 = vst [vmem:[#allocation42_spill] sm:$0xff] %v3577_v1  ;;  %4685 = vst [vmem:[#allocation43_spill] sm:$0xff] %v3580_v46  ;;  %1285 = vmin.xlane.f32.xlu0 %v3577_v1  ;;  %v1310_v59 = vshra.s32 %v3580_v46, 16  ;;  %v1156_v46 = vshra.s32 %v3588_v28, 16  ;;  %v3605_v1 = vsel %vm805_vm3, %v3396_v9, 128  ;;  %v710_v22 = vpop.xlane.xlu1 %709 }
 0x1d2   :  { %v720_v56 = vpop.xlane.xlu0 %719  ;;  %vm814_vm13 = vcmp.eq.f32.partialorder %v3281_v39, %v710_v22  ;;  %v3700_v36 = vcvt.s32.f32 %v1226_v29  ;;  %v3704_v22 = vsel %vm813_vm14, %v3396_v9, 128 }
 0x1d3   :  { %vm819_vm4 = vcmp.eq.f32.partialorder %v3302_v0, %v720_v56  ;;  %1131 = vmin.xlane.f32.xlu1 %v3583_v51  ;;  %v3594_v32 = vcvt.s32.f32 %v1310_v59  ;;  %v3616_v53 = vcvt.s32.f32 %v1156_v46  ;;  %v3693_v26 = vsel %vm814_vm13, %v3396_v9, 128 }
 0x1d4   :  { %v3597_v52 = vsel %vm819_vm4, %v3396_v9, 128  ;;  %4699 = vst [vmem:[#allocation57_spill] sm:$0xff] %v3693_v26  ;;  %4700 = vst [vmem:[#allocation58_spill] sm:$0xff] %v3700_v36  ;;  %v1268_v39 = vshra.s32 %v3693_v26, 16  ;;  %v1254_v38 = vshra.s32 %v3704_v22, 16 }
 0x1d5   :  { %4686 = vst [vmem:[#allocation44_spill] sm:$0xff] %v3594_v32  ;;  %4687 = vst [vmem:[#allocation45_spill] sm:$0xff] %v3597_v52  ;;  %1313 = vmin.xlane.f32.xlu0 %v3594_v32  ;;  %v1338_v60 = vshra.s32 %v3597_v52, 16  ;;  %v1142_v52 = vshra.s32 %v3605_v1, 16 }
 0x1d6   :  { %v724_v7 = vpop.xlane.xlu0 %723  ;;  %v3718_v26 = vcvt.s32.f32 %v1254_v38 }
 0x1d7   :  { %vm821_vm6 = vcmp.eq.f32.partialorder %v3310_v10, %v724_v7  ;;  %1117 = vmin.xlane.f32.xlu1 %v3600_v40  ;;  %v3610_v0 = vcvt.s32.f32 %v1338_v60  ;;  %v3634_v7 = vcvt.s32.f32 %v1142_v52 }
 0x1d8   :  { %v3613_v59 = vsel %vm821_vm6, %v3396_v9, 128 }
 0x1d9   :  { %4688 = vst [vmem:[#allocation46_spill] sm:$0xff] %v3610_v0  ;;  %4689 = vst [vmem:[#allocation47_spill] sm:$0xff] %v3613_v59  ;;  %1341 = vmin.xlane.f32.xlu0 %v3610_v0  ;;  %v1366_v56 = vshra.s32 %v3613_v59, 16  ;;  %v1184_v59 = vshra.s32 %v3621_v14, 16  ;;  %v3638_v0 = vsel %vm807_vm7, %v3396_v9, 128 }
 0x1da   :  { %v728_v10 = vpop.xlane.xlu0 %727  ;;  %v1170_v52 = vshra.s32 %v3638_v0, 16 }
 0x1db   :  { %vm823_vm8 = vcmp.eq.f32.partialorder %v3318_v19, %v728_v10  ;;  %1159 = vmin.xlane.f32.xlu1 %v3616_v53  ;;  %v3627_v8 = vcvt.s32.f32 %v1366_v56  ;;  %v3647_v56 = vcvt.s32.f32 %v1184_v59  ;;  %v3651_v10 = vsel %vm810_vm9, %v3396_v9, 128 }
 0x1dc   :  { %v3630_v46 = vsel %vm823_vm8, %v3396_v9, 128  ;;  %4693 = vst [vmem:[#allocation51_spill] sm:$0xff] %v3651_v10  ;;  %v3658_v27 = vcvt.s32.f32 %v1170_v52  ;;  %v3662_v59 = vsel %vm809_vm10, %v3396_v9, 128  ;;  %v714_v52 = vpop.xlane.xlu1 %713 }
 0x1dd   :  { %4690 = vst [vmem:[#allocation48_spill] sm:$0xff] %v3627_v8  ;;  %4691 = vst [vmem:[#allocation49_spill] sm:$0xff] %v3630_v46  ;;  %v1394_v60 = vshra.s32 %v3630_v46, 16  ;;  %1369 = vmin.xlane.f32.xlu0 %v3627_v8  ;;  %v1198_v20 = vshra.s32 %v3662_v59, 16  ;;  %vm816_vm15 = vcmp.eq.f32.partialorder %v3289_v49, %v714_v52 }
 0x1de   :  { %v3640_v19 = vpop.xlane.xlu0 %731  ;;  %4694 = vst [vmem:[#allocation52_spill] sm:$0xff] %v3658_v27  ;;  %4695 = vst [vmem:[#allocation53_spill] sm:$0xff] %v3662_v59  ;;  %v3714_v58 = vsel %vm816_vm15, %v3396_v9, 128 }
 0x1df   :  { %1145 = vmin.xlane.f32.xlu1 %v3634_v7  ;;  %v3644_v6 = vcvt.s32.f32 %v1394_v60  ;;  %v1212_v60 = vshra.s32 %v3651_v10, 16  ;;  %v3679_v10 = vcvt.s32.f32 %v1198_v20  ;;  %4702 = vst [vmem:[#allocation60_spill] sm:$0xff] %v3714_v58  ;;  %v1296_v49 = vshra.s32 %v3714_v58, 16 }
 0x1e0   :  { %v718_v59 = vpop.xlane.xlu1 %717  ;;  %vm825_vm5 = vcmp.eq.f32.partialorder %v3326_v33, %v3640_v19 }
 0x1e1   :  { %4692 = vst [vmem:[#allocation50_spill] sm:$0xff] %v3644_v6  ;;  %1397 = vmin.xlane.f32.xlu0 %v3644_v6  ;;  %v3668_v8 = vcvt.s32.f32 %v1212_v60  ;;  %4697 = vst [vmem:[#allocation55_spill] sm:$0xff] %v3679_v10  ;;  %vm818_vm0 = vcmp.eq.f32.partialorder %v3297_v57, %v718_v59 }
 0x1e2   :  { %v3653_v46 = vpop.xlane.xlu0 %737  ;;  %v3722_v52 = vsel %vm818_vm0, %v3396_v9, 128 }
 0x1e3   :  { %1187 = vmin.xlane.f32.xlu1 %v3647_v56  ;;  %4703 = vst [vmem:[#allocation61_spill] sm:$0xff] %v3722_v52  ;;  %v1324_v57 = vshra.s32 %v3722_v52, 16  ;;  %vm828_vm6 = vcmp.eq.f32.partialorder %v3333_v43, %v3653_v46  ;;  %v2020_v46 = vld [vmem:[#allocation7 + $0x78] sm:$0xff] }
 0x1e4   :  { %v3780_v33 = vsel %vm828_vm6, %v3396_v9, 128  ;;  %2905 = vmatprep.subr.mxu1 %v2020_v46 }
 0x1e5   :  { %4709 = vst [vmem:[#allocation67_spill] sm:$0xff] %v3780_v33  ;;  %2906 = vmatpush3.msra.mxu1 %v2020_v46  ;;  %v2017_v46 = vld [vmem:[#allocation7 + $0x60] sm:$0xff] }
 0x1e6   :  { %v3664_v6 = vpop.xlane.xlu0 %735 }
 0x1e7   :  { %1173 = vmin.xlane.f32.xlu1 %v3658_v27  ;;  %v3689_v27 = vcvt.s32.f32 %v1240_v31  ;;  %v722_v31 = vpop.xlane.xlu1 %721  ;;  %vm827_vm7 = vcmp.eq.f32.partialorder %v3338_v50, %v3664_v6 }
 0x1e8   :  { %vm820_vm1 = vcmp.eq.f32.partialorder %v3305_v3, %v722_v31  ;;  %v3791_v43 = vsel %vm827_vm7, %v3396_v9, 128 }
 0x1e9   :  { %v3732_v59 = vsel %vm820_vm1, %v3396_v9, 128  ;;  %4711 = vst [vmem:[#allocation69_spill] sm:$0xff] %v3791_v43  ;;  %v1450_v50 = vshra.s32 %v3791_v43, 16 }
 0x1ea   :  { %v3674_v32 = vpop.xlane.xlu0 %741  ;;  %4705 = vst [vmem:[#allocation63_spill] sm:$0xff] %v3732_v59  ;;  %v1352_v3 = vshra.s32 %v3732_v59, 16 }
 0x1eb   :  { %1215 = vmin.xlane.f32.xlu1 %v3668_v8  ;;  %v726_v29 = vpop.xlane.xlu1 %725  ;;  %vm830_vm8 = vcmp.eq.f32.partialorder %v3342_v55, %v3674_v32  ;;  %v2018_v55 = vld [vmem:[#allocation7 + $0x68] sm:$0xff]  ;;  %v931_v32 = vand.u32 65535, %v3404_v16  ;;  %v917_v16 = vand.u32 65535, %v3416_v15 }
 0x1ec   :  { %vm822_vm2 = vcmp.eq.f32.partialorder %v3313_v11, %v726_v29  ;;  %v3746_v52 = vcvt.s32.f32 %v1352_v3  ;;  %v2014_v15 = vld [vmem:[#allocation7 + $0x48] sm:$0xff] }
 0x1ed   :  { %v3742_v31 = vsel %vm822_vm2, %v3396_v9, 128 }
 0x1ee   :  { %v3685_v60 = vpop.xlane.xlu0 %739  ;;  %4706 = vst [vmem:[#allocation64_spill] sm:$0xff] %v3742_v31  ;;  %v1380_v11 = vshra.s32 %v3742_v31, 16 }
 0x1ef   :  { %1201 = vmin.xlane.f32.xlu1 %v3679_v10  ;;  %v3710_v10 = vcvt.s32.f32 %v1268_v39  ;;  %v3728_v39 = vcvt.s32.f32 %v1296_v49  ;;  %v730_v38 = vpop.xlane.xlu1 %729  ;;  %vm829_vm9 = vcmp.eq.f32.partialorder %v3346_v62, %v3685_v60  ;;  %v2016_v62 = vld [vmem:[#allocation7 + $0x58] sm:$0xff] }
 0x1f0   :  { %vm824_vm3 = vcmp.eq.f32.partialorder %v3321_v23, %v730_v38  ;;  %v3757_v59 = vcvt.s32.f32 %v1380_v11 }
 0x1f1   :  { %4701 = vst [vmem:[#allocation59_spill] sm:$0xff] %v3710_v10  ;;  %4704 = vst [vmem:[#allocation62_spill] sm:$0xff] %v3728_v39  ;;  %v3750_v29 = vsel %vm824_vm3, %v3396_v9, 128 }
 0x1f2   :  { %v3695_v20 = vpop.xlane.xlu0 %745 }
 0x1f3   :  { %1243 = vmin.xlane.f32.xlu1 %v3689_v27  ;;  %v734_v49 = vpop.xlane.xlu1 %733  ;;  %vm832_vm10 = vcmp.eq.f32.partialorder %v3350_v5, %v3695_v20 }
 0x1f4   :  { %vm826_vm4 = vcmp.eq.f32.partialorder %v3329_v34, %v734_v49  ;;  %v3771_v34 = vsel %vm825_vm5, %v3396_v9, 128  ;;  %v3828_v5 = vsel %vm832_vm10, %v3396_v9, 128 }
 0x1f5   :  { %v3760_v23 = vsel %vm826_vm4, %v3396_v9, 128  ;;  %v1422_v49 = vshra.s32 %v3771_v34, 16 }
 0x1f6   :  { %v3708_v13 = vpop.xlane.xlu0 %743  ;;  %4707 = vst [vmem:[#allocation65_spill] sm:$0xff] %v3760_v23  ;;  %v1436_v3 = vshra.s32 %v3760_v23, 16 }
 0x1f7   :  { %1229 = vmin.xlane.f32.xlu1 %v3700_v36  ;;  %v3788_v23 = vcvt.s32.f32 %v1422_v49  ;;  %v3802_v49 = vsel %vm830_vm8, %v3396_v9, 128  ;;  %vm831_vm12 = vcmp.eq.f32.partialorder %v3354_v12, %v3708_v13  ;;  %v2013_v12 = vld [vmem:[#allocation7 + $0x40] sm:$0xff] }
 0x1f8   :  { %v3777_v11 = vcvt.s32.f32 %v1436_v3  ;;  %4712 = vst [vmem:[#allocation70_spill] sm:$0xff] %v3802_v49  ;;  %v1492_v43 = vshra.s32 %v3802_v49, 16  ;;  %v2015_v49 = vld [vmem:[#allocation7 + $0x50] sm:$0xff]  ;;  %v3844_v13 = vsel %vm831_vm12, %v3396_v9, 128 }
 0x1f9   :  { %4710 = vst [vmem:[#allocation68_spill] sm:$0xff] %v3788_v23  ;;  %4714 = vst [vmem:[#allocation72_spill] sm:$0xff] %v3844_v13 }
 0x1fa   :  { %v3724_v36 = vpop.xlane.xlu0 %749  ;;  %4708 = vst [vmem:[#allocation66_spill] sm:$0xff] %v3777_v11 }
 0x1fb   :  { %1271 = vmin.xlane.f32.xlu1 %v3710_v10  ;;  %v3738_v10 = vcvt.s32.f32 %v1324_v57  ;;  %v1408_v57 = vshra.s32 %v3750_v29, 16  ;;  %vm834_vm14 = vcmp.eq.f32.partialorder %v3358_v18, %v3724_v36 }
 0x1fc   :  { %v3858_v18 = vsel %vm834_vm14, %v3396_v9, 128 }
 0x1fd   :  { %v3768_v31 = vcvt.s32.f32 %v1408_v57  ;;  %v1464_v57 = vshra.s32 %v3780_v33, 16  ;;  %v2019_v33 = vld [vmem:[#allocation7 + $0x70] sm:$0xff]  ;;  %4717 = vst [vmem:[#allocation75_spill] sm:$0xff] %v3858_v18 }
 0x1fe   :  { %v3736_v58 = vpop.xlane.xlu0 %747  ;;  %2907 = vmatprep.subr.mxu1 %v2019_v33 }
 0x1ff   :  { %1257 = vmin.xlane.f32.xlu1 %v3718_v26  ;;  %v3799_v6 = vcvt.s32.f32 %v1464_v57  ;;  %2908 = vmatpush3.msra.mxu1 %v2019_v33  ;;  %v3809_v57 = vcvt.s32.f32 %v1450_v50  ;;  %v933_v33 = vcvt.s32.f32 %v931_v32 }
 0x200   :  { %2909 = vmatprep.subr.mxu1 %v2018_v55 }
 0x201   :  { %2910 = vmatpush3.msra.mxu1 %v2018_v55  ;;  %v3823_v55 = vcvt.s32.f32 %v1492_v43  ;;  %v959_v43 = vand.u32 65535, %v3419_v4  ;;  %v2012_v4 = vld [vmem:[#allocation7 + $0x38] sm:$0xff] }
 0x202   :  { %2911 = vmatprep.subr.mxu1 %v2017_v46 }
 0x203   :  { %1299 = vmin.xlane.f32.xlu1 %v3728_v39  ;;  %v3752_v39 = vpop.xlane.xlu0 %753  ;;  %2912 = vmatpush3.msra.mxu1 %v2017_v46 }
 0x204   :  { %2913 = vmatprep.subr.mxu1 %v2016_v62 }
 0x205   :  { %2914 = vmatpush3.msra.mxu1 %v2016_v62  ;;  %v1520_v62 = vshra.s32 %v3828_v5, 16 }
 0x206   :  { %2915 = vmatprep.subr.mxu1 %v2015_v49 }
 0x207   :  { %1327 = vmin.xlane.f32.xlu1 %v3738_v10  ;;  %v3765_v38 = vpop.xlane.xlu0 %751  ;;  %2916 = vmatpush3.msra.mxu1 %v2015_v49  ;;  %v945_v49 = vand.u32 65535, %v3432_v25  ;;  %v2011_v25 = vld [vmem:[#allocation7 + $0x30] sm:$0xff] }
 0x208   :  { %2917 = vmatprep.subr.mxu1 %v2014_v15 }
 0x209   :  { %2918 = vmatpush3.msra.mxu1 %v2014_v15 }
 0x20a   :  { %2919 = vmatprep.subr.mxu1 %v2013_v12 }
 0x20b   :  { %1355 = vmin.xlane.f32.xlu1 %v3746_v52  ;;  %v3782_v19 = vpop.xlane.xlu0 %757  ;;  %2920 = vmatpush3.msra.mxu1 %v2013_v12  ;;  %v1548_v12 = vshra.s32 %v3858_v18, 16 }
 0x20c   :  { %2921 = vmatprep.subr.mxu1 %v2012_v4 }
 0x20d   :  { %2922 = vmatpush3.msra.mxu1 %v2012_v4  ;;  %v2009_v4 = vld [vmem:[#allocation7 + $0x20] sm:$0xff] }
 0x20e   :  { %2923 = vmatprep.subr.mxu1 %v2011_v25 }
 0x20f   :  { %1383 = vmin.xlane.f32.xlu1 %v3757_v59  ;;  %v3796_v3 = vpop.xlane.xlu0 %755  ;;  %2924 = vmatpush3.msra.mxu1 %v2011_v25 }
 0x213   :  { %1411 = vmin.xlane.f32.xlu1 %v3768_v31 }
 0x217   :  { %1439 = vmin.xlane.f32.xlu1 %v3777_v11  ;;  %v3814_v11 = vpop.xlane.xlu0 %761 }
 0x21b   :  { %1425 = vmin.xlane.f32.xlu1 %v3788_v23  ;;  %v3812_v23 = vsel %vm829_vm9, %v3396_v9, 128  ;;  %v3834_v32 = vpop.xlane.xlu0 %759 }
 0x21c   :  { %v1478_v50 = vshra.s32 %v3812_v23, 16 }
 0x21f   :  { %1467 = vmin.xlane.f32.xlu1 %v3799_v6  ;;  %v3860_v36 = vpop.xlane.xlu0 %765 }
 0x223   :  { %1453 = vmin.xlane.f32.xlu1 %v3809_v57 }
 0x224   :  { %v3820_v60 = vpop.xlane.xlu1 %935 }
 0x225   :  { %4713 = vst [vmem:[#allocation71_spill] sm:$0xff] %v3820_v60  ;;  %vm937_vm11 = vcmp.eq.f32.partialorder %v3410_v21, %v3820_v60  ;;  %v919_v21 = vcvt.s32.f32 %v917_v16  ;;  %v3839_v60 = vcvt.s32.f32 %v1478_v50  ;;  %v961_v50 = vcvt.s32.f32 %v959_v43  ;;  %v4719_v43 = vld [vmem:[#allocation25_spill] sm:$0xff] }
 0x226   :  { %v938_v20 = vsel %vm937_vm11, %v933_v33, inf }
 0x227   :  { %1495 = vmin.xlane.f32.xlu1 %v3823_v55  ;;  %939 = vmin.xlane.f32.xlu0 %v938_v20  ;;  %v3853_v20 = vcvt.s32.f32 %v1520_v62  ;;  %v987_v62 = vand.u32 65535, %v4719_v43  ;;  %v3880_v43 = vpop.xlane.xlu0 %763 }
 0x228   :  { %v3836_v46 = vpop.xlane.xlu1 %921 }
 0x229   :  { %vm923_vm13 = vcmp.eq.f32.partialorder %v3425_v45, %v3836_v46  ;;  %v1506_v45 = vshra.s32 %v3844_v13, 16  ;;  %4716 = vst [vmem:[#allocation74_spill] sm:$0xff] %v3853_v20  ;;  %v2010_v13 = vld [vmem:[#allocation7 + $0x28] sm:$0xff] }
 0x22a   :  { %v924_v33 = vsel %vm923_vm13, %v919_v21, inf  ;;  %v4718_v21 = vld [vmem:[#allocation12_spill] sm:$0xff]  ;;  %2925 = vmatprep.subr.mxu1 %v2010_v13 }
 0x22b   :  { %1481 = vmin.xlane.f32.xlu1 %v3839_v60  ;;  %925 = vmin.xlane.f32.xlu0 %v924_v33  ;;  %vm833_vm0 = vcmp.eq.f32.partialorder %v4718_v21, %v3736_v58 }
 0x22c   :  { %v3850_v16 = vpop.xlane.xlu1 %963  ;;  %v3874_v58 = vsel %vm833_vm0, %v3396_v9, 128  ;;  %2926 = vmatpush3.msra.mxu1 %v2010_v13 }
 0x22d   :  { %4715 = vst [vmem:[#allocation73_spill] sm:$0xff] %v3850_v16  ;;  %vm965_vm15 = vcmp.eq.f32.partialorder %v3437_v30, %v3850_v16  ;;  %v947_v30 = vcvt.s32.f32 %v945_v49  ;;  %v3869_v16 = vcvt.s32.f32 %v1506_v45  ;;  %v4723_v49 = vld [vmem:[#allocation28_spill] sm:$0xff]  ;;  %2927 = vmatprep.subr.mxu1 %v2009_v4 }
 0x22e   :  { %v966_v15 = vsel %vm965_vm15, %v961_v50, inf  ;;  %v4721_v50 = vld [vmem:[#allocation26_spill] sm:$0xff]  ;;  %v973_v45 = vand.u32 65535, %v4723_v49  ;;  %2928 = vmatpush3.msra.mxu1 %v2009_v4  ;;  %v4730_v4 = vld [vmem:[#allocation32_spill] sm:$0xff] }
 0x22f   :  { %1523 = vmin.xlane.f32.xlu1 %v3853_v20  ;;  %967 = vmin.xlane.f32.xlu0 %v966_v15  ;;  %v4722_v15 = vld [vmem:[#allocation13_spill] sm:$0xff]  ;;  %v1534_v20 = vshra.s32 %v3874_v58, 16 }
 0x230   :  { %v3866_v33 = vpop.xlane.xlu1 %949  ;;  %vm836_vm2 = vcmp.eq.f32.partialorder %v4722_v15, %v3752_v39  ;;  %v975_v49 = vcvt.s32.f32 %v973_v45  ;;  %v1001_v45 = vand.u32 65535, %v4730_v4 }
 0x231   :  { %4720 = vst [vmem:[#allocation12_spill] sm:$0xff] %v3866_v33  ;;  %vm951_vm1 = vcmp.eq.f32.partialorder %v4721_v50, %v3866_v33  ;;  %v989_v50 = vcvt.s32.f32 %v987_v62  ;;  %v3885_v33 = vcvt.s32.f32 %v1548_v12  ;;  %v3890_v39 = vsel %vm836_vm2, %v3396_v9, 128  ;;  %v4727_v62 = vld [vmem:[#allocation30_spill] sm:$0xff] }
 0x232   :  { %v952_v21 = vsel %vm951_vm1, %v947_v30, inf  ;;  %4725 = vst [vmem:[#allocation26_spill] sm:$0xff] %v3890_v39  ;;  %v2008_v30 = vld [vmem:[#allocation7 + $0x18] sm:$0xff]  ;;  %v1015_v15 = vand.u32 65535, %v4727_v62  ;;  %v3899_v13 = vcvt.s32.f32 %v1534_v20  ;;  %v2006_v20 = vld [vmem:[#allocation7 + $0x8] sm:$0xff] }
 0x233   :  { %1509 = vmin.xlane.f32.xlu1 %v3869_v16  ;;  %953 = vmin.xlane.f32.xlu0 %v952_v21  ;;  %4724 = vst [vmem:[#allocation25_spill] sm:$0xff] %v3885_v33  ;;  %v4726_v21 = vld [vmem:[#allocation14_spill] sm:$0xff]  ;;  %v4729_v62 = vld [vmem:[#allocation15_spill] sm:$0xff] }
 0x234   :  { %v3882_v18 = vpop.xlane.xlu1 %991  ;;  %vm835_vm4 = vcmp.eq.f32.partialorder %v4726_v21, %v3765_v38  ;;  %2929 = vmatprep.subr.mxu1 %v2008_v30  ;;  %v3906_v21 = vpop.xlane.xlu0 %769  ;;  %vm838_vm6 = vcmp.eq.f32.partialorder %v4729_v62, %v3782_v19 }
 0x235   :  { %vm993_vm3 = vcmp.eq.f32.partialorder %v3461_v35, %v3882_v18  ;;  %v1576_v35 = vshra.s32 %v3890_v39, 16  ;;  %v3904_v38 = vsel %vm835_vm4, %v3396_v9, 128  ;;  %2930 = vmatpush3.msra.mxu1 %v2008_v30  ;;  %v3920_v19 = vsel %vm838_vm6, %v3396_v9, 128 }
 0x236   :  { %v994_v25 = vsel %vm993_vm3, %v989_v50, inf  ;;  %v2007_v50 = vld [vmem:[#allocation7 + $0x10] sm:$0xff] }
 0x237   :  { %1551 = vmin.xlane.f32.xlu1 %v3885_v33  ;;  %995 = vmin.xlane.f32.xlu0 %v994_v25  ;;  %v1562_v33 = vshra.s32 %v3904_v38, 16 }
 0x238   :  { %v3896_v12 = vpop.xlane.xlu1 %977  ;;  %2931 = vmatprep.subr.mxu1 %v2007_v50 }
 0x239   :  { %4728 = vst [vmem:[#allocation13_spill] sm:$0xff] %v3896_v12  ;;  %vm979_vm5 = vcmp.eq.f32.partialorder %v3473_v44, %v3896_v12  ;;  %v1017_v44 = vcvt.s32.f32 %v1015_v15  ;;  %v3915_v12 = vcvt.s32.f32 %v1576_v35  ;;  %2932 = vmatpush3.msra.mxu1 %v2007_v50  ;;  %v1043_v15 = vand.u32 65535, %v3492_v24  ;;  %v3926_v35 = vpop.xlane.xlu0 %767  ;;  %v4732_v24 = vld [vmem:[#allocation17_spill] sm:$0xff] }
 0x23a   :  { %v980_v25 = vsel %vm979_vm5, %v975_v49, inf  ;;  %2933 = vmatprep.subr.mxu1 %v2006_v20  ;;  %v2005_v49 = vld [vmem:[#allocation7] sm:$0xff]  ;;  %v1604_v50 = vshra.s32 %v3920_v19, 16  ;;  %v3931_v4 = vcvt.s32.f32 %v1562_v33  ;;  %vm840_vm10 = vcmp.eq.f32.partialorder %v4732_v24, %v3814_v11 }
 0x23b   :  { %1537 = vmin.xlane.f32.xlu1 %v3899_v13  ;;  %981 = vmin.xlane.f32.xlu0 %v980_v25  ;;  %v4731_v25 = vld [vmem:[#allocation16_spill] sm:$0xff]  ;;  %v1045_v33 = vcvt.s32.f32 %v1043_v15 }
 0x23c   :  { %v3912_v39 = vpop.xlane.xlu1 %1019  ;;  %vm837_vm8 = vcmp.eq.f32.partialorder %v4731_v25, %v3796_v3  ;;  %2934 = vmatpush3.msra.mxu1 %v2006_v20  ;;  %v1029_v20 = vand.u32 65535, %v3504_v61  ;;  %v1071_v61 = vand.u32 65535, %v3518_v63  ;;  %v4739_v63 = vld [vmem:[#allocation36_spill] sm:$0xff] }
 0x23d   :  { %vm1021_vm7 = vcmp.eq.f32.partialorder %v3485_v41, %v3912_v39  ;;  %v1003_v41 = vcvt.s32.f32 %v1001_v45  ;;  %2935 = vmatprep.subr.mxu1 %v2005_v49  ;;  %v3936_v3 = vsel %vm837_vm8, %v3396_v9, 128  ;;  %v3952_v25 = vpop.xlane.xlu0 %773 }
 0x23e   :  { %v1022_v30 = vsel %vm1021_vm7, %v1017_v44, inf  ;;  %2936 = vmatpush3.msra.mxu1 %v2005_v49  ;;  %v3950_v49 = vsel %vm840_vm10, %v3396_v9, 128 }
 0x23f   :  { %1579 = vmin.xlane.f32.xlu1 %v3915_v12  ;;  %1023 = vmin.xlane.f32.xlu0 %v1022_v30  ;;  %v1590_v30 = vshra.s32 %v3936_v3, 16  ;;  %4734 = vst [vmem:[#allocation14_spill] sm:$0xff] %v3950_v49 }
 0x240   :  { %v3928_v62 = vpop.xlane.xlu1 %1005 }
 0x241   :  { %vm1007_vm9 = vcmp.eq.f32.partialorder %v3497_v42, %v3928_v62  ;;  %v3945_v42 = vcvt.s32.f32 %v1604_v50  ;;  %v1031_v50 = vcvt.s32.f32 %v1029_v20  ;;  %v3972_v20 = vpop.xlane.xlu0 %771 }
 0x242   :  { %v1008_v44 = vsel %vm1007_vm9, %v1003_v41, inf  ;;  %v4735_v41 = vld [vmem:[#allocation18_spill] sm:$0xff] }
 0x243   :  { %1565 = vmin.xlane.f32.xlu1 %v3931_v4  ;;  %1009 = vmin.xlane.f32.xlu0 %v1008_v44  ;;  %4733 = vst [vmem:[#allocation28_spill] sm:$0xff] %v3945_v42  ;;  %vm839_vm12 = vcmp.eq.f32.partialorder %v4735_v41, %v3834_v32  ;;  %v1632_v44 = vshra.s32 %v3950_v49, 16  ;;  %v4738_v32 = vld [vmem:[#allocation19_spill] sm:$0xff] }
 0x244   :  { %v3942_v45 = vpop.xlane.xlu1 %1047  ;;  %v3966_v24 = vsel %vm839_vm12, %v3396_v9, 128  ;;  %vm842_vm14 = vcmp.eq.f32.partialorder %v4738_v32, %v3860_v36  ;;  %v4745_v32 = vld [vmem:[#allocation38_spill] sm:$0xff] }
 0x245   :  { %vm1049_vm11 = vcmp.eq.f32.partialorder %v3511_v47, %v3942_v45  ;;  %v3961_v47 = vcvt.s32.f32 %v1590_v30  ;;  %4737 = vst [vmem:[#allocation15_spill] sm:$0xff] %v3966_v24  ;;  %v1073_v30 = vcvt.s32.f32 %v1071_v61  ;;  %v1618_v49 = vshra.s32 %v3966_v24, 16 }
 0x246   :  { %v1050_v11 = vsel %vm1049_vm11, %v1045_v33, inf }
 0x247   :  { %1607 = vmin.xlane.f32.xlu1 %v3945_v42  ;;  %1051 = vmin.xlane.f32.xlu0 %v1050_v11  ;;  %4736 = vst [vmem:[#allocation30_spill] sm:$0xff] %v3961_v47  ;;  %v1057_v11 = vand.u32 65535, %v4739_v63  ;;  %v4742_v42 = vld [vmem:[#allocation37_spill] sm:$0xff]  ;;  %v1099_v63 = vand.u32 65535, %v4745_v32 }
 0x248   :  { %v3958_v15 = vpop.xlane.xlu1 %1033 }
 0x249   :  { %vm1035_vm13 = vcmp.eq.f32.partialorder %v3525_v48, %v3958_v15  ;;  %v3977_v48 = vcvt.s32.f32 %v1632_v44  ;;  %v1059_v24 = vcvt.s32.f32 %v1057_v11 }
 0x24a   :  { %v1036_v33 = vsel %vm1035_vm13, %v1031_v50, inf  ;;  %v3982_v50 = vsel %vm842_vm14, %v3396_v9, 128 }
 0x24b   :  { %1593 = vmin.xlane.f32.xlu1 %v3961_v47  ;;  %1037 = vmin.xlane.f32.xlu0 %v1036_v33  ;;  %4741 = vst [vmem:[#allocation16_spill] sm:$0xff] %v3977_v48  ;;  %4743 = vst [vmem:[#allocation17_spill] sm:$0xff] %v3982_v50  ;;  %v4744_v33 = vld [vmem:[#allocation20_spill] sm:$0xff]  ;;  %v1660_v44 = vshra.s32 %v3982_v50, 16  ;;  %v3991_v47 = vcvt.s32.f32 %v1618_v49  ;;  %v1101_v49 = vcvt.s32.f32 %v1099_v63 }
 0x24c   :  { %v3974_v41 = vpop.xlane.xlu1 %1075  ;;  %vm841_vm0 = vcmp.eq.f32.partialorder %v4744_v33, %v3880_v43  ;;  %v4748_v33 = vld [vmem:[#allocation21_spill] sm:$0xff] }
 0x24d   :  { %4740 = vst [vmem:[#allocation32_spill] sm:$0xff] %v3974_v41  ;;  %vm1077_vm15 = vcmp.eq.f32.partialorder %v4742_v42, %v3974_v41  ;;  %v4746_v42 = vld [vmem:[#allocation39_spill] sm:$0xff]  ;;  %v778_v41 = vpop.xlane.xlu0 %777  ;;  %vm844_vm2 = vcmp.eq.f32.partialorder %v4748_v33, %v3906_v21  ;;  %v4750_v21 = vld [vmem:[#allocation22_spill] sm:$0xff] }
 0x24e   :  { %v1078_v36 = vsel %vm1077_vm15, %v1073_v30, inf  ;;  %v3996_v30 = vsel %vm841_vm0, %v3396_v9, 128  ;;  %vm843_vm4 = vcmp.eq.f32.partialorder %v4750_v21, %v3926_v35 }
 0x24f   :  { %1635 = vmin.xlane.f32.xlu1 %v3977_v48  ;;  %1079 = vmin.xlane.f32.xlu0 %v1078_v36  ;;  %4747 = vst [vmem:[#allocation18_spill] sm:$0xff] %v3996_v30  ;;  %v4749_v36 = vld [vmem:[#allocation40_spill] sm:$0xff]  ;;  %v1646_v50 = vshra.s32 %v3996_v30, 16  ;;  %v4005_v48 = vcvt.s32.f32 %v1660_v44 }
 0x250   :  { %v3988_v61 = vpop.xlane.xlu1 %1061  ;;  %v1085_v11 = vand.u32 65535, %v4749_v36 }
 0x251   :  { %vm1063_vm1 = vcmp.eq.f32.partialorder %v4746_v42, %v3988_v61  ;;  %v776_v63 = vpop.xlane.xlu0 %775  ;;  %v4019_v30 = vcvt.s32.f32 %v1646_v50 }
 0x252   :  { %v1064_v43 = vsel %vm1063_vm1, %v1059_v24, inf  ;;  %v4010_v24 = vsel %vm844_vm2, %v3396_v9, 128  ;;  %v1087_v44 = vcvt.s32.f32 %v1085_v11 }
 0x253   :  { %1621 = vmin.xlane.f32.xlu1 %v3991_v47  ;;  %1065 = vmin.xlane.f32.xlu0 %v1064_v43  ;;  %v1127_v43 = vand.u32 65535, %v3559_v37  ;;  %v1688_v36 = vshra.s32 %v4010_v24, 16  ;;  %v1113_v37 = vand.u32 65535, %v3572_v54  ;;  %v1155_v54 = vand.u32 65535, %v3588_v28 }
 0x254   :  { %v4002_v32 = vpop.xlane.xlu1 %1103  ;;  %v1141_v28 = vand.u32 65535, %v3605_v1  ;;  %v1183_v1 = vand.u32 65535, %v3621_v14  ;;  %v1169_v14 = vand.u32 65535, %v3638_v0  ;;  %v4764_v0 = vld [vmem:[#allocation51_spill] sm:$0xff] }
 0x255   :  { %vm1105_vm3 = vcmp.eq.f32.partialorder %v3555_v17, %v4002_v32  ;;  %v4024_v17 = vsel %vm843_vm4, %v3396_v9, 128  ;;  %v4033_v21 = vcvt.s32.f32 %v1688_v36  ;;  %v1115_v36 = vcvt.s32.f32 %v1113_v37 }
 0x256   :  { %v1106_v42 = vsel %vm1105_vm3, %v1101_v49, inf  ;;  %4751 = vst [vmem:[#allocation19_spill] sm:$0xff] %v4024_v17  ;;  %v4752_v49 = vld [vmem:[#allocation23_spill] sm:$0xff]  ;;  %v1674_v50 = vshra.s32 %v4024_v17, 16 }
 0x257   :  { %1663 = vmin.xlane.f32.xlu1 %v4005_v48  ;;  %1107 = vmin.xlane.f32.xlu0 %v1106_v42  ;;  %vm846_vm6 = vcmp.eq.f32.partialorder %v4752_v49, %v3952_v25  ;;  %v1129_v42 = vcvt.s32.f32 %v1127_v43  ;;  %v4754_v49 = vld [vmem:[#allocation24_spill] sm:$0xff] }
 0x258   :  { %v4016_v33 = vpop.xlane.xlu1 %1089  ;;  %vm845_vm8 = vcmp.eq.f32.partialorder %v4754_v49, %v3972_v20  ;;  %v4047_v17 = vcvt.s32.f32 %v1674_v50  ;;  %v4755_v20 = vld [vmem:[#allocation27_spill] sm:$0xff]  ;;  %v1157_v49 = vcvt.s32.f32 %v1155_v54  ;;  %v1143_v54 = vcvt.s32.f32 %v1141_v28 }
 0x259   :  { %vm1091_vm5 = vcmp.eq.f32.partialorder %v3567_v2, %v4016_v33  ;;  %v4038_v2 = vsel %vm846_vm6, %v3396_v9, 128  ;;  %vm848_vm10 = vcmp.eq.f32.partialorder %v4755_v20, %v778_v41 }
 0x25a   :  { %v1092_v35 = vsel %vm1091_vm5, %v1087_v44, inf  ;;  %4753 = vst [vmem:[#allocation36_spill] sm:$0xff] %v4038_v2  ;;  %v782_v44 = vpop.xlane.xlu0 %781 }
 0x25b   :  { %1649 = vmin.xlane.f32.xlu1 %v4019_v30  ;;  %1093 = vmin.xlane.f32.xlu0 %v1092_v35  ;;  %v1716_v35 = vshra.s32 %v4038_v2, 16 }
 0x25c   :  { %v4030_v11 = vpop.xlane.xlu1 %1131 }
 0x25d   :  { %vm1133_vm7 = vcmp.eq.f32.partialorder %v3583_v51, %v4030_v11  ;;  %v4052_v51 = vsel %vm845_vm8, %v3396_v9, 128  ;;  %v4060_v2 = vcvt.s32.f32 %v1716_v35 }
 0x25e   :  { %v1134_v25 = vsel %vm1133_vm7, %v1129_v42, inf  ;;  %v1702_v50 = vshra.s32 %v4052_v51, 16 }
 0x25f   :  { %1691 = vmin.xlane.f32.xlu1 %v4033_v21  ;;  %1135 = vmin.xlane.f32.xlu0 %v1134_v25  ;;  %v780_v25 = vpop.xlane.xlu0 %779 }
 0x260   :  { %v4044_v43 = vpop.xlane.xlu1 %1117  ;;  %v4073_v20 = vcvt.s32.f32 %v1702_v50 }
 0x261   :  { %vm1119_vm9 = vcmp.eq.f32.partialorder %v3600_v40, %v4044_v43  ;;  %v4065_v40 = vsel %vm848_vm10, %v3396_v9, 128 }
 0x262   :  { %v1120_v42 = vsel %vm1119_vm9, %v1115_v36, inf  ;;  %4756 = vst [vmem:[#allocation37_spill] sm:$0xff] %v4065_v40  ;;  %v4757_v36 = vld [vmem:[#allocation29_spill] sm:$0xff]  ;;  %v1744_v35 = vshra.s32 %v4065_v40, 16  ;;  %4758 = vst [vmem:[#allocation20_spill] sm:$0xff] %v4073_v20 }
 0x263   :  { %1677 = vmin.xlane.f32.xlu1 %v4047_v17  ;;  %1121 = vmin.xlane.f32.xlu0 %v1120_v42  ;;  %vm847_vm12 = vcmp.eq.f32.partialorder %v4757_v36, %v776_v63  ;;  %v4760_v36 = vld [vmem:[#allocation31_spill] sm:$0xff] }
 0x264   :  { %v4057_v37 = vpop.xlane.xlu1 %1159  ;;  %vm850_vm14 = vcmp.eq.f32.partialorder %v4760_v36, %v782_v44  ;;  %v4086_v40 = vcvt.s32.f32 %v1744_v35  ;;  %v4763_v44 = vld [vmem:[#allocation33_spill] sm:$0xff] }
 0x265   :  { %vm1161_vm11 = vcmp.eq.f32.partialorder %v3616_v53, %v4057_v37  ;;  %v4078_v53 = vsel %vm847_vm12, %v3396_v9, 128  ;;  %vm849_vm0 = vcmp.eq.f32.partialorder %v4763_v44, %v780_v25  ;;  %v4767_v44 = vld [vmem:[#allocation35_spill] sm:$0xff] }
 0x266   :  { %v1162_v41 = vsel %vm1161_vm11, %v1157_v49, inf  ;;  %4759 = vst [vmem:[#allocation38_spill] sm:$0xff] %v4078_v53  ;;  %v786_v49 = vpop.xlane.xlu0 %785  ;;  %v1730_v50 = vshra.s32 %v4078_v53, 16  ;;  %4761 = vst [vmem:[#allocation39_spill] sm:$0xff] %v4086_v40  ;;  %v1171_v53 = vcvt.s32.f32 %v1169_v14 }
 0x267   :  { %1719 = vmin.xlane.f32.xlu1 %v4060_v2  ;;  %1163 = vmin.xlane.f32.xlu0 %v1162_v41  ;;  %v1185_v41 = vcvt.s32.f32 %v1183_v1 }
 0x268   :  { %v4070_v42 = vpop.xlane.xlu1 %1145 }
 0x269   :  { %vm1147_vm13 = vcmp.eq.f32.partialorder %v3634_v7, %v4070_v42  ;;  %v4091_v7 = vsel %vm850_vm14, %v3396_v9, 128 }
 0x26a   :  { %v1148_v63 = vsel %vm1147_vm13, %v1143_v54, inf  ;;  %4762 = vst [vmem:[#allocation21_spill] sm:$0xff] %v4091_v7  ;;  %v784_v36 = vpop.xlane.xlu0 %783  ;;  %v1772_v35 = vshra.s32 %v4091_v7, 16 }
 0x26b   :  { %1705 = vmin.xlane.f32.xlu1 %v4073_v20  ;;  %1149 = vmin.xlane.f32.xlu0 %v1148_v63  ;;  %v1211_v63 = vand.u32 65535, %v4764_v0  ;;  %v4099_v20 = vcvt.s32.f32 %v1730_v50  ;;  %vm851_vm2 = vcmp.eq.f32.partialorder %v4767_v44, %v784_v36  ;;  %v4772_v36 = vld [vmem:[#allocation34_spill] sm:$0xff] }
 0x26c   :  { %v4083_v28 = vpop.xlane.xlu1 %1187  ;;  %v4112_v7 = vcvt.s32.f32 %v1772_v35  ;;  %vm852_vm4 = vcmp.eq.f32.partialorder %v4772_v36, %v786_v49  ;;  %v4778_v49 = vld [vmem:[#allocation56_spill] sm:$0xff] }
 0x26d   :  { %vm1189_vm15 = vcmp.eq.f32.partialorder %v3647_v56, %v4083_v28  ;;  %v4765_v56 = vld [vmem:[#allocation52_spill] sm:$0xff]  ;;  %v1213_v14 = vcvt.s32.f32 %v1211_v63 }
 0x26e   :  { %v1190_v54 = vsel %vm1189_vm15, %v1185_v41, inf  ;;  %v4104_v41 = vsel %vm849_vm0, %v3396_v9, 128  ;;  %4770 = vst [vmem:[#allocation23_spill] sm:$0xff] %v4112_v7 }
 0x26f   :  { %1747 = vmin.xlane.f32.xlu1 %v4086_v40  ;;  %1191 = vmin.xlane.f32.xlu0 %v1190_v54  ;;  %4766 = vst [vmem:[#allocation40_spill] sm:$0xff] %v4104_v41  ;;  %v4768_v54 = vld [vmem:[#allocation53_spill] sm:$0xff]  ;;  %v1758_v50 = vshra.s32 %v4104_v41, 16 }
 0x270   :  { %v4096_v1 = vpop.xlane.xlu1 %1173  ;;  %v1197_v0 = vand.u32 65535, %v4768_v54 }
 0x271   :  { %vm1175_vm1 = vcmp.eq.f32.partialorder %v4765_v56, %v4096_v1  ;;  %v4117_v56 = vsel %vm851_vm2, %v3396_v9, 128  ;;  %v4125_v41 = vcvt.s32.f32 %v1758_v50 }
 0x272   :  { %v1176_v25 = vsel %vm1175_vm1, %v1171_v53, inf  ;;  %4771 = vst [vmem:[#allocation24_spill] sm:$0xff] %v4117_v56  ;;  %v1199_v63 = vcvt.s32.f32 %v1197_v0  ;;  %v1786_v35 = vshra.s32 %v4117_v56, 16 }
 0x273   :  { %1733 = vmin.xlane.f32.xlu1 %v4099_v20  ;;  %1177 = vmin.xlane.f32.xlu0 %v1176_v25  ;;  %v4773_v25 = vld [vmem:[#allocation54_spill] sm:$0xff]  ;;  %4775 = vst [vmem:[#allocation29_spill] sm:$0xff] %v4125_v41 }
 0x274   :  { %v4109_v40 = vpop.xlane.xlu1 %1215  ;;  %v1239_v44 = vand.u32 65535, %v4773_v25  ;;  %v4139_v50 = vcvt.s32.f32 %v1786_v35  ;;  %v4151_v35 = vpop.xlane.xlu0 %1285 }
 0x275   :  { %4769 = vst [vmem:[#allocation22_spill] sm:$0xff] %v4109_v40  ;;  %vm1217_vm3 = vcmp.eq.f32.partialorder %v3668_v8, %v4109_v40  ;;  %v4776_v8 = vld [vmem:[#allocation55_spill] sm:$0xff]  ;;  %v4130_v40 = vsel %vm852_vm4, %v3396_v9, 128  ;;  %4785 = vst [vmem:[#allocation53_spill] sm:$0xff] %v4151_v35 }
 0x276   :  { %v1218_v53 = vsel %vm1217_vm3, %v1213_v14, inf  ;;  %4777 = vst [vmem:[#allocation31_spill] sm:$0xff] %v4130_v40  ;;  %v1241_v25 = vcvt.s32.f32 %v1239_v44  ;;  %v1800_v0 = vshra.s32 %v4130_v40, 16  ;;  %4780 = vst [vmem:[#allocation51_spill] sm:$0xff] %v4139_v50 }
 0x277   :  { %1775 = vmin.xlane.f32.xlu1 %v4112_v7  ;;  %1219 = vmin.xlane.f32.xlu0 %v1218_v53  ;;  %v1225_v53 = vand.u32 65535, %v4778_v49  ;;  %v4783_v49 = vld [vmem:[#allocation58_spill] sm:$0xff] }
 0x278   :  { %v4122_v54 = vpop.xlane.xlu1 %1201  ;;  %v4147_v44 = vcvt.s32.f32 %v1800_v0 }
 0x279   :  { %4774 = vst [vmem:[#allocation27_spill] sm:$0xff] %v4122_v54  ;;  %vm1203_vm5 = vcmp.eq.f32.partialorder %v4776_v8, %v4122_v54 }
 0x27a   :  { %v1204_v14 = vsel %vm1203_vm5, %v1199_v63, inf  ;;  %v4781_v63 = vld [vmem:[#allocation57_spill] sm:$0xff]  ;;  %4784 = vst [vmem:[#allocation35_spill] sm:$0xff] %v4147_v44 }
 0x27b   :  { %1761 = vmin.xlane.f32.xlu1 %v4125_v41  ;;  %1205 = vmin.xlane.f32.xlu0 %v1204_v14  ;;  %v1267_v56 = vand.u32 65535, %v4781_v63  ;;  %v1227_v14 = vcvt.s32.f32 %v1225_v53  ;;  %v4787_v63 = vld [vmem:[#allocation59_spill] sm:$0xff] }
 0x27c   :  { %v4134_v36 = vpop.xlane.xlu1 %1243 }
 0x27d   :  { %4779 = vst [vmem:[#allocation33_spill] sm:$0xff] %v4134_v36  ;;  %vm1245_vm6 = vcmp.eq.f32.partialorder %v3689_v27, %v4134_v36  ;;  %v1253_v27 = vand.u32 65535, %v3704_v22 }
 0x27e   :  { %v1246_v8 = vsel %vm1245_vm6, %v1241_v25, inf }
 0x27f   :  { %1247 = vmin.xlane.f32.xlu0 %v1246_v8  ;;  %1789 = vmin.xlane.f32.xlu1 %v4139_v50  ;;  %v1269_v8 = vcvt.s32.f32 %v1267_v56  ;;  %v4788_v50 = vld [vmem:[#allocation60_spill] sm:$0xff]  ;;  %v4791_v56 = vld [vmem:[#allocation61_spill] sm:$0xff] }
 0x280   :  { %v4143_v41 = vpop.xlane.xlu1 %1229  ;;  %v1323_v36 = vand.u32 65535, %v4791_v56 }
 0x281   :  { %4782 = vst [vmem:[#allocation52_spill] sm:$0xff] %v4143_v41  ;;  %vm1231_vm7 = vcmp.eq.f32.partialorder %v4783_v49, %v4143_v41  ;;  %v1295_v49 = vand.u32 65535, %v4788_v50 }
 0x282   :  { %v1232_v40 = vsel %vm1231_vm7, %v1227_v14, inf  ;;  %v1255_v14 = vcvt.s32.f32 %v1253_v27  ;;  %v4794_v27 = vld [vmem:[#allocation42_spill] sm:$0xff]  ;;  %v1325_v56 = vcvt.s32.f32 %v1323_v36 }
 0x283   :  { %1233 = vmin.xlane.f32.xlu0 %v1232_v40  ;;  %1803 = vmin.xlane.f32.xlu1 %v4147_v44  ;;  %v4162_v40 = vpop.xlane.xlu0 %1313  ;;  %v4790_v44 = vld [vmem:[#allocation41_spill] sm:$0xff]  ;;  %vm1287_vm11 = vcmp.eq.f32.partialorder %v4794_v27, %v4151_v35 }
 0x284   :  { %v4153_v25 = vpop.xlane.xlu1 %1271  ;;  %v1281_v41 = vand.u32 65535, %v4790_v44 }
 0x285   :  { %4786 = vst [vmem:[#allocation34_spill] sm:$0xff] %v4153_v25  ;;  %vm1273_vm8 = vcmp.eq.f32.partialorder %v4787_v63, %v4153_v25  ;;  %v4793_v63 = vld [vmem:[#allocation62_spill] sm:$0xff] }
 0x286   :  { %v1274_v53 = vsel %vm1273_vm8, %v1269_v8, inf  ;;  %v1297_v8 = vcvt.s32.f32 %v1295_v49  ;;  %v1283_v25 = vcvt.s32.f32 %v1281_v41 }
 0x287   :  { %1275 = vmin.xlane.f32.xlu0 %v1274_v53 }
 0x288   :  { %v4158_v0 = vpop.xlane.xlu1 %1257 }
 0x289   :  { %4789 = vst [vmem:[#allocation54_spill] sm:$0xff] %v4158_v0  ;;  %vm1259_vm9 = vcmp.eq.f32.partialorder %v3718_v26, %v4158_v0  ;;  %v4795_v26 = vld [vmem:[#allocation43_spill] sm:$0xff] }
 0x28a   :  { %v1260_v22 = vsel %vm1259_vm9, %v1255_v14, inf  ;;  %v1309_v53 = vand.u32 65535, %v4795_v26  ;;  %v4796_v0 = vld [vmem:[#allocation63_spill] sm:$0xff]  ;;  %v4799_v26 = vld [vmem:[#allocation64_spill] sm:$0xff] }
 0x28b   :  { %1261 = vmin.xlane.f32.xlu0 %v1260_v22  ;;  %v1351_v14 = vand.u32 65535, %v4796_v0  ;;  %v4174_v22 = vpop.xlane.xlu0 %1341  ;;  %v1379_v0 = vand.u32 65535, %v4799_v26 }
 0x28c   :  { %v4166_v7 = vpop.xlane.xlu1 %1299  ;;  %v1311_v54 = vcvt.s32.f32 %v1309_v53 }
 0x28d   :  { %4792 = vst [vmem:[#allocation55_spill] sm:$0xff] %v4166_v7  ;;  %vm1301_vm10 = vcmp.eq.f32.partialorder %v4793_v63, %v4166_v7  ;;  %v1288_v63 = vsel %vm1287_vm11, %v1283_v25, inf  ;;  %v1353_v7 = vcvt.s32.f32 %v1351_v14  ;;  %v4800_v25 = vld [vmem:[#allocation46_spill] sm:$0xff]  ;;  %v1381_v14 = vcvt.s32.f32 %v1379_v0 }
 0x28e   :  { %v1302_v50 = vsel %vm1301_vm10, %v1297_v8, inf  ;;  %v4797_v8 = vld [vmem:[#allocation44_spill] sm:$0xff]  ;;  %vm1343_vm15 = vcmp.eq.f32.partialorder %v4800_v25, %v4174_v22 }
 0x28f   :  { %1303 = vmin.xlane.f32.xlu0 %v1302_v50  ;;  %vm1315_vm13 = vcmp.eq.f32.partialorder %v4797_v8, %v4162_v40  ;;  %v4798_v50 = vld [vmem:[#allocation45_spill] sm:$0xff]  ;;  %v4188_v41 = vpop.xlane.xlu0 %1369 }
 0x290   :  { %v4176_v44 = vpop.xlane.xlu1 %1327  ;;  %v1337_v27 = vand.u32 65535, %v4798_v50  ;;  %v1316_v36 = vsel %vm1315_vm13, %v1311_v54, inf  ;;  %v4803_v54 = vld [vmem:[#allocation49_spill] sm:$0xff] }
 0x291   :  { %vm1329_vm12 = vcmp.eq.f32.partialorder %v3738_v10, %v4176_v44  ;;  %v1393_v26 = vand.u32 65535, %v4803_v54  ;;  %v4806_v54 = vld [vmem:[#allocation66_spill] sm:$0xff] }
 0x292   :  { %v1330_v49 = vsel %vm1329_vm12, %v1325_v56, inf  ;;  %v4801_v56 = vld [vmem:[#allocation47_spill] sm:$0xff]  ;;  %v1339_v53 = vcvt.s32.f32 %v1337_v27 }
 0x293   :  { %1331 = vmin.xlane.f32.xlu1 %v1330_v49  ;;  %1289 = vmin.xlane.f32.xlu0 %v1288_v63  ;;  %v1365_v49 = vand.u32 65535, %v4801_v56  ;;  %v1407_v63 = vand.u32 65535, %v3750_v29  ;;  %v4202_v25 = vpop.xlane.xlu0 %1397 }
 0x294   :  { %v4184_v35 = vpop.xlane.xlu1 %1355  ;;  %v1344_v50 = vsel %vm1343_vm15, %v1339_v53, inf  ;;  %v1421_v53 = vand.u32 65535, %v3771_v34 }
 0x295   :  { %vm1357_vm14 = vcmp.eq.f32.partialorder %v3746_v52, %v4184_v35  ;;  %v1409_v0 = vcvt.s32.f32 %v1407_v63  ;;  %v1367_v27 = vcvt.s32.f32 %v1365_v49 }
 0x296   :  { %v1358_v10 = vsel %vm1357_vm14, %v1353_v7, inf  ;;  %v4802_v7 = vld [vmem:[#allocation48_spill] sm:$0xff] }
 0x297   :  { %1359 = vmin.xlane.f32.xlu1 %v1358_v10  ;;  %1317 = vmin.xlane.f32.xlu0 %v1316_v36  ;;  %vm1371_vm1 = vcmp.eq.f32.partialorder %v4802_v7, %v4188_v41  ;;  %v4804_v10 = vld [vmem:[#allocation65_spill] sm:$0xff]  ;;  %v1395_v7 = vcvt.s32.f32 %v1393_v26 }
 0x298   :  { %v4194_v8 = vpop.xlane.xlu1 %1383  ;;  %v1435_v36 = vand.u32 65535, %v4804_v10  ;;  %v1372_v56 = vsel %vm1371_vm1, %v1367_v27, inf  ;;  %v1423_v27 = vcvt.s32.f32 %v1421_v53 }
 0x299   :  { %vm1385_vm0 = vcmp.eq.f32.partialorder %v3757_v59, %v4194_v8 }
 0x29a   :  { %v1386_v52 = vsel %vm1385_vm0, %v1381_v14, inf  ;;  %v4805_v14 = vld [vmem:[#allocation50_spill] sm:$0xff] }
 0x29b   :  { %1387 = vmin.xlane.f32.xlu1 %v1386_v52  ;;  %1345 = vmin.xlane.f32.xlu0 %v1344_v50  ;;  %vm1399_vm3 = vcmp.eq.f32.partialorder %v4805_v14, %v4202_v25  ;;  %v1437_v50 = vcvt.s32.f32 %v1435_v36 }
 0x29c   :  { %v4204_v29 = vpop.xlane.xlu1 %1411  ;;  %v1400_v63 = vsel %vm1399_vm3, %v1395_v7, inf  ;;  %v4812_v7 = vld [vmem:[#allocation70_spill] sm:$0xff] }
 0x29d   :  { %vm1413_vm2 = vcmp.eq.f32.partialorder %v3768_v31, %v4204_v29  ;;  %v4807_v31 = vld [vmem:[#allocation67_spill] sm:$0xff] }
 0x29e   :  { %v1414_v59 = vsel %vm1413_vm2, %v1409_v0, inf  ;;  %v1463_v10 = vand.u32 65535, %v4807_v31  ;;  %v1477_v31 = vand.u32 65535, %v3812_v23 }
 0x29f   :  { %1415 = vmin.xlane.f32.xlu1 %v1414_v59  ;;  %1373 = vmin.xlane.f32.xlu0 %v1372_v56  ;;  %v4809_v59 = vld [vmem:[#allocation68_spill] sm:$0xff]  ;;  %v4810_v56 = vld [vmem:[#allocation69_spill] sm:$0xff] }
 0x2a0   :  { %v4211_v52 = vpop.xlane.xlu1 %1439  ;;  %v1449_v36 = vand.u32 65535, %v4810_v56  ;;  %v1465_v14 = vcvt.s32.f32 %v1463_v10  ;;  %v928_v56 = vcvt.f32.s32 %v3836_v46 }
 0x2a1   :  { %vm1441_vm4 = vcmp.eq.f32.partialorder %v4806_v54, %v4211_v52  ;;  %v1491_v54 = vand.u32 65535, %v4812_v7 }
 0x2a2   :  { %v1442_v49 = vsel %vm1441_vm4, %v1437_v50, inf  ;;  %v1451_v53 = vcvt.s32.f32 %v1449_v36 }
 0x2a3   :  { %1443 = vmin.xlane.f32.xlu1 %v1442_v49  ;;  %1401 = vmin.xlane.f32.xlu0 %v1400_v63 }
 0x2a4   :  { %v4216_v0 = vpop.xlane.xlu1 %1425 }
 0x2a5   :  { %4808 = vst [vmem:[#allocation56_spill] sm:$0xff] %v4216_v0  ;;  %vm1427_vm5 = vcmp.eq.f32.partialorder %v4809_v59, %v4216_v0 }
 0x2a6   :  { %v1428_v34 = vsel %vm1427_vm5, %v1423_v27, inf  ;;  %v4814_v27 = vld [vmem:[#allocation71_spill] sm:$0xff] }
 0x2a7   :  { %1429 = vmin.xlane.f32.xlu0 %v1428_v34  ;;  %v942_v59 = vcvt.f32.s32 %v4814_v27 }
 0x2a8   :  { %v4221_v26 = vpop.xlane.xlu1 %1467 }
 0x2a9   :  { %4811 = vst [vmem:[#allocation57_spill] sm:$0xff] %v4221_v26  ;;  %vm1469_vm6 = vcmp.eq.f32.partialorder %v3799_v6, %v4221_v26  ;;  %v1493_v6 = vcvt.s32.f32 %v1491_v54  ;;  %v4818_v26 = vld [vmem:[#allocation12_spill] sm:$0xff] }
 0x2aa   :  { %v1470_v50 = vsel %vm1469_vm6, %v1465_v14, inf  ;;  %v956_v0 = vcvt.f32.s32 %v4818_v26 }
 0x2ab   :  { %1471 = vmin.xlane.f32.xlu1 %v1470_v50  ;;  %v943_v50 = vshll.u32 %v942_v59, 16 }
 0x2ac   :  { %v4226_v49 = vpop.xlane.xlu1 %1453 }
 0x2ad   :  { %4813 = vst [vmem:[#allocation58_spill] sm:$0xff] %v4226_v49  ;;  %vm1455_vm7 = vcmp.eq.f32.partialorder %v3809_v57, %v4226_v49  ;;  %v1519_v57 = vand.u32 65535, %v3828_v5 }
 0x2ae   :  { %v1456_v63 = vsel %vm1455_vm7, %v1451_v53, inf  ;;  %v1479_v53 = vcvt.s32.f32 %v1477_v31  ;;  %v4819_v31 = vld [vmem:[#allocation74_spill] sm:$0xff] }
 0x2af   :  { %1457 = vmin.xlane.f32.xlu0 %v1456_v63  ;;  %v929_v63 = vshll.u32 %v928_v56, 16  ;;  %v1521_v59 = vcvt.s32.f32 %v1519_v57  ;;  %v3131_v56 = vmov 1.0  }
 0x2b0   :  { %v4232_v10 = vpop.xlane.xlu1 %1495  ;;  %v940_v34 = vpop.xlane.xlu0 %939 }
 0x2b1   :  { %4815 = vst [vmem:[#allocation59_spill] sm:$0xff] %v4232_v10  ;;  %vm1497_vm8 = vcmp.eq.f32.partialorder %v3823_v55, %v4232_v10  ;;  %v941_v14 = vcvt.f32.s32 %v940_v34  ;;  %v4816_v55 = vld [vmem:[#allocation72_spill] sm:$0xff] }
 0x2b2   :  { %v1498_v36 = vsel %vm1497_vm8, %v1493_v6, inf  ;;  %v1505_v34 = vand.u32 65535, %v4816_v55  ;;  %v4817_v6 = vld [vmem:[#allocation73_spill] sm:$0xff] }
 0x2b3   :  { %1499 = vmin.xlane.f32.xlu1 %v1498_v36  ;;  %v944_v27 = vadd.s32 %v943_v50, %v941_v14  ;;  %v970_v36 = vcvt.f32.s32 %v4817_v6  ;;  %v4820_v50 = vld [vmem:[#allocation75_spill] sm:$0xff] }
 0x2b4   :  { %v4238_v7 = vpop.xlane.xlu1 %1481  ;;  %v926_v23 = vpop.xlane.xlu0 %925 }
 0x2b5   :  { %vm1483_vm9 = vcmp.eq.f32.partialorder %v3839_v60, %v4238_v7  ;;  %v927_v54 = vcvt.f32.s32 %v926_v23  ;;  %vm1814_vm12 = vcmp.eq.s32.totalorder %v3396_v9, %v944_v27  ;;  %v1547_v23 = vand.u32 65535, %v4820_v50 }
 0x2b6   :  { %v1484_v46 = vsel %vm1483_vm9, %v1479_v53, inf  ;;  %v971_v57 = vshll.u32 %v970_v36, 16  ;;  %v1533_v27 = vand.u32 65535, %v3874_v58 }
 0x2b7   :  { %1485 = vmin.xlane.f32.xlu0 %v1484_v46  ;;  %v930_v49 = vadd.s32 %v929_v63, %v927_v54  ;;  %v1507_v63 = vcvt.s32.f32 %v1505_v34  ;;  %v957_v54 = vshll.u32 %v956_v0, 16  ;;  %v4822_v0 = vld [vmem:[#allocation25_spill] sm:$0xff] }
 0x2b8   :  { %v4244_v10 = vpop.xlane.xlu1 %1523  ;;  %v968_v5 = vpop.xlane.xlu0 %967 }
 0x2b9   :  { %vm1525_vm10 = vcmp.eq.f32.partialorder %v4819_v31, %v4244_v10  ;;  %vm1813_vm11 = vcmp.eq.s32.totalorder %v3396_v9, %v930_v49  ;;  %v969_v60 = vcvt.f32.s32 %v968_v5  ;;  %v998_v5 = vcvt.f32.s32 %v3882_v18  ;;  %v4823_v18 = vld [vmem:[#allocation26_spill] sm:$0xff] }
 0x2ba   :  { %2937 = vmatprep.mubr.msk.f32.mxu1 %vm1813_vm11, %v3131_v56  ;;  %v1526_v14 = vsel %vm1525_vm10, %v1521_v59, inf  ;;  %v1549_v31 = vcvt.s32.f32 %v1547_v23  ;;  %v1575_v58 = vand.u32 65535, %v4823_v18 }
 0x2bb   :  { %1527 = vmin.xlane.f32.xlu1 %v1526_v14  ;;  %2938 = vmatmul.mubr.msk.f32.vlgmr.msra.gmra.mxu1 %vm1814_vm12, %v3131_v56  ;;  %v972_v46 = vadd.s32 %v971_v57, %v969_v60  ;;  %v4821_v14 = vld [vmem:[#allocation13_spill] sm:$0xff]  ;;  %v999_v60 = vshll.u32 %v998_v5, 16 }
 0x2bc   :  { %v4254_v53 = vpop.xlane.xlu1 %1509  ;;  %v954_v26 = vpop.xlane.xlu0 %953  ;;  %v984_v50 = vcvt.f32.s32 %v4821_v14  ;;  %v1577_v14 = vcvt.s32.f32 %v1575_v58 }
 0x2bd   :  { %vm1511_vm13 = vcmp.eq.f32.partialorder %v3869_v16, %v4254_v53  ;;  %v955_v49 = vcvt.f32.s32 %v954_v26  ;;  %vm1816_vm0 = vcmp.eq.s32.totalorder %v3396_v9, %v972_v46  ;;  %v1535_v26 = vcvt.s32.f32 %v1533_v27 }
 0x2be   :  { %v1512_v55 = vsel %vm1511_vm13, %v1507_v63, inf  ;;  %v985_v63 = vshll.u32 %v984_v50, 16  ;;  %v1561_v46 = vand.u32 65535, %v3904_v38 }
 0x2bf   :  { %v958_v6 = vadd.s32 %v957_v54, %v955_v49  ;;  %1513 = vmin.xlane.f32.xlu0 %v1512_v55 }
 0x2c0   :  { %v4260_v59 = vpop.xlane.xlu1 %1551  ;;  %v996_v36 = vpop.xlane.xlu0 %995 }
 0x2c1   :  { %vm1553_vm14 = vcmp.eq.f32.partialorder %v4822_v0, %v4260_v59  ;;  %vm1815_vm15 = vcmp.eq.s32.totalorder %v3396_v9, %v958_v6  ;;  %v997_v16 = vcvt.f32.s32 %v996_v36  ;;  %v1026_v36 = vcvt.f32.s32 %v3912_v39 }
 0x2c2   :  { %2940 = vmatprep.mubr.msk.f32.mxu1 %vm1815_vm15, %v3131_v56  ;;  %v1554_v34 = vsel %vm1553_vm14, %v1549_v31, inf  ;;  %v1012_v0 = vcvt.f32.s32 %v3928_v62  ;;  %v1603_v39 = vand.u32 65535, %v3920_v19 }
 0x2c3   :  { %1555 = vmin.xlane.f32.xlu1 %v1554_v34  ;;  %2941 = vmatmul.mubr.msk.f32.gmra.mxu1 %vm1816_vm0, %v3131_v56  ;;  %v1000_v49 = vadd.s32 %v999_v60, %v997_v16  ;;  %v1027_v38 = vshll.u32 %v1026_v36, 16  ;;  %v1563_v16 = vcvt.s32.f32 %v1561_v46 }
 0x2c4   :  { %v4270_v23 = vpop.xlane.xlu1 %1537  ;;  %v982_v57 = vpop.xlane.xlu0 %981  ;;  %v1013_v34 = vshll.u32 %v1012_v0, 16  ;;  %v4826_v0 = vld [vmem:[#allocation30_spill] sm:$0xff] }
 0x2c5   :  { %vm1539_vm1 = vcmp.eq.f32.partialorder %v3899_v13, %v4270_v23  ;;  %v983_v54 = vcvt.f32.s32 %v982_v57  ;;  %vm1818_vm4 = vcmp.eq.s32.totalorder %v3396_v9, %v1000_v49  ;;  %v1589_v57 = vand.u32 65535, %v3936_v3  ;;  %v4825_v3 = vld [vmem:[#allocation14_spill] sm:$0xff] }
 0x2c6   :  { %v1540_v55 = vsel %vm1539_vm1, %v1535_v26, inf  ;;  %v1054_v26 = vcvt.f32.s32 %v3942_v45  ;;  %v1040_v49 = vcvt.f32.s32 %v3958_v15  ;;  %v1631_v45 = vand.u32 65535, %v4825_v3 }
 0x2c7   :  { %v986_v6 = vadd.s32 %v985_v63, %v983_v54  ;;  %1541 = vmin.xlane.f32.xlu0 %v1540_v55  ;;  %v1605_v54 = vcvt.s32.f32 %v1603_v39  ;;  %v4824_v55 = vld [vmem:[#allocation28_spill] sm:$0xff] }
 0x2c8   :  { %v4276_v31 = vpop.xlane.xlu1 %1579  ;;  %v1024_v5 = vpop.xlane.xlu0 %1023  ;;  %v1055_v46 = vshll.u32 %v1054_v26, 16  ;;  %v1068_v26 = vcvt.f32.s32 %v3988_v61 }
 0x2c9   :  { %vm1581_vm2 = vcmp.eq.f32.partialorder %v3915_v12, %v4276_v31  ;;  %vm1817_vm3 = vcmp.eq.s32.totalorder %v3396_v9, %v986_v6  ;;  %v1025_v13 = vcvt.f32.s32 %v1024_v5  ;;  %v1591_v5 = vcvt.s32.f32 %v1589_v57  ;;  %v4829_v57 = vld [vmem:[#allocation16_spill] sm:$0xff] }
 0x2ca   :  { %2943 = vmatprep.mubr.msk.f32.mxu1 %vm1817_vm3, %v3131_v56  ;;  %v1582_v27 = vsel %vm1581_vm2, %v1577_v14, inf  ;;  %v1041_v14 = vshll.u32 %v1040_v49, 16  ;;  %v4830_v49 = vld [vmem:[#allocation17_spill] sm:$0xff] }
 0x2cb   :  { %1583 = vmin.xlane.f32.xlu1 %v1582_v27  ;;  %2944 = vmatmul.mubr.msk.f32.gmra.mxu1 %vm1818_vm4, %v3131_v56  ;;  %v1028_v18 = vadd.s32 %v1027_v38, %v1025_v13 }
 0x2cc   :  { %v4286_v50 = vpop.xlane.xlu1 %1565  ;;  %v1010_v62 = vpop.xlane.xlu0 %1009 }
 0x2cd   :  { %vm1567_vm5 = vcmp.eq.f32.partialorder %v3931_v4, %v4286_v50  ;;  %v1011_v12 = vcvt.f32.s32 %v1010_v62  ;;  %vm1820_vm8 = vcmp.eq.s32.totalorder %v3396_v9, %v1028_v18  ;;  %v4827_v62 = vld [vmem:[#allocation15_spill] sm:$0xff] }
 0x2ce   :  { %v1568_v58 = vsel %vm1567_vm5, %v1563_v16, inf  ;;  %v1617_v16 = vand.u32 65535, %v4827_v62 }
 0x2cf   :  { %v1014_v60 = vadd.s32 %v1013_v34, %v1011_v12  ;;  %1569 = vmin.xlane.f32.xlu0 %v1568_v58  ;;  %v4828_v34 = vld [vmem:[#allocation32_spill] sm:$0xff] }
 0x2d0   :  { %v4292_v63 = vpop.xlane.xlu1 %1607  ;;  %v1052_v19 = vpop.xlane.xlu0 %1051  ;;  %v1082_v12 = vcvt.f32.s32 %v4828_v34  ;;  %v1619_v3 = vcvt.s32.f32 %v1617_v16  ;;  %v1096_v34 = vcvt.f32.s32 %v4016_v33 }
 0x2d1   :  { %vm1609_vm6 = vcmp.eq.f32.partialorder %v4824_v55, %v4292_v63  ;;  %vm1819_vm7 = vcmp.eq.s32.totalorder %v3396_v9, %v1014_v60  ;;  %v1053_v4 = vcvt.f32.s32 %v1052_v19  ;;  %v1633_v60 = vcvt.s32.f32 %v1631_v45 }
 0x2d2   :  { %2946 = vmatprep.mubr.msk.f32.mxu1 %vm1819_vm7, %v3131_v56  ;;  %v1610_v6 = vsel %vm1609_vm6, %v1605_v54, inf  ;;  %v1659_v55 = vand.u32 65535, %v4830_v49  ;;  %v1069_v45 = vshll.u32 %v1068_v26, 16  ;;  %v1097_v26 = vshll.u32 %v1096_v34, 16  ;;  %v4832_v49 = vld [vmem:[#allocation19_spill] sm:$0xff] }
 0x2d3   :  { %1611 = vmin.xlane.f32.xlu1 %v1610_v6  ;;  %2947 = vmatmul.mubr.msk.f32.gmra.mxu1 %vm1820_vm8, %v3131_v56  ;;  %v1056_v27 = vadd.s32 %v1055_v46, %v1053_v4  ;;  %v1083_v4 = vshll.u32 %v1082_v12, 16  ;;  %v1701_v34 = vand.u32 65535, %v4052_v51  ;;  %v4834_v51 = vld [vmem:[#allocation37_spill] sm:$0xff] }
 0x2d4   :  { %v4302_v36 = vpop.xlane.xlu1 %1593  ;;  %v1038_v15 = vpop.xlane.xlu0 %1037  ;;  %v1661_v62 = vcvt.s32.f32 %v1659_v55  ;;  %v1673_v55 = vand.u32 65535, %v4832_v49 }
 0x2d5   :  { %vm1595_vm9 = vcmp.eq.f32.partialorder %v4826_v0, %v4302_v36  ;;  %v1039_v13 = vcvt.f32.s32 %v1038_v15  ;;  %vm1822_vm12 = vcmp.eq.s32.totalorder %v3396_v9, %v1056_v27  ;;  %v4831_v0 = vld [vmem:[#allocation18_spill] sm:$0xff]  ;;  %v1110_v27 = vcvt.f32.s32 %v4002_v32 }
 0x2d6   :  { %v1596_v39 = vsel %vm1595_vm9, %v1591_v5, inf  ;;  %v1687_v32 = vand.u32 65535, %v4010_v24 }
 0x2d7   :  { %v1042_v38 = vadd.s32 %v1041_v14, %v1039_v13  ;;  %1597 = vmin.xlane.f32.xlu0 %v1596_v39  ;;  %v1645_v13 = vand.u32 65535, %v4831_v0  ;;  %v1111_v12 = vshll.u32 %v1110_v27, 16  ;;  %v1675_v0 = vcvt.s32.f32 %v1673_v55 }
 0x2d8   :  { %v4308_v18 = vpop.xlane.xlu1 %1635  ;;  %v1080_v58 = vpop.xlane.xlu0 %1079 }
 0x2d9   :  { %vm1637_vm10 = vcmp.eq.f32.partialorder %v4829_v57, %v4308_v18  ;;  %vm1821_vm11 = vcmp.eq.s32.totalorder %v3396_v9, %v1042_v38  ;;  %v1081_v19 = vcvt.f32.s32 %v1080_v58 }
 0x2da   :  { %2949 = vmatprep.mubr.msk.f32.mxu1 %vm1821_vm11, %v3131_v56  ;;  %v1638_v54 = vsel %vm1637_vm10, %v1633_v60, inf  ;;  %v1647_v60 = vcvt.s32.f32 %v1645_v13 }
 0x2db   :  { %1639 = vmin.xlane.f32.xlu1 %v1638_v54  ;;  %2950 = vmatmul.mubr.msk.f32.gmra.mxu1 %vm1822_vm12, %v3131_v56  ;;  %v1084_v15 = vadd.s32 %v1083_v4, %v1081_v19  ;;  %v1138_v4 = vcvt.f32.s32 %v4030_v11  ;;  %v4833_v11 = vld [vmem:[#allocation36_spill] sm:$0xff] }
 0x2dc   :  { %v4318_v6 = vpop.xlane.xlu1 %1621  ;;  %v1066_v61 = vpop.xlane.xlu0 %1065 }
 0x2dd   :  { %vm1623_vm13 = vcmp.eq.f32.partialorder %v3991_v47, %v4318_v6  ;;  %v1067_v46 = vcvt.f32.s32 %v1066_v61  ;;  %vm1824_vm0 = vcmp.eq.s32.totalorder %v3396_v9, %v1084_v15  ;;  %v1715_v15 = vand.u32 65535, %v4833_v11 }
 0x2de   :  { %v1624_v5 = vsel %vm1623_vm13, %v1619_v3, inf  ;;  %v1689_v3 = vcvt.s32.f32 %v1687_v32 }
 0x2df   :  { %v1070_v14 = vadd.s32 %v1069_v45, %v1067_v46  ;;  %1625 = vmin.xlane.f32.xlu0 %v1624_v5  ;;  %v1124_v45 = vcvt.f32.s32 %v4044_v43  ;;  %v1139_v5 = vshll.u32 %v1138_v4, 16 }
 0x2e0   :  { %v4324_v39 = vpop.xlane.xlu1 %1663  ;;  %v1108_v38 = vpop.xlane.xlu0 %1107 }
 0x2e1   :  { %vm1665_vm14 = vcmp.eq.f32.partialorder %v4005_v48, %v4324_v39  ;;  %vm1823_vm15 = vcmp.eq.s32.totalorder %v3396_v9, %v1070_v14  ;;  %v1109_v47 = vcvt.f32.s32 %v1108_v38  ;;  %v1125_v13 = vshll.u32 %v1124_v45, 16 }
 0x2e2   :  { %2952 = vmatprep.mubr.msk.f32.mxu1 %vm1823_vm15, %v3131_v56  ;;  %v1666_v16 = vsel %vm1665_vm14, %v1661_v62, inf  ;;  %v1194_v45 = vcvt.f32.s32 %v4083_v28  ;;  %v4838_v28 = vld [vmem:[#allocation21_spill] sm:$0xff] }
 0x2e3   :  { %1667 = vmin.xlane.f32.xlu1 %v1666_v16  ;;  %2953 = vmatmul.mubr.msk.f32.gmra.mxu1 %vm1824_vm0, %v3131_v56  ;;  %v1112_v57 = vadd.s32 %v1111_v12, %v1109_v47  ;;  %v1166_v47 = vcvt.f32.s32 %v4057_v37  ;;  %v1717_v12 = vcvt.s32.f32 %v1715_v15  ;;  %v1743_v37 = vand.u32 65535, %v4834_v51 }
 0x2e4   :  { %v4334_v58 = vpop.xlane.xlu1 %1649  ;;  %v1094_v33 = vpop.xlane.xlu0 %1093  ;;  %v1180_v15 = vcvt.f32.s32 %v4096_v1 }
 0x2e5   :  { %vm1651_vm1 = vcmp.eq.f32.partialorder %v4019_v30, %v4334_v58  ;;  %v1095_v48 = vcvt.f32.s32 %v1094_v33  ;;  %vm1826_vm4 = vcmp.eq.s32.totalorder %v3396_v9, %v1112_v57  ;;  %v1152_v33 = vcvt.f32.s32 %v4070_v42 }
 0x2e6   :  { %v1652_v19 = vsel %vm1651_vm1, %v1647_v60, inf  ;;  %v1703_v57 = vcvt.s32.f32 %v1701_v34  ;;  %v1745_v11 = vcvt.s32.f32 %v1743_v37 }
 0x2e7   :  { %v1098_v54 = vadd.s32 %v1097_v26, %v1095_v48  ;;  %1653 = vmin.xlane.f32.xlu0 %v1652_v19  ;;  %v1167_v26 = vshll.u32 %v1166_v47, 16  ;;  %v1153_v19 = vshll.u32 %v1152_v33, 16  ;;  %v4839_v33 = vld [vmem:[#allocation40_spill] sm:$0xff] }
 0x2e8   :  { %v4340_v61 = vpop.xlane.xlu1 %1691  ;;  %v1136_v24 = vpop.xlane.xlu0 %1135 }
 0x2e9   :  { %vm1693_vm2 = vcmp.eq.f32.partialorder %v4033_v21, %v4340_v61  ;;  %vm1825_vm3 = vcmp.eq.s32.totalorder %v3396_v9, %v1098_v54  ;;  %v1137_v30 = vcvt.f32.s32 %v1136_v24  ;;  %v4836_v24 = vld [vmem:[#allocation38_spill] sm:$0xff] }
 0x2ea   :  { %2955 = vmatprep.mubr.msk.f32.mxu1 %vm1825_vm3, %v3131_v56  ;;  %v1694_v46 = vsel %vm1693_vm2, %v1689_v3, inf  ;;  %v1729_v3 = vand.u32 65535, %v4836_v24 }
 0x2eb   :  { %1695 = vmin.xlane.f32.xlu1 %v1694_v46  ;;  %2956 = vmatmul.mubr.msk.f32.gmra.mxu1 %vm1826_vm4, %v3131_v56  ;;  %v1140_v27 = vadd.s32 %v1139_v5, %v1137_v30  ;;  %v4837_v5 = vld [vmem:[#allocation39_spill] sm:$0xff] }
 0x2ec   :  { %v4350_v14 = vpop.xlane.xlu1 %1677  ;;  %v1122_v43 = vpop.xlane.xlu0 %1121 }
 0x2ed   :  { %vm1679_vm5 = vcmp.eq.f32.partialorder %v4047_v17, %v4350_v14  ;;  %v1123_v21 = vcvt.f32.s32 %v1122_v43  ;;  %vm1828_vm8 = vcmp.eq.s32.totalorder %v3396_v9, %v1140_v27 }
 0x2ee   :  { %v1680_v38 = vsel %vm1679_vm5, %v1675_v0, inf }
 0x2ef   :  { %v1126_v62 = vadd.s32 %v1125_v13, %v1123_v21  ;;  %1681 = vmin.xlane.f32.xlu0 %v1680_v38  ;;  %v1771_v13 = vand.u32 65535, %v4838_v28  ;;  %v1195_v21 = vshll.u32 %v1194_v45, 16  ;;  %v1731_v38 = vcvt.s32.f32 %v1729_v3  ;;  %v4845_v28 = vld [vmem:[#allocation31_spill] sm:$0xff] }
 0x2f0   :  { %v4356_v16 = vpop.xlane.xlu1 %1719  ;;  %v1164_v32 = vpop.xlane.xlu0 %1163 }
 0x2f1   :  { %vm1721_vm6 = vcmp.eq.f32.partialorder %v4060_v2, %v4356_v16  ;;  %vm1827_vm7 = vcmp.eq.s32.totalorder %v3396_v9, %v1126_v62  ;;  %v1165_v17 = vcvt.f32.s32 %v1164_v32  ;;  %v4835_v2 = vld [vmem:[#allocation20_spill] sm:$0xff]  ;;  %v1181_v62 = vshll.u32 %v1180_v15, 16 }
 0x2f2   :  { %2958 = vmatprep.mubr.msk.f32.mxu1 %vm1827_vm7, %v3131_v56  ;;  %v1722_v60 = vsel %vm1721_vm6, %v1717_v12, inf }
 0x2f3   :  { %1723 = vmin.xlane.f32.xlu1 %v1722_v60  ;;  %2959 = vmatmul.mubr.msk.f32.gmra.mxu1 %vm1828_vm8, %v3131_v56  ;;  %v1168_v49 = vadd.s32 %v1167_v26, %v1165_v17  ;;  %v1757_v17 = vand.u32 65535, %v4839_v33  ;;  %v4840_v60 = vld [vmem:[#allocation22_spill] sm:$0xff] }
 0x2f4   :  { %v4366_v48 = vpop.xlane.xlu1 %1705  ;;  %v1150_v42 = vpop.xlane.xlu0 %1149  ;;  %v1222_v51 = vcvt.f32.s32 %v4840_v60 }
 0x2f5   :  { %vm1707_vm9 = vcmp.eq.f32.partialorder %v4835_v2, %v4366_v48  ;;  %v1151_v54 = vcvt.f32.s32 %v1150_v42  ;;  %vm1830_vm12 = vcmp.eq.s32.totalorder %v3396_v9, %v1168_v49  ;;  %v1773_v42 = vcvt.s32.f32 %v1771_v13  ;;  %v4842_v2 = vld [vmem:[#allocation23_spill] sm:$0xff]  ;;  %v4843_v49 = vld [vmem:[#allocation24_spill] sm:$0xff] }
 0x2f6   :  { %v1708_v55 = vsel %vm1707_vm9, %v1703_v57, inf  ;;  %v4841_v57 = vld [vmem:[#allocation27_spill] sm:$0xff]  ;;  %v1759_v45 = vcvt.s32.f32 %v1757_v17  ;;  %v1799_v13 = vand.u32 65535, %v4845_v28 }
 0x2f7   :  { %v1154_v4 = vadd.s32 %v1153_v19, %v1151_v54  ;;  %1709 = vmin.xlane.f32.xlu0 %v1708_v55  ;;  %v1208_v19 = vcvt.f32.s32 %v4841_v57  ;;  %v1785_v55 = vand.u32 65535, %v4843_v49 }
 0x2f8   :  { %v4372_v30 = vpop.xlane.xlu1 %1747  ;;  %v1192_v46 = vpop.xlane.xlu0 %1191 }
 0x2f9   :  { %vm1749_vm10 = vcmp.eq.f32.partialorder %v4837_v5, %v4372_v30  ;;  %vm1829_vm11 = vcmp.eq.s32.totalorder %v3396_v9, %v1154_v4  ;;  %v1193_v43 = vcvt.f32.s32 %v1192_v46  ;;  %v1223_v4 = vshll.u32 %v1222_v51, 16 }
 0x2fa   :  { %2961 = vmatprep.mubr.msk.f32.mxu1 %vm1829_vm11, %v3131_v56  ;;  %v1750_v0 = vsel %vm1749_vm10, %v1745_v11, inf  ;;  %v1209_v46 = vshll.u32 %v1208_v19, 16  ;;  %v4844_v11 = vld [vmem:[#allocation29_spill] sm:$0xff]  ;;  %v4849_v19 = vld [vmem:[#allocation35_spill] sm:$0xff] }
 0x2fb   :  { %1751 = vmin.xlane.f32.xlu1 %v1750_v0  ;;  %2962 = vmatmul.mubr.msk.f32.gmra.mxu1 %vm1830_vm12, %v3131_v56  ;;  %v1196_v47 = vadd.s32 %v1195_v21, %v1193_v43  ;;  %v4846_v21 = vld [vmem:[#allocation33_spill] sm:$0xff] }
 0x2fc   :  { %v4382_v27 = vpop.xlane.xlu1 %1733  ;;  %v1178_v1 = vpop.xlane.xlu0 %1177 }
 0x2fd   :  { %vm1735_vm13 = vcmp.eq.f32.partialorder %v4099_v20, %v4382_v27  ;;  %v1179_v34 = vcvt.f32.s32 %v1178_v1  ;;  %vm1832_vm0 = vcmp.eq.s32.totalorder %v3396_v9, %v1196_v47  ;;  %v1250_v1 = vcvt.f32.s32 %v4846_v21  ;;  %v4847_v47 = vld [vmem:[#allocation52_spill] sm:$0xff]  ;;  %v4852_v21 = vld [vmem:[#allocation55_spill] sm:$0xff] }
 0x2fe   :  { %v1736_v32 = vsel %vm1735_vm13, %v1731_v38, inf }
 0x2ff   :  { %v1182_v12 = vadd.s32 %v1181_v62, %v1179_v34  ;;  %1737 = vmin.xlane.f32.xlu0 %v1736_v32  ;;  %v1787_v34 = vcvt.s32.f32 %v1785_v55  ;;  %v1236_v32 = vcvt.f32.s32 %v4847_v47  ;;  %v1251_v60 = vshll.u32 %v1250_v1, 16  ;;  %v4850_v55 = vld [vmem:[#allocation34_spill] sm:$0xff] }
 0x300   :  { %v4388_v37 = vpop.xlane.xlu1 %1775  ;;  %v1220_v26 = vpop.xlane.xlu0 %1219  ;;  %v1306_v1 = vcvt.f32.s32 %v4852_v21 }
 0x301   :  { %vm1777_vm14 = vcmp.eq.f32.partialorder %v4842_v2, %v4388_v37  ;;  %vm1831_vm15 = vcmp.eq.s32.totalorder %v3396_v9, %v1182_v12  ;;  %v1221_v20 = vcvt.f32.s32 %v1220_v26  ;;  %v4848_v12 = vld [vmem:[#allocation51_spill] sm:$0xff]  ;;  %v1237_v57 = vshll.u32 %v1236_v32, 16 }
 0x302   :  { %2964 = vmatprep.mubr.msk.f32.mxu1 %vm1831_vm15, %v3131_v56  ;;  %v1778_v54 = vsel %vm1777_vm14, %v1773_v42, inf  ;;  %v1801_v42 = vcvt.s32.f32 %v1799_v13 }
 0x303   :  { %1779 = vmin.xlane.f32.xlu1 %v1778_v54  ;;  %2965 = vmatmul.mubr.msk.f32.gmra.mxu1 %vm1832_vm0, %v3131_v56  ;;  %v1224_v5 = vadd.s32 %v1223_v4, %v1221_v20  ;;  %v1278_v4 = vcvt.f32.s32 %v4850_v55 }
 0x304   :  { %v4398_v24 = vpop.xlane.xlu1 %1761  ;;  %v1206_v3 = vpop.xlane.xlu0 %1205 }
 0x305   :  { %vm1763_vm1 = vcmp.eq.f32.partialorder %v4844_v11, %v4398_v24  ;;  %v1207_v15 = vcvt.f32.s32 %v1206_v3  ;;  %vm1834_vm4 = vcmp.eq.s32.totalorder %v3396_v9, %v1224_v5 }
 0x306   :  { %v1764_v43 = vsel %vm1763_vm1, %v1759_v45, inf  ;;  %v4851_v45 = vld [vmem:[#allocation54_spill] sm:$0xff] }
 0x307   :  { %v1210_v0 = vadd.s32 %v1209_v46, %v1207_v15  ;;  %1765 = vmin.xlane.f32.xlu0 %v1764_v43  ;;  %v1264_v46 = vcvt.f32.s32 %v4851_v45  ;;  %v1279_v15 = vshll.u32 %v1278_v4, 16  ;;  %v1348_v45 = vcvt.f32.s32 %v4174_v22 }
 0x308   :  { %v4404_v38 = vpop.xlane.xlu1 %1789  ;;  %v1248_v62 = vpop.xlane.xlu0 %1247  ;;  %v1376_v22 = vcvt.f32.s32 %v4188_v41  ;;  %v1404_v41 = vcvt.f32.s32 %v4202_v25 }
 0x309   :  { %vm1791_vm2 = vcmp.eq.f32.partialorder %v4848_v12, %v4404_v38  ;;  %vm1833_vm3 = vcmp.eq.s32.totalorder %v3396_v9, %v1210_v0  ;;  %v1249_v33 = vcvt.f32.s32 %v1248_v62  ;;  %v1265_v43 = vshll.u32 %v1264_v46, 16 }
 0x30a   :  { %2967 = vmatprep.mubr.msk.f32.mxu1 %vm1833_vm3, %v3131_v56  ;;  %v1792_v17 = vsel %vm1791_vm2, %v1787_v34, inf  ;;  %v4853_v34 = vld [vmem:[#allocation53_spill] sm:$0xff]  ;;  %v1307_v12 = vshll.u32 %v1306_v1, 16 }
 0x30b   :  { %1793 = vmin.xlane.f32.xlu0 %v1792_v17  ;;  %2968 = vmatmul.mubr.msk.f32.gmra.mxu1 %vm1834_vm4, %v3131_v56  ;;  %v1252_v20 = vadd.s32 %v1251_v60, %v1249_v33  ;;  %v1292_v47 = vcvt.f32.s32 %v4853_v34  ;;  %v1334_v33 = vcvt.f32.s32 %v4176_v44 }
 0x30c   :  { %v4413_v51 = vpop.xlane.xlu1 %1803  ;;  %v1234_v26 = vpop.xlane.xlu0 %1233 }
 0x30d   :  { %vm1805_vm5 = vcmp.eq.f32.partialorder %v4849_v19, %v4413_v51  ;;  %v1235_v2 = vcvt.f32.s32 %v1234_v26  ;;  %vm1836_vm7 = vcmp.eq.s32.totalorder %v3396_v9, %v1252_v20  ;;  %v1293_v26 = vshll.u32 %v1292_v47, 16 }
 0x30e   :  { %v1806_v54 = vsel %vm1805_vm5, %v1801_v42, inf  ;;  %v1320_v42 = vcvt.f32.s32 %v4162_v40 }
 0x30f   :  { %v1238_v49 = vadd.s32 %v1237_v57, %v1235_v2  ;;  %1807 = vmin.xlane.f32.xlu1 %v1806_v54  ;;  %v1335_v54 = vshll.u32 %v1334_v33, 16 }
 0x310   :  { %v1276_v3 = vpop.xlane.xlu0 %1275 }
 0x311   :  { %vm1835_vm6 = vcmp.eq.s32.totalorder %v3396_v9, %v1238_v49  ;;  %v1277_v11 = vcvt.f32.s32 %v1276_v3  ;;  %v1362_v49 = vcvt.f32.s32 %v4184_v35  ;;  %v1321_v3 = vshll.u32 %v1320_v42, 16 }
 0x312   :  { %2970 = vmatprep.mubr.msk.f32.mxu1 %vm1835_vm6, %v3131_v56  ;;  %v1390_v35 = vcvt.f32.s32 %v4194_v8  ;;  %v1418_v8 = vcvt.f32.s32 %v4204_v29  ;;  %v1446_v29 = vcvt.f32.s32 %v4211_v52 }
 0x313   :  { %2971 = vmatmul.mubr.msk.f32.gmra.mxu1 %vm1836_vm7, %v3131_v56  ;;  %v1280_v28 = vadd.s32 %v1279_v15, %v1277_v11  ;;  %v1363_v15 = vshll.u32 %v1362_v49, 16 }
 0x314   :  { %v1262_v5 = vpop.xlane.xlu0 %1261 }
 0x315   :  { %v1263_v0 = vcvt.f32.s32 %v1262_v5  ;;  %vm1838_vm9 = vcmp.eq.s32.totalorder %v3396_v9, %v1280_v28 }
 0x317   :  { %v1266_v13 = vadd.s32 %v1265_v43, %v1263_v0  ;;  %v1349_v0 = vshll.u32 %v1348_v45, 16 }
 0x318   :  { %v1304_v62 = vpop.xlane.xlu0 %1303 }
 0x319   :  { %vm1837_vm8 = vcmp.eq.s32.totalorder %v3396_v9, %v1266_v13  ;;  %v1305_v32 = vcvt.f32.s32 %v1304_v62  ;;  %v1391_v62 = vshll.u32 %v1390_v35, 16  ;;  %v4856_v35 = vld [vmem:[#allocation58_spill] sm:$0xff] }
 0x31a   :  { %2973 = vmatprep.mubr.msk.f32.mxu1 %vm1837_vm8, %v3131_v56 }
 0x31b   :  { %2974 = vmatmul.mubr.msk.f32.gmra.mxu1 %vm1838_vm9, %v3131_v56  ;;  %v1308_v19 = vadd.s32 %v1307_v12, %v1305_v32  ;;  %v1377_v32 = vshll.u32 %v1376_v22, 16 }
 0x31c   :  { %v1332_v17 = vpop.xlane.xlu1 %1331  ;;  %v1290_v60 = vpop.xlane.xlu0 %1289 }
 0x31d   :  { %v1291_v57 = vcvt.f32.s32 %v1290_v60  ;;  %v1333_v2 = vcvt.f32.s32 %v1332_v17  ;;  %vm1840_vm11 = vcmp.eq.s32.totalorder %v3396_v9, %v1308_v19  ;;  %v1405_v19 = vshll.u32 %v1404_v41, 16 }
 0x31f   :  { %v1294_v20 = vadd.s32 %v1293_v26, %v1291_v57  ;;  %v1336_v44 = vadd.s32 %v1335_v54, %v1333_v2  ;;  %v1419_v26 = vshll.u32 %v1418_v8, 16  ;;  %v4854_v2 = vld [vmem:[#allocation56_spill] sm:$0xff] }
 0x320   :  { %v1360_v55 = vpop.xlane.xlu1 %1359  ;;  %v1318_v4 = vpop.xlane.xlu0 %1317  ;;  %v1432_v25 = vcvt.f32.s32 %v4854_v2 }
 0x321   :  { %v1319_v46 = vcvt.f32.s32 %v1318_v4  ;;  %vm1839_vm10 = vcmp.eq.s32.totalorder %v3396_v9, %v1294_v20  ;;  %v1361_v11 = vcvt.f32.s32 %v1360_v55  ;;  %vm1842_vm13 = vcmp.eq.s32.totalorder %v3396_v9, %v1336_v44 }
 0x322   :  { %2976 = vmatprep.mubr.msk.f32.mxu1 %vm1839_vm10, %v3131_v56  ;;  %v1447_v4 = vshll.u32 %v1446_v29, 16  ;;  %v1433_v52 = vshll.u32 %v1432_v25, 16  ;;  %v1530_v29 = vcvt.f32.s32 %v4244_v10  ;;  %v1558_v10 = vcvt.f32.s32 %v4260_v59 }
 0x323   :  { %v1322_v40 = vadd.s32 %v1321_v3, %v1319_v46  ;;  %2977 = vmatmul.mubr.msk.f32.gmra.mxu1 %vm1840_vm11, %v3131_v56  ;;  %v1364_v13 = vadd.s32 %v1363_v15, %v1361_v11  ;;  %v4855_v11 = vld [vmem:[#allocation57_spill] sm:$0xff]  ;;  %v1586_v59 = vcvt.f32.s32 %v4276_v31  ;;  %v1614_v31 = vcvt.f32.s32 %v4292_v63 }
 0x324   :  { %v1388_v5 = vpop.xlane.xlu1 %1387  ;;  %v1346_v43 = vpop.xlane.xlu0 %1345  ;;  %v1642_v63 = vcvt.f32.s32 %v4308_v18  ;;  %v1670_v18 = vcvt.f32.s32 %v4324_v39  ;;  %v1698_v39 = vcvt.f32.s32 %v4340_v61  ;;  %v1726_v61 = vcvt.f32.s32 %v4356_v16 }
 0x325   :  { %v1347_v28 = vcvt.f32.s32 %v1346_v43  ;;  %vm1841_vm12 = vcmp.eq.s32.totalorder %v3396_v9, %v1322_v40  ;;  %v1389_v21 = vcvt.f32.s32 %v1388_v5  ;;  %vm1844_vm15 = vcmp.eq.s32.totalorder %v3396_v9, %v1364_v13 }
 0x326   :  { %2979 = vmatprep.mubr.msk.f32.mxu1 %vm1841_vm12, %v3131_v56  ;;  %v1474_v40 = vcvt.f32.s32 %v4855_v11  ;;  %v1460_v5 = vcvt.f32.s32 %v4856_v35  ;;  %v1587_v35 = vshll.u32 %v1586_v59, 16 }
 0x327   :  { %v1350_v1 = vadd.s32 %v1349_v0, %v1347_v28  ;;  %2980 = vmatmul.mubr.msk.f32.gmra.mxu1 %vm1842_vm13, %v3131_v56  ;;  %v1392_v33 = vadd.s32 %v1391_v62, %v1389_v21  ;;  %v4857_v62 = vld [vmem:[#allocation59_spill] sm:$0xff] }
 0x328   :  { %v1416_v34 = vpop.xlane.xlu1 %1415  ;;  %v1374_v47 = vpop.xlane.xlu0 %1373  ;;  %v1475_v0 = vshll.u32 %v1474_v40, 16  ;;  %v1461_v28 = vshll.u32 %v1460_v5, 16  ;;  %v1502_v8 = vcvt.f32.s32 %v4857_v62 }
 0x329   :  { %v1375_v12 = vcvt.f32.s32 %v1374_v47  ;;  %vm1843_vm14 = vcmp.eq.s32.totalorder %v3396_v9, %v1350_v1  ;;  %v1417_v17 = vcvt.f32.s32 %v1416_v34  ;;  %vm1846_vm1 = vcmp.eq.s32.totalorder %v3396_v9, %v1392_v33 }
 0x32a   :  { %2982 = vmatprep.mubr.msk.f32.mxu1 %vm1843_vm14, %v3131_v56  ;;  %v1488_v47 = vcvt.f32.s32 %v4238_v7  ;;  %v1503_v41 = vshll.u32 %v1502_v8, 16  ;;  %v1516_v7 = vcvt.f32.s32 %v4254_v53  ;;  %v1544_v53 = vcvt.f32.s32 %v4270_v23 }
 0x32b   :  { %v1378_v60 = vadd.s32 %v1377_v32, %v1375_v12  ;;  %2983 = vmatmul.mubr.msk.f32.gmra.mxu1 %vm1844_vm15, %v3131_v56  ;;  %v1420_v54 = vadd.s32 %v1419_v26, %v1417_v17  ;;  %v1572_v23 = vcvt.f32.s32 %v4286_v50  ;;  %v1600_v50 = vcvt.f32.s32 %v4302_v36 }
 0x32c   :  { %v1444_v42 = vpop.xlane.xlu1 %1443  ;;  %v1402_v57 = vpop.xlane.xlu0 %1401  ;;  %v1489_v33 = vshll.u32 %v1488_v47, 16  ;;  %v1517_v25 = vshll.u32 %v1516_v7, 16  ;;  %v1628_v36 = vcvt.f32.s32 %v4318_v6  ;;  %v1656_v6 = vcvt.f32.s32 %v4334_v58 }
 0x32d   :  { %v1403_v20 = vcvt.f32.s32 %v1402_v57  ;;  %vm1845_vm0 = vcmp.eq.s32.totalorder %v3396_v9, %v1378_v60  ;;  %v1445_v49 = vcvt.f32.s32 %v1444_v42  ;;  %vm1848_vm3 = vcmp.eq.s32.totalorder %v3396_v9, %v1420_v54 }
 0x32e   :  { %2985 = vmatprep.mubr.msk.f32.mxu1 %vm1845_vm0, %v3131_v56  ;;  %v1601_v8 = vshll.u32 %v1600_v50, 16  ;;  %v1684_v58 = vcvt.f32.s32 %v4350_v14 }
 0x32f   :  { %v1406_v55 = vadd.s32 %v1405_v19, %v1403_v20  ;;  %2986 = vmatmul.mubr.msk.f32.gmra.mxu1 %vm1846_vm1, %v3131_v56  ;;  %v1448_v46 = vadd.s32 %v1447_v4, %v1445_v49  ;;  %v1531_v19 = vshll.u32 %v1530_v29, 16 }
 0x330   :  { %v1430_v3 = vpop.xlane.xlu0 %1429 }
 0x331   :  { %v1431_v45 = vcvt.f32.s32 %v1430_v3  ;;  %vm1847_vm2 = vcmp.eq.s32.totalorder %v3396_v9, %v1406_v55  ;;  %vm1850_vm5 = vcmp.eq.s32.totalorder %v3396_v9, %v1448_v46  ;;  %v1559_v3 = vshll.u32 %v1558_v10, 16 }
 0x332   :  { %2988 = vmatprep.mubr.msk.f32.mxu1 %vm1847_vm2, %v3131_v56 }
 0x333   :  { %v1434_v44 = vadd.s32 %v1433_v52, %v1431_v45  ;;  %2989 = vmatmul.mubr.msk.f32.gmra.mxu1 %vm1848_vm3, %v3131_v56  ;;  %v1545_v45 = vshll.u32 %v1544_v53, 16  ;;  %v1699_v53 = vshll.u32 %v1698_v39, 16 }
 0x334   :  { %v1472_v15 = vpop.xlane.xlu1 %1471 }
 0x335   :  { %vm1849_vm4 = vcmp.eq.s32.totalorder %v3396_v9, %v1434_v44  ;;  %v1473_v43 = vcvt.f32.s32 %v1472_v15 }
 0x336   :  { %2991 = vmatprep.mubr.msk.f32.mxu1 %vm1849_vm4, %v3131_v56 }
 0x337   :  { %2992 = vmatmul.mubr.msk.f32.gmra.mxu1 %vm1850_vm5, %v3131_v56  ;;  %v1476_v21 = vadd.s32 %v1475_v0, %v1473_v43  ;;  %v1573_v43 = vshll.u32 %v1572_v23, 16  ;;  %v1727_v23 = vshll.u32 %v1726_v61, 16 }
 0x338   :  { %v1458_v22 = vpop.xlane.xlu0 %1457 }
 0x339   :  { %v1459_v13 = vcvt.f32.s32 %v1458_v22  ;;  %vm1852_vm7 = vcmp.eq.s32.totalorder %v3396_v9, %v1476_v21 }
 0x33b   :  { %v1462_v1 = vadd.s32 %v1461_v28, %v1459_v13 }
 0x33c   :  { %v1500_v34 = vpop.xlane.xlu1 %1499 }
 0x33d   :  { %vm1851_vm6 = vcmp.eq.s32.totalorder %v3396_v9, %v1462_v1  ;;  %v1501_v32 = vcvt.f32.s32 %v1500_v34  ;;  %v1615_v1 = vshll.u32 %v1614_v31, 16 }
 0x33e   :  { %2994 = vmatprep.mubr.msk.f32.mxu1 %vm1851_vm6, %v3131_v56 }
 0x33f   :  { %2995 = vmatmul.mubr.msk.f32.gmra.mxu1 %vm1852_vm7, %v3131_v56  ;;  %v1504_v60 = vadd.s32 %v1503_v41, %v1501_v32 }
 0x340   :  { %v1486_v12 = vpop.xlane.xlu0 %1485 }
 0x341   :  { %v1487_v17 = vcvt.f32.s32 %v1486_v12  ;;  %vm1854_vm9 = vcmp.eq.s32.totalorder %v3396_v9, %v1504_v60  ;;  %v1629_v60 = vshll.u32 %v1628_v36, 16 }
 0x343   :  { %v1490_v26 = vadd.s32 %v1489_v33, %v1487_v17  ;;  %v1643_v33 = vshll.u32 %v1642_v63, 16 }
 0x344   :  { %v1528_v42 = vpop.xlane.xlu1 %1527 }
 0x345   :  { %vm1853_vm8 = vcmp.eq.s32.totalorder %v3396_v9, %v1490_v26  ;;  %v1529_v57 = vcvt.f32.s32 %v1528_v42 }
 0x346   :  { %2997 = vmatprep.mubr.msk.f32.mxu1 %vm1853_vm8, %v3131_v56 }
 0x347   :  { %2998 = vmatmul.mubr.msk.f32.gmra.mxu1 %vm1854_vm9, %v3131_v56  ;;  %v1532_v54 = vadd.s32 %v1531_v19, %v1529_v57  ;;  %v1671_v19 = vshll.u32 %v1670_v18, 16  ;;  %v1810_v18 = vcvt.f32.s32 %v4413_v51 }
 0x348   :  { %v1514_v2 = vpop.xlane.xlu0 %1513 }
 0x349   :  { %v1515_v20 = vcvt.f32.s32 %v1514_v2  ;;  %vm1856_vm11 = vcmp.eq.s32.totalorder %v3396_v9, %v1532_v54 }
 0x34b   :  { %v1518_v49 = vadd.s32 %v1517_v25, %v1515_v20  ;;  %v1657_v25 = vshll.u32 %v1656_v6, 16 }
 0x34c   :  { %v1556_v55 = vpop.xlane.xlu1 %1555 }
 0x34d   :  { %vm1855_vm10 = vcmp.eq.s32.totalorder %v3396_v9, %v1518_v49  ;;  %v1557_v4 = vcvt.f32.s32 %v1556_v55 }
 0x34e   :  { %3000 = vmatprep.mubr.msk.f32.mxu1 %vm1855_vm10, %v3131_v56 }
 0x34f   :  { %3001 = vmatmul.mubr.msk.f32.gmra.mxu1 %vm1856_vm11, %v3131_v56  ;;  %v1560_v44 = vadd.s32 %v1559_v3, %v1557_v4  ;;  %v1685_v3 = vshll.u32 %v1684_v58, 16 }
 0x350   :  { %v1542_v52 = vpop.xlane.xlu0 %1541 }
 0x351   :  { %v1543_v46 = vcvt.f32.s32 %v1542_v52  ;;  %vm1858_vm13 = vcmp.eq.s32.totalorder %v3396_v9, %v1560_v44 }
 0x353   :  { %v1546_v11 = vadd.s32 %v1545_v45, %v1543_v46 }
 0x354   :  { %v1584_v40 = vpop.xlane.xlu1 %1583 }
 0x355   :  { %vm1857_vm12 = vcmp.eq.s32.totalorder %v3396_v9, %v1546_v11  ;;  %v1585_v15 = vcvt.f32.s32 %v1584_v40  ;;  %v1712_v11 = vcvt.f32.s32 %v4366_v48  ;;  %v1754_v48 = vcvt.f32.s32 %v4372_v30 }
 0x356   :  { %3003 = vmatprep.mubr.msk.f32.mxu1 %vm1857_vm12, %v3131_v56 }
 0x357   :  { %3004 = vmatmul.mubr.msk.f32.gmra.mxu1 %vm1858_vm13, %v3131_v56  ;;  %v1588_v22 = vadd.s32 %v1587_v35, %v1585_v15  ;;  %v1713_v35 = vshll.u32 %v1712_v11, 16  ;;  %v1755_v50 = vshll.u32 %v1754_v48, 16 }
 0x358   :  { %v1570_v5 = vpop.xlane.xlu0 %1569 }
 0x359   :  { %v1571_v0 = vcvt.f32.s32 %v1570_v5  ;;  %vm1860_vm15 = vcmp.eq.s32.totalorder %v3396_v9, %v1588_v22 }
 0x35b   :  { %v1574_v28 = vadd.s32 %v1573_v43, %v1571_v0 }
 0x35c   :  { %v1612_v13 = vpop.xlane.xlu1 %1611 }
 0x35d   :  { %vm1859_vm14 = vcmp.eq.s32.totalorder %v3396_v9, %v1574_v28  ;;  %v1613_v21 = vcvt.f32.s32 %v1612_v13  ;;  %v1740_v28 = vcvt.f32.s32 %v4382_v27  ;;  %v1782_v27 = vcvt.f32.s32 %v4388_v37 }
 0x35e   :  { %3006 = vmatprep.mubr.msk.f32.mxu1 %vm1859_vm14, %v3131_v56  ;;  %v1796_v37 = vcvt.f32.s32 %v4404_v38 }
 0x35f   :  { %3007 = vmatmul.mubr.msk.f32.gmra.mxu1 %vm1860_vm15, %v3131_v56  ;;  %v1616_v47 = vadd.s32 %v1615_v1, %v1613_v21  ;;  %v1741_v1 = vshll.u32 %v1740_v28, 16  ;;  %v1783_v36 = vshll.u32 %v1782_v27, 16 }
 0x360   :  { %v1598_v62 = vpop.xlane.xlu0 %1597 }
 0x361   :  { %v1599_v34 = vcvt.f32.s32 %v1598_v62  ;;  %vm1862_vm1 = vcmp.eq.s32.totalorder %v3396_v9, %v1616_v47 }
 0x363   :  { %v1602_v32 = vadd.s32 %v1601_v8, %v1599_v34 }
 0x364   :  { %v1640_v41 = vpop.xlane.xlu1 %1639 }
 0x365   :  { %vm1861_vm0 = vcmp.eq.s32.totalorder %v3396_v9, %v1602_v32  ;;  %v1641_v12 = vcvt.f32.s32 %v1640_v41  ;;  %v1768_v32 = vcvt.f32.s32 %v4398_v24 }
 0x366   :  { %3009 = vmatprep.mubr.msk.f32.mxu1 %vm1861_vm0, %v3131_v56 }
 0x367   :  { %3010 = vmatmul.mubr.msk.f32.gmra.mxu1 %vm1862_vm1, %v3131_v56  ;;  %v1644_v29 = vadd.s32 %v1643_v33, %v1641_v12  ;;  %v1769_v33 = vshll.u32 %v1768_v32, 16 }
 0x368   :  { %v1626_v17 = vpop.xlane.xlu0 %1625 }
 0x369   :  { %v1627_v26 = vcvt.f32.s32 %v1626_v17  ;;  %vm1864_vm3 = vcmp.eq.s32.totalorder %v3396_v9, %v1644_v29 }
 0x36b   :  { %v1630_v42 = vadd.s32 %v1629_v60, %v1627_v26 }
 0x36c   :  { %v1668_v7 = vpop.xlane.xlu1 %1667 }
 0x36d   :  { %vm1863_vm2 = vcmp.eq.s32.totalorder %v3396_v9, %v1630_v42  ;;  %v1669_v57 = vcvt.f32.s32 %v1668_v7  ;;  %v1797_v42 = vshll.u32 %v1796_v37, 16 }
 0x36e   :  { %3012 = vmatprep.mubr.msk.f32.mxu1 %vm1863_vm2, %v3131_v56 }
 0x36f   :  { %3013 = vmatmul.mubr.msk.f32.gmra.mxu1 %vm1864_vm3, %v3131_v56  ;;  %v1672_v54 = vadd.s32 %v1671_v19, %v1669_v57  ;;  %v1811_v19 = vshll.u32 %v1810_v18, 16 }
 0x370   :  { %v1654_v2 = vpop.xlane.xlu0 %1653 }
 0x371   :  { %v1655_v20 = vcvt.f32.s32 %v1654_v2  ;;  %vm1866_vm5 = vcmp.eq.s32.totalorder %v3396_v9, %v1672_v54 }
 0x373   :  { %v1658_v49 = vadd.s32 %v1657_v25, %v1655_v20 }
 0x374   :  { %v1696_v10 = vpop.xlane.xlu1 %1695 }
 0x375   :  { %vm1865_vm4 = vcmp.eq.s32.totalorder %v3396_v9, %v1658_v49  ;;  %v1697_v55 = vcvt.f32.s32 %v1696_v10 }
 0x376   :  { %3015 = vmatprep.mubr.msk.f32.mxu1 %vm1865_vm4, %v3131_v56 }
 0x377   :  { %3016 = vmatmul.mubr.msk.f32.gmra.mxu1 %vm1866_vm5, %v3131_v56  ;;  %v1700_v45 = vadd.s32 %v1699_v53, %v1697_v55 }
 0x378   :  { %v1682_v4 = vpop.xlane.xlu0 %1681 }
 0x379   :  { %v1683_v52 = vcvt.f32.s32 %v1682_v4  ;;  %vm1868_vm7 = vcmp.eq.s32.totalorder %v3396_v9, %v1700_v45 }
 0x37b   :  { %v1686_v46 = vadd.s32 %v1685_v3, %v1683_v52  ;;  %v2939_v44 = vpop.f32.mrf.mxu1 }
 0x37c   :  { %2407 = vst [vmem:[#allocation8 + $0x8] sm:$0xff] %v2939_v44  ;;  %v1724_v14 = vpop.xlane.xlu1 %1723 }
 0x37d   :  { %v2087_v59 = vpop.f32.mrf.mxu1  ;;  %vm1867_vm6 = vcmp.eq.s32.totalorder %v3396_v9, %v1686_v46  ;;  %v1725_v40 = vcvt.f32.s32 %v1724_v14 }
 0x37e   :  { %2406 = vst [vmem:[#allocation8] sm:$0xff] %v2087_v59  ;;  %3018 = vmatprep.mubr.msk.f32.mxu1 %vm1867_vm6, %v3131_v56 }
 0x37f   :  { %3019 = vmatmul.mubr.msk.f32.gmra.mxu1 %vm1868_vm7, %v3131_v56  ;;  %v1728_v16 = vadd.s32 %v1727_v23, %v1725_v40 }
 0x380   :  { %v1710_v15 = vpop.xlane.xlu0 %1709 }
 0x381   :  { %v1711_v5 = vcvt.f32.s32 %v1710_v15  ;;  %vm1870_vm9 = vcmp.eq.s32.totalorder %v3396_v9, %v1728_v16 }
 0x383   :  { %v1714_v43 = vadd.s32 %v1713_v35, %v1711_v5  ;;  %v2942_v0 = vpop.f32.mrf.mxu1 }
 0x384   :  { %2409 = vst [vmem:[#allocation8 + $0x18] sm:$0xff] %v2942_v0  ;;  %v1752_v22 = vpop.xlane.xlu1 %1751 }
 0x385   :  { %v2097_v31 = vpop.f32.mrf.mxu1  ;;  %vm1869_vm8 = vcmp.eq.s32.totalorder %v3396_v9, %v1714_v43  ;;  %v1753_v13 = vcvt.f32.s32 %v1752_v22 }
 0x386   :  { %2408 = vst [vmem:[#allocation8 + $0x10] sm:$0xff] %v2097_v31  ;;  %3021 = vmatprep.mubr.msk.f32.mxu1 %vm1869_vm8, %v3131_v56 }
 0x387   :  { %3022 = vmatmul.mubr.msk.f32.gmra.mxu1 %vm1870_vm9, %v3131_v56  ;;  %v1756_v30 = vadd.s32 %v1755_v50, %v1753_v13 }
 0x388   :  { %v1738_v21 = vpop.xlane.xlu0 %1737 }
 0x389   :  { %v1739_v62 = vcvt.f32.s32 %v1738_v21  ;;  %vm1872_vm11 = vcmp.eq.s32.totalorder %v3396_v9, %v1756_v30 }
 0x38b   :  { %v1742_v8 = vadd.s32 %v1741_v1, %v1739_v62  ;;  %v2945_v34 = vpop.f32.mrf.mxu1 }
 0x38c   :  { %2411 = vst [vmem:[#allocation8 + $0x28] sm:$0xff] %v2945_v34  ;;  %v1780_v47 = vpop.xlane.xlu1 %1779 }
 0x38d   :  { %v2107_v63 = vpop.f32.mrf.mxu1  ;;  %vm1871_vm10 = vcmp.eq.s32.totalorder %v3396_v9, %v1742_v8  ;;  %v1781_v41 = vcvt.f32.s32 %v1780_v47 }
 0x38e   :  { %2410 = vst [vmem:[#allocation8 + $0x20] sm:$0xff] %v2107_v63  ;;  %3024 = vmatprep.mubr.msk.f32.mxu1 %vm1871_vm10, %v3131_v56 }
 0x38f   :  { %3025 = vmatmul.mubr.msk.f32.gmra.mxu1 %vm1872_vm11, %v3131_v56  ;;  %v1784_v60 = vadd.s32 %v1783_v36, %v1781_v41 }
 0x390   :  { %v1766_v12 = vpop.xlane.xlu0 %1765 }
 0x391   :  { %v1767_v17 = vcvt.f32.s32 %v1766_v12  ;;  %vm1874_vm13 = vcmp.eq.s32.totalorder %v3396_v9, %v1784_v60 }
 0x393   :  { %v1770_v26 = vadd.s32 %v1769_v33, %v1767_v17  ;;  %v2948_v24 = vpop.f32.mrf.mxu1 }
 0x394   :  { %2413 = vst [vmem:[#allocation8 + $0x38] sm:$0xff] %v2948_v24  ;;  %v1794_v29 = vpop.xlane.xlu0 %1793 }
 0x395   :  { %v1795_v7 = vcvt.f32.s32 %v1794_v29  ;;  %v2117_v6 = vpop.f32.mrf.mxu1  ;;  %vm1873_vm12 = vcmp.eq.s32.totalorder %v3396_v9, %v1770_v26 }
 0x396   :  { %2412 = vst [vmem:[#allocation8 + $0x30] sm:$0xff] %v2117_v6  ;;  %3027 = vmatprep.mubr.msk.f32.mxu1 %vm1873_vm12, %v3131_v56 }
 0x397   :  { %v1798_v57 = vadd.s32 %v1797_v42, %v1795_v7  ;;  %3028 = vmatmul.mubr.msk.f32.gmra.mxu1 %vm1874_vm13, %v3131_v56 }
 0x398   :  { %v1808_v38 = vpop.xlane.xlu1 %1807 }
 0x399   :  { %v1809_v2 = vcvt.f32.s32 %v1808_v38  ;;  %vm1875_vm14 = vcmp.eq.s32.totalorder %v3396_v9, %v1798_v57 }
 0x39a   :  { %3030 = vmatprep.mubr.msk.f32.mxu1 %vm1875_vm14, %v3131_v56 }
 0x39b   :  { %v1812_v51 = vadd.s32 %v1811_v19, %v1809_v2  ;;  %v2951_v25 = vpop.f32.mrf.mxu1 }
 0x39c   :  { %2415 = vst [vmem:[#allocation8 + $0x48] sm:$0xff] %v2951_v25 }
 0x39d   :  { %v2127_v20 = vpop.f32.mrf.mxu1  ;;  %vm1876_vm15 = vcmp.eq.s32.totalorder %v3396_v9, %v1812_v51 }
 0x39e   :  { %2414 = vst [vmem:[#allocation8 + $0x40] sm:$0xff] %v2127_v20  ;;  %3031 = vmatmul.mubr.msk.f32.gmra.mxu1 %vm1876_vm15, %v3131_v56 }
 0x3a3   :  { %v2954_v54 = vpop.f32.mrf.mxu1 }
 0x3a4   :  { %2417 = vst [vmem:[#allocation8 + $0x58] sm:$0xff] %v2954_v54 }
 0x3a5   :  { %v2137_v49 = vpop.f32.mrf.mxu1 }
 0x3a6   :  { %2416 = vst [vmem:[#allocation8 + $0x50] sm:$0xff] %v2137_v49 }
 0x3ab   :  { %v2957_v39 = vpop.f32.mrf.mxu1 }
 0x3ac   :  { %2419 = vst [vmem:[#allocation8 + $0x68] sm:$0xff] %v2957_v39 }
 0x3ad   :  { %v2147_v10 = vpop.f32.mrf.mxu1 }
 0x3ae   :  { %2418 = vst [vmem:[#allocation8 + $0x60] sm:$0xff] %v2147_v10 }
 0x3b3   :  { %v2960_v58 = vpop.f32.mrf.mxu1 }
 0x3b4   :  { %2421 = vst [vmem:[#allocation8 + $0x78] sm:$0xff] %v2960_v58 }
 0x3b5   :  { %v2157_v55 = vpop.f32.mrf.mxu1 }
 0x3b6   :  { %2420 = vst [vmem:[#allocation8 + $0x70] sm:$0xff] %v2157_v55 }
 0x3bb   :  { %v2963_v53 = vpop.f32.mrf.mxu1 }
 0x3bc   :  { %2423 = vst [vmem:[#allocation8 + $0x88] sm:$0xff] %v2963_v53 }
 0x3bd   :  { %v2167_v4 = vpop.f32.mrf.mxu1 }
 0x3be   :  { %2422 = vst [vmem:[#allocation8 + $0x80] sm:$0xff] %v2167_v4 }
 0x3c3   :  { %v2966_v9 = vpop.f32.mrf.mxu1 }
 0x3c4   :  { %2425 = vst [vmem:[#allocation8 + $0x98] sm:$0xff] %v2966_v9 }
 0x3c5   :  { %v2177_v3 = vpop.f32.mrf.mxu1 }
 0x3c6   :  { %2424 = vst [vmem:[#allocation8 + $0x90] sm:$0xff] %v2177_v3 }
 0x3cb   :  { %v2969_v56 = vpop.f32.mrf.mxu1 }
 0x3cc   :  { %2427 = vst [vmem:[#allocation8 + $0xa8] sm:$0xff] %v2969_v56 }
 0x3cd   :  { %v2187_v52 = vpop.f32.mrf.mxu1 }
 0x3ce   :  { %2426 = vst [vmem:[#allocation8 + $0xa0] sm:$0xff] %v2187_v52 }
 0x3d3   :  { %v2972_v45 = vpop.f32.mrf.mxu1 }
 0x3d4   :  { %2429 = vst [vmem:[#allocation8 + $0xb8] sm:$0xff] %v2972_v45 }
 0x3d5   :  { %v2197_v46 = vpop.f32.mrf.mxu1 }
 0x3d6   :  { %2428 = vst [vmem:[#allocation8 + $0xb0] sm:$0xff] %v2197_v46 }
 0x3db   :  { %v2975_v44 = vpop.f32.mrf.mxu1 }
 0x3dc   :  { %2431 = vst [vmem:[#allocation8 + $0xc8] sm:$0xff] %v2975_v44 }
 0x3dd   :  { %v2207_v61 = vpop.f32.mrf.mxu1 }
 0x3de   :  { %2430 = vst [vmem:[#allocation8 + $0xc0] sm:$0xff] %v2207_v61 }
 0x3e3   :  { %v2978_v14 = vpop.f32.mrf.mxu1 }
 0x3e4   :  { %2433 = vst [vmem:[#allocation8 + $0xd8] sm:$0xff] %v2978_v14 }
 0x3e5   :  { %v2217_v11 = vpop.f32.mrf.mxu1 }
 0x3e6   :  { %2432 = vst [vmem:[#allocation8 + $0xd0] sm:$0xff] %v2217_v11 }
 0x3e7   :  { %v2981_v59 = vpop.f32.mrf.mxu1 }
 0x3e8   :  { %2435 = vst [vmem:[#allocation8 + $0xe8] sm:$0xff] %v2981_v59 }
 0x3e9   :  { %v2227_v40 = vpop.f32.mrf.mxu1 }
 0x3ea   :  { %2434 = vst [vmem:[#allocation8 + $0xe0] sm:$0xff] %v2227_v40 }
 0x3eb   :  { %v2984_v23 = vpop.f32.mrf.mxu1 }
 0x3ec   :  { %2437 = vst [vmem:[#allocation8 + $0xf8] sm:$0xff] %v2984_v23 }
 0x3ed   :  { %v2237_v15 = vpop.f32.mrf.mxu1 }
 0x3ee   :  { %2436 = vst [vmem:[#allocation8 + $0xf0] sm:$0xff] %v2237_v15 }
 0x3ef   :  { %v2987_v35 = vpop.f32.mrf.mxu1 }
 0x3f0   :  { %2439 = vst [vmem:[#allocation8 + $0x108] sm:$0xff] %v2987_v35 }
 0x3f1   :  { %v2247_v5 = vpop.f32.mrf.mxu1 }
 0x3f2   :  { %2438 = vst [vmem:[#allocation8 + $0x100] sm:$0xff] %v2247_v5 }
 0x3f3   :  { %v2990_v16 = vpop.f32.mrf.mxu1 }
 0x3f4   :  { %2441 = vst [vmem:[#allocation8 + $0x118] sm:$0xff] %v2990_v16 }
 0x3f5   :  { %v2257_v43 = vpop.f32.mrf.mxu1 }
 0x3f6   :  { %2440 = vst [vmem:[#allocation8 + $0x110] sm:$0xff] %v2257_v43 }
 0x3f7   :  { %v2993_v0 = vpop.f32.mrf.mxu1 }
 0x3f8   :  { %2443 = vst [vmem:[#allocation8 + $0x128] sm:$0xff] %v2993_v0 }
 0x3f9   :  { %v2267_v48 = vpop.f32.mrf.mxu1 }
 0x3fa   :  { %2442 = vst [vmem:[#allocation8 + $0x120] sm:$0xff] %v2267_v48 }
 0x3ff   :  { %v2996_v22 = vpop.f32.mrf.mxu1 }
 0x400   :  { %2445 = vst [vmem:[#allocation8 + $0x138] sm:$0xff] %v2996_v22 }
 0x401   :  { %v2277_v28 = vpop.f32.mrf.mxu1 }
 0x402   :  { %2444 = vst [vmem:[#allocation8 + $0x130] sm:$0xff] %v2277_v28 }
 0x407   :  { %v2999_v31 = vpop.f32.mrf.mxu1 }
 0x408   :  { %2447 = vst [vmem:[#allocation8 + $0x148] sm:$0xff] %v2999_v31 }
 0x409   :  { %v2287_v13 = vpop.f32.mrf.mxu1 }
 0x40a   :  { %2446 = vst [vmem:[#allocation8 + $0x140] sm:$0xff] %v2287_v13 }
 0x40f   :  { %v3002_v50 = vpop.f32.mrf.mxu1 }
 0x410   :  { %2449 = vst [vmem:[#allocation8 + $0x158] sm:$0xff] %v3002_v50 }
 0x411   :  { %v2297_v21 = vpop.f32.mrf.mxu1 }
 0x412   :  { %2448 = vst [vmem:[#allocation8 + $0x150] sm:$0xff] %v2297_v21 }
 0x417   :  { %v3005_v1 = vpop.f32.mrf.mxu1 }
 0x418   :  { %2451 = vst [vmem:[#allocation8 + $0x168] sm:$0xff] %v3005_v1 }
 0x419   :  { %v2307_v62 = vpop.f32.mrf.mxu1 }
 0x41a   :  { %2450 = vst [vmem:[#allocation8 + $0x160] sm:$0xff] %v2307_v62 }
 0x41f   :  { %v3008_v30 = vpop.f32.mrf.mxu1 }
 0x420   :  { %2453 = vst [vmem:[#allocation8 + $0x178] sm:$0xff] %v3008_v30 }
 0x421   :  { %v2317_v8 = vpop.f32.mrf.mxu1 }
 0x422   :  { %2452 = vst [vmem:[#allocation8 + $0x170] sm:$0xff] %v2317_v8 }
 0x427   :  { %v3011_v34 = vpop.f32.mrf.mxu1 }
 0x428   :  { %2455 = vst [vmem:[#allocation8 + $0x188] sm:$0xff] %v3011_v34 }
 0x429   :  { %v2327_v27 = vpop.f32.mrf.mxu1 }
 0x42a   :  { %2454 = vst [vmem:[#allocation8 + $0x180] sm:$0xff] %v2327_v27 }
 0x42f   :  { %v3014_v47 = vpop.f32.mrf.mxu1 }
 0x430   :  { %2457 = vst [vmem:[#allocation8 + $0x198] sm:$0xff] %v3014_v47 }
 0x431   :  { %v2337_v32 = vpop.f32.mrf.mxu1 }
 0x432   :  { %2456 = vst [vmem:[#allocation8 + $0x190] sm:$0xff] %v2337_v32 }
 0x437   :  { %v3017_v63 = vpop.f32.mrf.mxu1 }
 0x438   :  { %2459 = vst [vmem:[#allocation8 + $0x1a8] sm:$0xff] %v3017_v63 }
 0x439   :  { %v2347_v41 = vpop.f32.mrf.mxu1 }
 0x43a   :  { %2458 = vst [vmem:[#allocation8 + $0x1a0] sm:$0xff] %v2347_v41 }
 0x43f   :  { %v3020_v36 = vpop.f32.mrf.mxu1 }
 0x440   :  { %2461 = vst [vmem:[#allocation8 + $0x1b8] sm:$0xff] %v3020_v36 }
 0x441   :  { %v2357_v12 = vpop.f32.mrf.mxu1 }
 0x442   :  { %2460 = vst [vmem:[#allocation8 + $0x1b0] sm:$0xff] %v2357_v12 }
 0x447   :  { %v3023_v33 = vpop.f32.mrf.mxu1 }
 0x448   :  { %2463 = vst [vmem:[#allocation8 + $0x1c8] sm:$0xff] %v3023_v33 }
 0x449   :  { %v2367_v37 = vpop.f32.mrf.mxu1 }
 0x44a   :  { %2462 = vst [vmem:[#allocation8 + $0x1c0] sm:$0xff] %v2367_v37 }
 0x44f   :  { %v3026_v17 = vpop.f32.mrf.mxu1 }
 0x450   :  { %2465 = vst [vmem:[#allocation8 + $0x1d8] sm:$0xff] %v3026_v17 }
 0x451   :  { %v2377_v60 = vpop.f32.mrf.mxu1 }
 0x452   :  { %2464 = vst [vmem:[#allocation8 + $0x1d0] sm:$0xff] %v2377_v60 }
 0x457   :  { %v3029_v26 = vpop.f32.mrf.mxu1 }
 0x458   :  { %2467 = vst [vmem:[#allocation8 + $0x1e8] sm:$0xff] %v3029_v26 }
 0x459   :  { %v2387_v24 = vpop.f32.mrf.mxu1 }
 0x45a   :  { %2466 = vst [vmem:[#allocation8 + $0x1e0] sm:$0xff] %v2387_v24 }
 0x45e   :  { %v3032_v29 = vpop.f32.mrf.mxu1 }
 0x45f   :  { %2469 = vst [vmem:[#allocation8 + $0x1f8] sm:$0xff] %v3032_v29 }
 0x460   :  { %v2397_v42 = vpop.f32.mrf.mxu1 }
 0x461   :  { %2468 = vst [vmem:[#allocation8 + $0x1f0] sm:$0xff] %v2397_v42 }
 0x462   :  { %3111 = shalt.err (!%p3108_p5)
}
 0x463   :  { %2481 = dma.vmem_to_hbm [thread:$0]  %s2476_s5, 8192, %s4551_s4, [#allocation4], %s3128_s20, %s3128_s20, %s3129_s21  }
 0x464   :  { %3124 = dma.done.wait [#allocation4], 8192  }
 0x465   :  { %3125 = vsyncadd [#allocation4], 4294959104 }
 0x466   :  { %2485 = vsyncpa [#allocation3], 1 }
 0x467   :  { %2486 = vsyncpa [#allocation6], 1 }
 0x468   :  { %2487 = vsyncpa [#allocation4], 1 }

</bundles_post_ra>
